<compile_context>
chip_gen: v7x
topology: tpu7x:2x2x1
jax: 0.10.0
libtpu: 0.0.40
codegen_flags: <defaults>
</compile_context>

<pallas_src>
import functools

import numpy as np
import jax
import jax.numpy as jnp
from jax import lax
from jax.experimental import pallas as pl
from jax.experimental.pallas import tpu as pltpu


# ----------------------------- fused Pallas kernel ---------------------------

def _make_doc_kernel(num_layers, T, Bp, H, num_dirs):
    """Fused DOC kernel: all LSTM layers/directions + final FC, one call."""
    stride = 1 + num_dirs                 # per layer: [wih_fused, whh_f, (whh_r)]
    n_w = num_layers * stride
    G = 4 * H

    def kernel(*refs):
        x_ref = refs[0]                    # (T*Bp, Din0)            bf16
        w_refs = refs[1:1 + n_w]           # per layer: (in, dirs*4H), (H,4H)[,(H,4H)]
        wfc_ref = refs[1 + n_w]            # (dirs*H, L)             bf16
        out_ref = refs[2 + n_w]            # (Bp, L)                 f32
        act = refs[3 + n_w]                # (T*Bp, dirs*H)          bf16 scratch

        def wih(layer):
            return w_refs[layer * stride]

        def whh(layer, d):
            return w_refs[layer * stride + 1 + d]

        def lstm_dir(gx, col0, whh_ref, reverse, n_steps, store_col):
            """Serial LSTM recurrence for one direction; returns final h (Bp,H) f32."""
            whh_v = whh_ref[...]
            h = jnp.zeros((Bp, H), jnp.float32)
            c = jnp.zeros((Bp, H), jnp.float32)
            for s in range(n_steps):                       # fully unrolled
                t = (T - 1 - s) if reverse else s          # in-kernel reversal
                gates = gx[t * Bp:(t + 1) * Bp, col0:col0 + G]
                if s > 0:                                  # h == 0 at s == 0
                    gates = gates + jnp.dot(h.astype(jnp.bfloat16), whh_v,
                                            preferred_element_type=jnp.float32)
                # i/f/o columns were pre-scaled by 0.5 in prepare_params, so one
                # tanh pass covers all four gates: sigmoid(z) = 0.5*tanh(z/2)+0.5.
                a = jnp.tanh(gates)
                a_s = 0.5 * a + 0.5
                i = a_s[:, 0:H]
                f = a_s[:, H:2 * H]
                o = a_s[:, 2 * H:3 * H]
                g = a[:, 3 * H:4 * H]
                c = f * c + i * g
                h = o * jnp.tanh(c)
                if store_col is not None:
                    act[t * Bp:(t + 1) * Bp, store_col:store_col + H] = (
                        h.astype(act.dtype))
            return h

        h_f = None
        h_r = None
        for layer in range(num_layers):
            is_last = layer == num_layers - 1
            # Hoisted input->gates projection for BOTH directions: one matmul.
            # act is read here (value) before this layer's stores overwrite it;
            # same-ref effect ordering keeps the RAW dependence.
            src = x_ref[...] if layer == 0 else act[...]
            gx = jnp.dot(src, wih(layer)[...],
                         preferred_element_type=jnp.float32)   # (T*Bp, dirs*4H)

            h_f = lstm_dir(gx, 0, whh(layer, 0), reverse=False, n_steps=T,
                           store_col=None if is_last else 0)
            if num_dirs == 2:
                # The model returns output[:, -1, :]; its reverse half is the
                # reverse LSTM's FIRST step, so the last layer needs 1 rev step.
                h_r = lstm_dir(gx, G, whh(layer, 1), reverse=True,
                               n_steps=1 if is_last else T,
                               store_col=None if is_last else H)

        out = jnp.dot(h_f.astype(jnp.bfloat16), wfc_ref[0:H, :],
                      preferred_element_type=jnp.float32)
        if num_dirs == 2:
            out = out + jnp.dot(h_r.astype(jnp.bfloat16), wfc_ref[H:2 * H, :],
                                preferred_element_type=jnp.float32)
        out_ref[...] = out.astype(out_ref.dtype)

    return kernel


# ----------------------------- parameter prep --------------------------------

def _prep_gate_weight(w):
    """PyTorch (4H, Din), gate rows [i,f,g,o] -> (Din, 4H) bf16, cols [i,f,o,g],
    with i/f/o columns pre-scaled by 0.5 (sigmoid-via-tanh folding; exact)."""
    four_h, din = w.shape
    h = four_h // 4
    w = w.reshape(4, h, din)[jnp.array([0, 1, 3, 2])]
    scale = jnp.array([0.5, 0.5, 0.5, 1.0], w.dtype).reshape(4, 1, 1)
    w = (w * scale).reshape(four_h, din)
    return jnp.transpose(w).astype(jnp.bfloat16)


def prepare_params(params, num_layers, bidirectional=True):
    """One-time layout prep: transpose, gate reorder, 0.5-fold, bf16 cast,
    and per-layer fusion of both directions' W_ih along the gate axis."""
    suffixes = [""] + (["_reverse"] if bidirectional else [])
    weights = []
    for layer in range(num_layers):
        wih_parts = [_prep_gate_weight(params[f"weight_ih_l{layer}{suf}"])
                     for suf in suffixes]
        weights.append(jnp.concatenate(wih_parts, axis=1)
                       if len(wih_parts) > 1 else wih_parts[0])
        for suf in suffixes:
            weights.append(_prep_gate_weight(params[f"weight_hh_l{layer}{suf}"]))
    wfc = jnp.transpose(params["fc_out"]).astype(jnp.bfloat16)   # (dirs*H, L)
    return {"weights": tuple(weights), "wfc": wfc}


def _doc_cost_estimate(T, B, din0, H, L, num_layers, num_dirs):
    flops = 0
    transcendentals = 0
    bytes_accessed = T * B * din0 * 2                           # x (bf16)
    for layer in range(num_layers):
        din = din0 if layer == 0 else num_dirs * H
        bytes_accessed += (din * num_dirs * 4 * H + num_dirs * H * 4 * H) * 2
        flops += 2 * T * B * din * num_dirs * 4 * H             # hoisted input proj
        for _ in range(num_dirs):
            flops += T * (2 * B * H * 4 * H + 12 * B * H)       # recurrence
            transcendentals += T * 5 * B * H                    # tanh(4H)+tanh(H)
    flops += 2 * B * num_dirs * H * L
    bytes_accessed += num_dirs * H * L * 2 + B * L * 4
    return pl.CostEstimate(flops=flops, transcendentals=transcendentals,
                           bytes_accessed=bytes_accessed)


# ----------------------------- forward wrapper --------------------------------

@functools.partial(jax.jit, static_argnames=("num_layers", "bidirectional"))
def doc_forward(x, prep, num_layers, bidirectional=True):
    """Matches DOC.forward: x (B, T, input_dim) -> (B, latent_dim)."""
    B, T, Din = x.shape
    num_dirs = 2 if bidirectional else 1
    weights = prep["weights"]
    wfc = prep["wfc"]
    H = wfc.shape[0] // num_dirs
    L = wfc.shape[1]

    # Pad batch to a multiple of 8 sublanes -> aligned per-step slices/stores.
    Bp = -(-B // 8) * 8
    x_tm = jnp.transpose(x, (1, 0, 2))                     # (T, B, Din) time-major
    if Bp != B:
        x_tm = jnp.pad(x_tm, ((0, 0), (0, Bp - B), (0, 0)))
    x_tm = x_tm.reshape(T * Bp, Din).astype(jnp.bfloat16)

    kernel = _make_doc_kernel(num_layers, T, Bp, H, num_dirs)
    vmem = pl.BlockSpec(memory_space=pltpu.MemorySpace.VMEM)
    n_in = 1 + len(weights) + 1
    scratch = [pltpu.VMEM((T * Bp, num_dirs * H), jnp.bfloat16)]

    # Explicit VMEM budget (review: v5e 16 MiB / v7x 32 MiB scoped defaults).
    data_bytes = (x_tm.size * 2
                  + sum(int(w.size) * 2 for w in weights) + int(wfc.size) * 2
                  + T * Bp * num_dirs * H * 2                      # act scratch
                  + num_layers * T * Bp * num_dirs * 4 * H * 4     # live gx values
                  + Bp * L * 4)
    vmem_limit = int(min(64 << 20, max(2 * data_bytes, 16 << 20)))

    out = pl.pallas_call(
        kernel,
        out_shape=jax.ShapeDtypeStruct((Bp, L), jnp.float32),
        in_specs=[vmem] * n_in,
        out_specs=vmem,
        scratch_shapes=scratch,
        compiler_params=pltpu.CompilerParams(vmem_limit_bytes=vmem_limit),
        cost_estimate=_doc_cost_estimate(T, Bp, Din, H, L, num_layers, num_dirs),
    )(x_tm, *weights, wfc)
    return out[:B]


# ----------------------------- params & references ----------------------------

def init_params(key, input_dim, hidden_size, latent_dim, num_layers, bidirectional):
    params = {}
    num_dirs = 2 if bidirectional else 1
    k = 1.0 / float(np.sqrt(hidden_size))
    suffixes = [""] + (["_reverse"] if bidirectional else [])
    for layer in range(num_layers):
        layer_in = input_dim if layer == 0 else num_dirs * hidden_size
        for suf in suffixes:
            key, k1, k2 = jax.random.split(key, 3)
            params[f"weight_ih_l{layer}{suf}"] = jax.random.uniform(
                k1, (4 * hidden_size, layer_in), jnp.float32, -k, k)
            params[f"weight_hh_l{layer}{suf}"] = jax.random.uniform(
                k2, (4 * hidden_size, hidden_size), jnp.float32, -k, k)
    key, kf = jax.random.split(key)
    kfc = 1.0 / float(np.sqrt(num_dirs * hidden_size))
    params["fc_out"] = jax.random.uniform(
        kf, (latent_dim, num_dirs * hidden_size), jnp.float32, -kfc, kfc)
    return params


def _lstm_ref_dir(x_tm, w_ih, w_hh, matmul_dtype):
    T, B, _ = x_tm.shape
    H = w_hh.shape[1]
    wih_t = jnp.transpose(w_ih).astype(matmul_dtype)
    whh_t = jnp.transpose(w_hh).astype(matmul_dtype)

    def step(carry, x_t):
        h, c = carry
        gates = (jnp.dot(x_t.astype(matmul_dtype), wih_t,
                         preferred_element_type=jnp.float32)
                 + jnp.dot(h.astype(matmul_dtype), whh_t,
                           preferred_element_type=jnp.float32))
        i, f, g, o = jnp.split(gates, 4, axis=-1)
        c = jax.nn.sigmoid(f) * c + jax.nn.sigmoid(i) * jnp.tanh(g)
        h = jax.nn.sigmoid(o) * jnp.tanh(c)
        return (h, c), h

    init = (jnp.zeros((B, H), jnp.float32), jnp.zeros((B, H), jnp.float32))
    _, hs = lax.scan(step, init, x_tm)
    return hs


def doc_ref(x, params, num_layers, bidirectional=True, matmul_dtype=jnp.float32):
    """Pure-JAX reference. matmul_dtype=bf16 mirrors the kernel's casting."""
    x_tm = jnp.transpose(x, (1, 0, 2)).astype(jnp.float32)
    for layer in range(num_layers):
        outs = [_lstm_ref_dir(x_tm, params[f"weight_ih_l{layer}"],
                              params[f"weight_hh_l{layer}"], matmul_dtype)]
        if bidirectional:
            out_r = _lstm_ref_dir(jnp.flip(x_tm, 0),
                                  params[f"weight_ih_l{layer}_reverse"],
                                  params[f"weight_hh_l{layer}_reverse"],
                                  matmul_dtype)
            outs.append(jnp.flip(out_r, 0))
        x_tm = jnp.concatenate(outs, -1)
    last = x_tm[-1]
    wfc_t = jnp.transpose(params["fc_out"]).astype(matmul_dtype)
    return jnp.dot(last.astype(matmul_dtype), wfc_t,
                   preferred_element_type=jnp.float32)


# ----------------------------- main -------------------------------------------

if __name__ == "__main__":
    B, T, INPUT_DIM = 4, 8, 16
    HIDDEN, LATENT, NUM_LAYERS = 32, 8, 3
    BIDIR = True

    key = jax.random.PRNGKey(0)
    kx, kp = jax.random.split(key)
    x = jax.random.normal(kx, (B, T, INPUT_DIM), jnp.float32)
    params = init_params(kp, INPUT_DIM, HIDDEN, LATENT, NUM_LAYERS, BIDIR)
    prep = prepare_params(params, NUM_LAYERS, BIDIR)

    out = doc_forward(x, prep, NUM_LAYERS, BIDIR)
    out = jax.block_until_ready(out)
    assert out.shape == (B, LATENT)

    # Semantic check against a reference using the same bf16-input / f32-accum
    # matmul convention (tight tolerance).
    ref_bf16 = doc_ref(x, params, NUM_LAYERS, BIDIR, matmul_dtype=jnp.bfloat16)
    np.testing.assert_allclose(np.asarray(out), np.asarray(ref_bf16),
                               rtol=2e-3, atol=2e-3)

    # Sanity check against the full-f32 reference (loose: bf16 rounding).
    ref_f32 = doc_ref(x, params, NUM_LAYERS, BIDIR, matmul_dtype=jnp.float32)
    np.testing.assert_allclose(np.asarray(out), np.asarray(ref_f32),
                               rtol=1e-1, atol=1e-1)

    print("KERNEL_OK")
</pallas_src>

<mosaic_0001>
module attributes {stable_mosaic.version = 11 : i64} {
  func.func @kernel(%arg0: memref<64x16xbf16, #tpu.memory_space<vmem>>, %arg1: memref<16x256xbf16, #tpu.memory_space<vmem>>, %arg2: memref<32x128xbf16, #tpu.memory_space<vmem>>, %arg3: memref<32x128xbf16, #tpu.memory_space<vmem>>, %arg4: memref<64x256xbf16, #tpu.memory_space<vmem>>, %arg5: memref<32x128xbf16, #tpu.memory_space<vmem>>, %arg6: memref<32x128xbf16, #tpu.memory_space<vmem>>, %arg7: memref<64x256xbf16, #tpu.memory_space<vmem>>, %arg8: memref<32x128xbf16, #tpu.memory_space<vmem>>, %arg9: memref<32x128xbf16, #tpu.memory_space<vmem>>, %arg10: memref<64x8xbf16, #tpu.memory_space<vmem>>, %arg11: memref<8x8xf32, #tpu.memory_space<vmem>>, %arg12: memref<64x64xbf16, #tpu.memory_space<vmem>>) attributes {dimension_semantics = [], scalar_prefetch = 0 : i64, scratch_operands = 1 : i64, tpu.core_type = #tpu.core_type<tc>} {
    %c0 = arith.constant 0 : index
    %c0_0 = arith.constant 0 : index
    %0 = vector.load %arg0[%c0, %c0_0] : memref<64x16xbf16, #tpu.memory_space<vmem>>, vector<64x16xbf16>
    %c0_1 = arith.constant 0 : index
    %c0_2 = arith.constant 0 : index
    %1 = vector.load %arg1[%c0_1, %c0_2] : memref<16x256xbf16, #tpu.memory_space<vmem>>, vector<16x256xbf16>
    %cst = arith.constant dense<0.000000e+00> : vector<64x256xf32>
    %2 = tpu.matmul %0, %1, %cst {dimension_numbers = #tpu.dot_dimension_numbers<[1], [0], [0], [1], [0, 0, 1, 1], [], []>} : vector<64x16xbf16>, vector<16x256xbf16>, vector<64x256xf32> -> vector<64x256xf32>
    %c0_3 = arith.constant 0 : index
    %c0_4 = arith.constant 0 : index
    %3 = vector.load %arg2[%c0_3, %c0_4] : memref<32x128xbf16, #tpu.memory_space<vmem>>, vector<32x128xbf16>
    %cst_5 = arith.constant 0.000000e+00 : f32
    %4 = vector.broadcast %cst_5 : f32 to vector<8x32xf32>
    %5 = vector.extract_strided_slice %2 {offsets = [0, 0], sizes = [8, 128], strides = [1, 1]} : vector<64x256xf32> to vector<8x128xf32>
    %6 = math.tanh %5 : vector<8x128xf32>
    %cst_6 = arith.constant 5.000000e-01 : f32
    %7 = vector.broadcast %cst_6 : f32 to vector<8x128xf32>
    %8 = arith.mulf %7, %6 : vector<8x128xf32>
    %cst_7 = arith.constant 5.000000e-01 : f32
    %9 = vector.broadcast %cst_7 : f32 to vector<8x128xf32>
    %10 = arith.addf %8, %9 : vector<8x128xf32>
    %11 = vector.extract_strided_slice %10 {offsets = [0, 0], sizes = [8, 32], strides = [1, 1]} : vector<8x128xf32> to vector<8x32xf32>
    %12 = vector.extract_strided_slice %10 {offsets = [0, 32], sizes = [8, 32], strides = [1, 1]} : vector<8x128xf32> to vector<8x32xf32>
    %13 = vector.extract_strided_slice %10 {offsets = [0, 64], sizes = [8, 32], strides = [1, 1]} : vector<8x128xf32> to vector<8x32xf32>
    %14 = vector.extract_strided_slice %6 {offsets = [0, 96], sizes = [8, 32], strides = [1, 1]} : vector<8x128xf32> to vector<8x32xf32>
    %15 = arith.mulf %12, %4 : vector<8x32xf32>
    %16 = arith.mulf %11, %14 : vector<8x32xf32>
    %17 = arith.addf %15, %16 : vector<8x32xf32>
    %18 = math.tanh %17 : vector<8x32xf32>
    %19 = arith.mulf %13, %18 : vector<8x32xf32>
    %20 = arith.truncf %19 : vector<8x32xf32> to vector<8x32xbf16>
    %c0_8 = arith.constant 0 : index
    %c0_9 = arith.constant 0 : index
    %21 = vector.load %arg12[%c0_8, %c0_9] : memref<64x64xbf16, #tpu.memory_space<vmem>>, vector<8x32xbf16>
    tpu.vector_store %arg12[%c0_8, %c0_9], %20 {strides = array<i32>} : memref<64x64xbf16, #tpu.memory_space<vmem>>, vector<8x32xbf16>,
    %22 = vector.extract_strided_slice %2 {offsets = [8, 0], sizes = [8, 128], strides = [1, 1]} : vector<64x256xf32> to vector<8x128xf32>
    %23 = arith.truncf %19 : vector<8x32xf32> to vector<8x32xbf16>
    %cst_10 = arith.constant dense<0.000000e+00> : vector<8x128xf32>
    %24 = tpu.matmul %23, %3, %cst_10 {dimension_numbers = #tpu.dot_dimension_numbers<[1], [0], [0], [1], [0, 0, 1, 1], [], []>} : vector<8x32xbf16>, vector<32x128xbf16>, vector<8x128xf32> -> vector<8x128xf32>
    %25 = arith.addf %22, %24 : vector<8x128xf32>
    %26 = math.tanh %25 : vector<8x128xf32>
    %cst_11 = arith.constant 5.000000e-01 : f32
    %27 = vector.broadcast %cst_11 : f32 to vector<8x128xf32>
    %28 = arith.mulf %27, %26 : vector<8x128xf32>
    %cst_12 = arith.constant 5.000000e-01 : f32
    %29 = vector.broadcast %cst_12 : f32 to vector<8x128xf32>
    %30 = arith.addf %28, %29 : vector<8x128xf32>
    %31 = vector.extract_strided_slice %30 {offsets = [0, 0], sizes = [8, 32], strides = [1, 1]} : vector<8x128xf32> to vector<8x32xf32>
    %32 = vector.extract_strided_slice %30 {offsets = [0, 32], sizes = [8, 32], strides = [1, 1]} : vector<8x128xf32> to vector<8x32xf32>
    %33 = vector.extract_strided_slice %30 {offsets = [0, 64], sizes = [8, 32], strides = [1, 1]} : vector<8x128xf32> to vector<8x32xf32>
    %34 = vector.extract_strided_slice %26 {offsets = [0, 96], sizes = [8, 32], strides = [1, 1]} : vector<8x128xf32> to vector<8x32xf32>
    %35 = arith.mulf %32, %17 : vector<8x32xf32>
    %36 = arith.mulf %31, %34 : vector<8x32xf32>
    %37 = arith.addf %35, %36 : vector<8x32xf32>
    %38 = math.tanh %37 : vector<8x32xf32>
    %39 = arith.mulf %33, %38 : vector<8x32xf32>
    %40 = arith.truncf %39 : vector<8x32xf32> to vector<8x32xbf16>
    %c8 = arith.constant 8 : index
    %c0_13 = arith.constant 0 : index
    %41 = vector.load %arg12[%c8, %c0_13] : memref<64x64xbf16, #tpu.memory_space<vmem>>, vector<8x32xbf16>
    tpu.vector_store %arg12[%c8, %c0_13], %40 {strides = array<i32>} : memref<64x64xbf16, #tpu.memory_space<vmem>>, vector<8x32xbf16>,
    %42 = vector.extract_strided_slice %2 {offsets = [16, 0], sizes = [8, 128], strides = [1, 1]} : vector<64x256xf32> to vector<8x128xf32>
    %43 = arith.truncf %39 : vector<8x32xf32> to vector<8x32xbf16>
    %cst_14 = arith.constant dense<0.000000e+00> : vector<8x128xf32>
    %44 = tpu.matmul %43, %3, %cst_14 {dimension_numbers = #tpu.dot_dimension_numbers<[1], [0], [0], [1], [0, 0, 1, 1], [], []>} : vector<8x32xbf16>, vector<32x128xbf16>, vector<8x128xf32> -> vector<8x128xf32>
    %45 = arith.addf %42, %44 : vector<8x128xf32>
    %46 = math.tanh %45 : vector<8x128xf32>
    %cst_15 = arith.constant 5.000000e-01 : f32
    %47 = vector.broadcast %cst_15 : f32 to vector<8x128xf32>
    %48 = arith.mulf %47, %46 : vector<8x128xf32>
    %cst_16 = arith.constant 5.000000e-01 : f32
    %49 = vector.broadcast %cst_16 : f32 to vector<8x128xf32>
    %50 = arith.addf %48, %49 : vector<8x128xf32>
    %51 = vector.extract_strided_slice %50 {offsets = [0, 0], sizes = [8, 32], strides = [1, 1]} : vector<8x128xf32> to vector<8x32xf32>
    %52 = vector.extract_strided_slice %50 {offsets = [0, 32], sizes = [8, 32], strides = [1, 1]} : vector<8x128xf32> to vector<8x32xf32>
    %53 = vector.extract_strided_slice %50 {offsets = [0, 64], sizes = [8, 32], strides = [1, 1]} : vector<8x128xf32> to vector<8x32xf32>
    %54 = vector.extract_strided_slice %46 {offsets = [0, 96], sizes = [8, 32], strides = [1, 1]} : vector<8x128xf32> to vector<8x32xf32>
    %55 = arith.mulf %52, %37 : vector<8x32xf32>
    %56 = arith.mulf %51, %54 : vector<8x32xf32>
    %57 = arith.addf %55, %56 : vector<8x32xf32>
    %58 = math.tanh %57 : vector<8x32xf32>
    %59 = arith.mulf %53, %58 : vector<8x32xf32>
    %60 = arith.truncf %59 : vector<8x32xf32> to vector<8x32xbf16>
    %c16 = arith.constant 16 : index
    %c0_17 = arith.constant 0 : index
    %61 = vector.load %arg12[%c16, %c0_17] : memref<64x64xbf16, #tpu.memory_space<vmem>>, vector<8x32xbf16>
    tpu.vector_store %arg12[%c16, %c0_17], %60 {strides = array<i32>} : memref<64x64xbf16, #tpu.memory_space<vmem>>, vector<8x32xbf16>,
    %62 = vector.extract_strided_slice %2 {offsets = [24, 0], sizes = [8, 128], strides = [1, 1]} : vector<64x256xf32> to vector<8x128xf32>
    %63 = arith.truncf %59 : vector<8x32xf32> to vector<8x32xbf16>
    %cst_18 = arith.constant dense<0.000000e+00> : vector<8x128xf32>
    %64 = tpu.matmul %63, %3, %cst_18 {dimension_numbers = #tpu.dot_dimension_numbers<[1], [0], [0], [1], [0, 0, 1, 1], [], []>} : vector<8x32xbf16>, vector<32x128xbf16>, vector<8x128xf32> -> vector<8x128xf32>
    %65 = arith.addf %62, %64 : vector<8x128xf32>
    %66 = math.tanh %65 : vector<8x128xf32>
    %cst_19 = arith.constant 5.000000e-01 : f32
    %67 = vector.broadcast %cst_19 : f32 to vector<8x128xf32>
    %68 = arith.mulf %67, %66 : vector<8x128xf32>
    %cst_20 = arith.constant 5.000000e-01 : f32
    %69 = vector.broadcast %cst_20 : f32 to vector<8x128xf32>
    %70 = arith.addf %68, %69 : vector<8x128xf32>
    %71 = vector.extract_strided_slice %70 {offsets = [0, 0], sizes = [8, 32], strides = [1, 1]} : vector<8x128xf32> to vector<8x32xf32>
    %72 = vector.extract_strided_slice %70 {offsets = [0, 32], sizes = [8, 32], strides = [1, 1]} : vector<8x128xf32> to vector<8x32xf32>
    %73 = vector.extract_strided_slice %70 {offsets = [0, 64], sizes = [8, 32], strides = [1, 1]} : vector<8x128xf32> to vector<8x32xf32>
    %74 = vector.extract_strided_slice %66 {offsets = [0, 96], sizes = [8, 32], strides = [1, 1]} : vector<8x128xf32> to vector<8x32xf32>
    %75 = arith.mulf %72, %57 : vector<8x32xf32>
    %76 = arith.mulf %71, %74 : vector<8x32xf32>
    %77 = arith.addf %75, %76 : vector<8x32xf32>
    %78 = math.tanh %77 : vector<8x32xf32>
    %79 = arith.mulf %73, %78 : vector<8x32xf32>
    %80 = arith.truncf %79 : vector<8x32xf32> to vector<8x32xbf16>
    %c24 = arith.constant 24 : index
    %c0_21 = arith.constant 0 : index
    %81 = vector.load %arg12[%c24, %c0_21] : memref<64x64xbf16, #tpu.memory_space<vmem>>, vector<8x32xbf16>
    tpu.vector_store %arg12[%c24, %c0_21], %80 {strides = array<i32>} : memref<64x64xbf16, #tpu.memory_space<vmem>>, vector<8x32xbf16>,
    %82 = vector.extract_strided_slice %2 {offsets = [32, 0], sizes = [8, 128], strides = [1, 1]} : vector<64x256xf32> to vector<8x128xf32>
    %83 = arith.truncf %79 : vector<8x32xf32> to vector<8x32xbf16>
    %cst_22 = arith.constant dense<0.000000e+00> : vector<8x128xf32>
    %84 = tpu.matmul %83, %3, %cst_22 {dimension_numbers = #tpu.dot_dimension_numbers<[1], [0], [0], [1], [0, 0, 1, 1], [], []>} : vector<8x32xbf16>, vector<32x128xbf16>, vector<8x128xf32> -> vector<8x128xf32>
    %85 = arith.addf %82, %84 : vector<8x128xf32>
    %86 = math.tanh %85 : vector<8x128xf32>
    %cst_23 = arith.constant 5.000000e-01 : f32
    %87 = vector.broadcast %cst_23 : f32 to vector<8x128xf32>
    %88 = arith.mulf %87, %86 : vector<8x128xf32>
    %cst_24 = arith.constant 5.000000e-01 : f32
    %89 = vector.broadcast %cst_24 : f32 to vector<8x128xf32>
    %90 = arith.addf %88, %89 : vector<8x128xf32>
    %91 = vector.extract_strided_slice %90 {offsets = [0, 0], sizes = [8, 32], strides = [1, 1]} : vector<8x128xf32> to vector<8x32xf32>
    %92 = vector.extract_strided_slice %90 {offsets = [0, 32], sizes = [8, 32], strides = [1, 1]} : vector<8x128xf32> to vector<8x32xf32>
    %93 = vector.extract_strided_slice %90 {offsets = [0, 64], sizes = [8, 32], strides = [1, 1]} : vector<8x128xf32> to vector<8x32xf32>
    %94 = vector.extract_strided_slice %86 {offsets = [0, 96], sizes = [8, 32], strides = [1, 1]} : vector<8x128xf32> to vector<8x32xf32>
    %95 = arith.mulf %92, %77 : vector<8x32xf32>
    %96 = arith.mulf %91, %94 : vector<8x32xf32>
    %97 = arith.addf %95, %96 : vector<8x32xf32>
    %98 = math.tanh %97 : vector<8x32xf32>
    %99 = arith.mulf %93, %98 : vector<8x32xf32>
    %100 = arith.truncf %99 : vector<8x32xf32> to vector<8x32xbf16>
    %c32 = arith.constant 32 : index
    %c0_25 = arith.constant 0 : index
    %101 = vector.load %arg12[%c32, %c0_25] : memref<64x64xbf16, #tpu.memory_space<vmem>>, vector<8x32xbf16>
    tpu.vector_store %arg12[%c32, %c0_25], %100 {strides = array<i32>} : memref<64x64xbf16, #tpu.memory_space<vmem>>, vector<8x32xbf16>,
    %102 = vector.extract_strided_slice %2 {offsets = [40, 0], sizes = [8, 128], strides = [1, 1]} : vector<64x256xf32> to vector<8x128xf32>
    %103 = arith.truncf %99 : vector<8x32xf32> to vector<8x32xbf16>
    %cst_26 = arith.constant dense<0.000000e+00> : vector<8x128xf32>
    %104 = tpu.matmul %103, %3, %cst_26 {dimension_numbers = #tpu.dot_dimension_numbers<[1], [0], [0], [1], [0, 0, 1, 1], [], []>} : vector<8x32xbf16>, vector<32x128xbf16>, vector<8x128xf32> -> vector<8x128xf32>
    %105 = arith.addf %102, %104 : vector<8x128xf32>
    %106 = math.tanh %105 : vector<8x128xf32>
    %cst_27 = arith.constant 5.000000e-01 : f32
    %107 = vector.broadcast %cst_27 : f32 to vector<8x128xf32>
    %108 = arith.mulf %107, %106 : vector<8x128xf32>
    %cst_28 = arith.constant 5.000000e-01 : f32
    %109 = vector.broadcast %cst_28 : f32 to vector<8x128xf32>
    %110 = arith.addf %108, %109 : vector<8x128xf32>
    %111 = vector.extract_strided_slice %110 {offsets = [0, 0], sizes = [8, 32], strides = [1, 1]} : vector<8x128xf32> to vector<8x32xf32>
    %112 = vector.extract_strided_slice %110 {offsets = [0, 32], sizes = [8, 32], strides = [1, 1]} : vector<8x128xf32> to vector<8x32xf32>
    %113 = vector.extract_strided_slice %110 {offsets = [0, 64], sizes = [8, 32], strides = [1, 1]} : vector<8x128xf32> to vector<8x32xf32>
    %114 = vector.extract_strided_slice %106 {offsets = [0, 96], sizes = [8, 32], strides = [1, 1]} : vector<8x128xf32> to vector<8x32xf32>
    %115 = arith.mulf %112, %97 : vector<8x32xf32>
    %116 = arith.mulf %111, %114 : vector<8x32xf32>
    %117 = arith.addf %115, %116 : vector<8x32xf32>
    %118 = math.tanh %117 : vector<8x32xf32>
    %119 = arith.mulf %113, %118 : vector<8x32xf32>
    %120 = arith.truncf %119 : vector<8x32xf32> to vector<8x32xbf16>
    %c40 = arith.constant 40 : index
    %c0_29 = arith.constant 0 : index
    %121 = vector.load %arg12[%c40, %c0_29] : memref<64x64xbf16, #tpu.memory_space<vmem>>, vector<8x32xbf16>
    tpu.vector_store %arg12[%c40, %c0_29], %120 {strides = array<i32>} : memref<64x64xbf16, #tpu.memory_space<vmem>>, vector<8x32xbf16>,
    %122 = vector.extract_strided_slice %2 {offsets = [48, 0], sizes = [8, 128], strides = [1, 1]} : vector<64x256xf32> to vector<8x128xf32>
    %123 = arith.truncf %119 : vector<8x32xf32> to vector<8x32xbf16>
    %cst_30 = arith.constant dense<0.000000e+00> : vector<8x128xf32>
    %124 = tpu.matmul %123, %3, %cst_30 {dimension_numbers = #tpu.dot_dimension_numbers<[1], [0], [0], [1], [0, 0, 1, 1], [], []>} : vector<8x32xbf16>, vector<32x128xbf16>, vector<8x128xf32> -> vector<8x128xf32>
    %125 = arith.addf %122, %124 : vector<8x128xf32>
    %126 = math.tanh %125 : vector<8x128xf32>
    %cst_31 = arith.constant 5.000000e-01 : f32
    %127 = vector.broadcast %cst_31 : f32 to vector<8x128xf32>
    %128 = arith.mulf %127, %126 : vector<8x128xf32>
    %cst_32 = arith.constant 5.000000e-01 : f32
    %129 = vector.broadcast %cst_32 : f32 to vector<8x128xf32>
    %130 = arith.addf %128, %129 : vector<8x128xf32>
    %131 = vector.extract_strided_slice %130 {offsets = [0, 0], sizes = [8, 32], strides = [1, 1]} : vector<8x128xf32> to vector<8x32xf32>
    %132 = vector.extract_strided_slice %130 {offsets = [0, 32], sizes = [8, 32], strides = [1, 1]} : vector<8x128xf32> to vector<8x32xf32>
    %133 = vector.extract_strided_slice %130 {offsets = [0, 64], sizes = [8, 32], strides = [1, 1]} : vector<8x128xf32> to vector<8x32xf32>
    %134 = vector.extract_strided_slice %126 {offsets = [0, 96], sizes = [8, 32], strides = [1, 1]} : vector<8x128xf32> to vector<8x32xf32>
    %135 = arith.mulf %132, %117 : vector<8x32xf32>
    %136 = arith.mulf %131, %134 : vector<8x32xf32>
    %137 = arith.addf %135, %136 : vector<8x32xf32>
    %138 = math.tanh %137 : vector<8x32xf32>
    %139 = arith.mulf %133, %138 : vector<8x32xf32>
    %140 = arith.truncf %139 : vector<8x32xf32> to vector<8x32xbf16>
    %c48 = arith.constant 48 : index
    %c0_33 = arith.constant 0 : index
    %141 = vector.load %arg12[%c48, %c0_33] : memref<64x64xbf16, #tpu.memory_space<vmem>>, vector<8x32xbf16>
    tpu.vector_store %arg12[%c48, %c0_33], %140 {strides = array<i32>} : memref<64x64xbf16, #tpu.memory_space<vmem>>, vector<8x32xbf16>,
    %142 = vector.extract_strided_slice %2 {offsets = [56, 0], sizes = [8, 128], strides = [1, 1]} : vector<64x256xf32> to vector<8x128xf32>
    %143 = arith.truncf %139 : vector<8x32xf32> to vector<8x32xbf16>
    %cst_34 = arith.constant dense<0.000000e+00> : vector<8x128xf32>
    %144 = tpu.matmul %143, %3, %cst_34 {dimension_numbers = #tpu.dot_dimension_numbers<[1], [0], [0], [1], [0, 0, 1, 1], [], []>} : vector<8x32xbf16>, vector<32x128xbf16>, vector<8x128xf32> -> vector<8x128xf32>
    %145 = arith.addf %142, %144 : vector<8x128xf32>
    %146 = math.tanh %145 : vector<8x128xf32>
    %cst_35 = arith.constant 5.000000e-01 : f32
    %147 = vector.broadcast %cst_35 : f32 to vector<8x128xf32>
    %148 = arith.mulf %147, %146 : vector<8x128xf32>
    %cst_36 = arith.constant 5.000000e-01 : f32
    %149 = vector.broadcast %cst_36 : f32 to vector<8x128xf32>
    %150 = arith.addf %148, %149 : vector<8x128xf32>
    %151 = vector.extract_strided_slice %150 {offsets = [0, 0], sizes = [8, 32], strides = [1, 1]} : vector<8x128xf32> to vector<8x32xf32>
    %152 = vector.extract_strided_slice %150 {offsets = [0, 32], sizes = [8, 32], strides = [1, 1]} : vector<8x128xf32> to vector<8x32xf32>
    %153 = vector.extract_strided_slice %150 {offsets = [0, 64], sizes = [8, 32], strides = [1, 1]} : vector<8x128xf32> to vector<8x32xf32>
    %154 = vector.extract_strided_slice %146 {offsets = [0, 96], sizes = [8, 32], strides = [1, 1]} : vector<8x128xf32> to vector<8x32xf32>
    %155 = arith.mulf %152, %137 : vector<8x32xf32>
    %156 = arith.mulf %151, %154 : vector<8x32xf32>
    %157 = arith.addf %155, %156 : vector<8x32xf32>
    %158 = math.tanh %157 : vector<8x32xf32>
    %159 = arith.mulf %153, %158 : vector<8x32xf32>
    %160 = arith.truncf %159 : vector<8x32xf32> to vector<8x32xbf16>
    %c56 = arith.constant 56 : index
    %c0_37 = arith.constant 0 : index
    %161 = vector.load %arg12[%c56, %c0_37] : memref<64x64xbf16, #tpu.memory_space<vmem>>, vector<8x32xbf16>
    tpu.vector_store %arg12[%c56, %c0_37], %160 {strides = array<i32>} : memref<64x64xbf16, #tpu.memory_space<vmem>>, vector<8x32xbf16>,
    %c0_38 = arith.constant 0 : index
    %c0_39 = arith.constant 0 : index
    %162 = vector.load %arg3[%c0_38, %c0_39] : memref<32x128xbf16, #tpu.memory_space<vmem>>, vector<32x128xbf16>
    %cst_40 = arith.constant 0.000000e+00 : f32
    %163 = vector.broadcast %cst_40 : f32 to vector<8x32xf32>
    %164 = vector.extract_strided_slice %2 {offsets = [56, 128], sizes = [8, 128], strides = [1, 1]} : vector<64x256xf32> to vector<8x128xf32>
    %165 = math.tanh %164 : vector<8x128xf32>
    %cst_41 = arith.constant 5.000000e-01 : f32
    %166 = vector.broadcast %cst_41 : f32 to vector<8x128xf32>
    %167 = arith.mulf %166, %165 : vector<8x128xf32>
    %cst_42 = arith.constant 5.000000e-01 : f32
    %168 = vector.broadcast %cst_42 : f32 to vector<8x128xf32>
    %169 = arith.addf %167, %168 : vector<8x128xf32>
    %170 = vector.extract_strided_slice %169 {offsets = [0, 0], sizes = [8, 32], strides = [1, 1]} : vector<8x128xf32> to vector<8x32xf32>
    %171 = vector.extract_strided_slice %169 {offsets = [0, 32], sizes = [8, 32], strides = [1, 1]} : vector<8x128xf32> to vector<8x32xf32>
    %172 = vector.extract_strided_slice %169 {offsets = [0, 64], sizes = [8, 32], strides = [1, 1]} : vector<8x128xf32> to vector<8x32xf32>
    %173 = vector.extract_strided_slice %165 {offsets = [0, 96], sizes = [8, 32], strides = [1, 1]} : vector<8x128xf32> to vector<8x32xf32>
    %174 = arith.mulf %171, %163 : vector<8x32xf32>
    %175 = arith.mulf %170, %173 : vector<8x32xf32>
    %176 = arith.addf %174, %175 : vector<8x32xf32>
    %177 = math.tanh %176 : vector<8x32xf32>
    %178 = arith.mulf %172, %177 : vector<8x32xf32>
    %179 = arith.truncf %178 : vector<8x32xf32> to vector<8x32xbf16>
    %c56_43 = arith.constant 56 : index
    %c32_44 = arith.constant 32 : index
    %180 = vector.load %arg12[%c56_43, %c32_44] : memref<64x64xbf16, #tpu.memory_space<vmem>>, vector<8x32xbf16>
    tpu.vector_store %arg12[%c56_43, %c32_44], %179 {strides = array<i32>} : memref<64x64xbf16, #tpu.memory_space<vmem>>, vector<8x32xbf16>,
    %181 = vector.extract_strided_slice %2 {offsets = [48, 128], sizes = [8, 128], strides = [1, 1]} : vector<64x256xf32> to vector<8x128xf32>
    %182 = arith.truncf %178 : vector<8x32xf32> to vector<8x32xbf16>
    %cst_45 = arith.constant dense<0.000000e+00> : vector<8x128xf32>
    %183 = tpu.matmul %182, %162, %cst_45 {dimension_numbers = #tpu.dot_dimension_numbers<[1], [0], [0], [1], [0, 0, 1, 1], [], []>} : vector<8x32xbf16>, vector<32x128xbf16>, vector<8x128xf32> -> vector<8x128xf32>
    %184 = arith.addf %181, %183 : vector<8x128xf32>
    %185 = math.tanh %184 : vector<8x128xf32>
    %cst_46 = arith.constant 5.000000e-01 : f32
    %186 = vector.broadcast %cst_46 : f32 to vector<8x128xf32>
    %187 = arith.mulf %186, %185 : vector<8x128xf32>
    %cst_47 = arith.constant 5.000000e-01 : f32
    %188 = vector.broadcast %cst_47 : f32 to vector<8x128xf32>
    %189 = arith.addf %187, %188 : vector<8x128xf32>
    %190 = vector.extract_strided_slice %189 {offsets = [0, 0], sizes = [8, 32], strides = [1, 1]} : vector<8x128xf32> to vector<8x32xf32>
    %191 = vector.extract_strided_slice %189 {offsets = [0, 32], sizes = [8, 32], strides = [1, 1]} : vector<8x128xf32> to vector<8x32xf32>
    %192 = vector.extract_strided_slice %189 {offsets = [0, 64], sizes = [8, 32], strides = [1, 1]} : vector<8x128xf32> to vector<8x32xf32>
    %193 = vector.extract_strided_slice %185 {offsets = [0, 96], sizes = [8, 32], strides = [1, 1]} : vector<8x128xf32> to vector<8x32xf32>
    %194 = arith.mulf %191, %176 : vector<8x32xf32>
    %195 = arith.mulf %190, %193 : vector<8x32xf32>
    %196 = arith.addf %194, %195 : vector<8x32xf32>
    %197 = math.tanh %196 : vector<8x32xf32>
    %198 = arith.mulf %192, %197 : vector<8x32xf32>
    %199 = arith.truncf %198 : vector<8x32xf32> to vector<8x32xbf16>
    %c48_48 = arith.constant 48 : index
    %c32_49 = arith.constant 32 : index
    %200 = vector.load %arg12[%c48_48, %c32_49] : memref<64x64xbf16, #tpu.memory_space<vmem>>, vector<8x32xbf16>
    tpu.vector_store %arg12[%c48_48, %c32_49], %199 {strides = array<i32>} : memref<64x64xbf16, #tpu.memory_space<vmem>>, vector<8x32xbf16>,
    %201 = vector.extract_strided_slice %2 {offsets = [40, 128], sizes = [8, 128], strides = [1, 1]} : vector<64x256xf32> to vector<8x128xf32>
    %202 = arith.truncf %198 : vector<8x32xf32> to vector<8x32xbf16>
    %cst_50 = arith.constant dense<0.000000e+00> : vector<8x128xf32>
    %203 = tpu.matmul %202, %162, %cst_50 {dimension_numbers = #tpu.dot_dimension_numbers<[1], [0], [0], [1], [0, 0, 1, 1], [], []>} : vector<8x32xbf16>, vector<32x128xbf16>, vector<8x128xf32> -> vector<8x128xf32>
    %204 = arith.addf %201, %203 : vector<8x128xf32>
    %205 = math.tanh %204 : vector<8x128xf32>
    %cst_51 = arith.constant 5.000000e-01 : f32
    %206 = vector.broadcast %cst_51 : f32 to vector<8x128xf32>
    %207 = arith.mulf %206, %205 : vector<8x128xf32>
    %cst_52 = arith.constant 5.000000e-01 : f32
    %208 = vector.broadcast %cst_52 : f32 to vector<8x128xf32>
    %209 = arith.addf %207, %208 : vector<8x128xf32>
    %210 = vector.extract_strided_slice %209 {offsets = [0, 0], sizes = [8, 32], strides = [1, 1]} : vector<8x128xf32> to vector<8x32xf32>
    %211 = vector.extract_strided_slice %209 {offsets = [0, 32], sizes = [8, 32], strides = [1, 1]} : vector<8x128xf32> to vector<8x32xf32>
    %212 = vector.extract_strided_slice %209 {offsets = [0, 64], sizes = [8, 32], strides = [1, 1]} : vector<8x128xf32> to vector<8x32xf32>
    %213 = vector.extract_strided_slice %205 {offsets = [0, 96], sizes = [8, 32], strides = [1, 1]} : vector<8x128xf32> to vector<8x32xf32>
    %214 = arith.mulf %211, %196 : vector<8x32xf32>
    %215 = arith.mulf %210, %213 : vector<8x32xf32>
    %216 = arith.addf %214, %215 : vector<8x32xf32>
    %217 = math.tanh %216 : vector<8x32xf32>
    %218 = arith.mulf %212, %217 : vector<8x32xf32>
    %219 = arith.truncf %218 : vector<8x32xf32> to vector<8x32xbf16>
    %c40_53 = arith.constant 40 : index
    %c32_54 = arith.constant 32 : index
    %220 = vector.load %arg12[%c40_53, %c32_54] : memref<64x64xbf16, #tpu.memory_space<vmem>>, vector<8x32xbf16>
    tpu.vector_store %arg12[%c40_53, %c32_54], %219 {strides = array<i32>} : memref<64x64xbf16, #tpu.memory_space<vmem>>, vector<8x32xbf16>,
    %221 = vector.extract_strided_slice %2 {offsets = [32, 128], sizes = [8, 128], strides = [1, 1]} : vector<64x256xf32> to vector<8x128xf32>
    %222 = arith.truncf %218 : vector<8x32xf32> to vector<8x32xbf16>
    %cst_55 = arith.constant dense<0.000000e+00> : vector<8x128xf32>
    %223 = tpu.matmul %222, %162, %cst_55 {dimension_numbers = #tpu.dot_dimension_numbers<[1], [0], [0], [1], [0, 0, 1, 1], [], []>} : vector<8x32xbf16>, vector<32x128xbf16>, vector<8x128xf32> -> vector<8x128xf32>
    %224 = arith.addf %221, %223 : vector<8x128xf32>
    %225 = math.tanh %224 : vector<8x128xf32>
    %cst_56 = arith.constant 5.000000e-01 : f32
    %226 = vector.broadcast %cst_56 : f32 to vector<8x128xf32>
    %227 = arith.mulf %226, %225 : vector<8x128xf32>
    %cst_57 = arith.constant 5.000000e-01 : f32
    %228 = vector.broadcast %cst_57 : f32 to vector<8x128xf32>
    %229 = arith.addf %227, %228 : vector<8x128xf32>
    %230 = vector.extract_strided_slice %229 {offsets = [0, 0], sizes = [8, 32], strides = [1, 1]} : vector<8x128xf32> to vector<8x32xf32>
    %231 = vector.extract_strided_slice %229 {offsets = [0, 32], sizes = [8, 32], strides = [1, 1]} : vector<8x128xf32> to vector<8x32xf32>
    %232 = vector.extract_strided_slice %229 {offsets = [0, 64], sizes = [8, 32], strides = [1, 1]} : vector<8x128xf32> to vector<8x32xf32>
    %233 = vector.extract_strided_slice %225 {offsets = [0, 96], sizes = [8, 32], strides = [1, 1]} : vector<8x128xf32> to vector<8x32xf32>
    %234 = arith.mulf %231, %216 : vector<8x32xf32>
    %235 = arith.mulf %230, %233 : vector<8x32xf32>
    %236 = arith.addf %234, %235 : vector<8x32xf32>
    %237 = math.tanh %236 : vector<8x32xf32>
    %238 = arith.mulf %232, %237 : vector<8x32xf32>
    %239 = arith.truncf %238 : vector<8x32xf32> to vector<8x32xbf16>
    %c32_58 = arith.constant 32 : index
    %c32_59 = arith.constant 32 : index
    %240 = vector.load %arg12[%c32_58, %c32_59] : memref<64x64xbf16, #tpu.memory_space<vmem>>, vector<8x32xbf16>
    tpu.vector_store %arg12[%c32_58, %c32_59], %239 {strides = array<i32>} : memref<64x64xbf16, #tpu.memory_space<vmem>>, vector<8x32xbf16>,
    %241 = vector.extract_strided_slice %2 {offsets = [24, 128], sizes = [8, 128], strides = [1, 1]} : vector<64x256xf32> to vector<8x128xf32>
    %242 = arith.truncf %238 : vector<8x32xf32> to vector<8x32xbf16>
    %cst_60 = arith.constant dense<0.000000e+00> : vector<8x128xf32>
    %243 = tpu.matmul %242, %162, %cst_60 {dimension_numbers = #tpu.dot_dimension_numbers<[1], [0], [0], [1], [0, 0, 1, 1], [], []>} : vector<8x32xbf16>, vector<32x128xbf16>, vector<8x128xf32> -> vector<8x128xf32>
    %244 = arith.addf %241, %243 : vector<8x128xf32>
    %245 = math.tanh %244 : vector<8x128xf32>
    %cst_61 = arith.constant 5.000000e-01 : f32
    %246 = vector.broadcast %cst_61 : f32 to vector<8x128xf32>
    %247 = arith.mulf %246, %245 : vector<8x128xf32>
    %cst_62 = arith.constant 5.000000e-01 : f32
    %248 = vector.broadcast %cst_62 : f32 to vector<8x128xf32>
    %249 = arith.addf %247, %248 : vector<8x128xf32>
    %250 = vector.extract_strided_slice %249 {offsets = [0, 0], sizes = [8, 32], strides = [1, 1]} : vector<8x128xf32> to vector<8x32xf32>
    %251 = vector.extract_strided_slice %249 {offsets = [0, 32], sizes = [8, 32], strides = [1, 1]} : vector<8x128xf32> to vector<8x32xf32>
    %252 = vector.extract_strided_slice %249 {offsets = [0, 64], sizes = [8, 32], strides = [1, 1]} : vector<8x128xf32> to vector<8x32xf32>
    %253 = vector.extract_strided_slice %245 {offsets = [0, 96], sizes = [8, 32], strides = [1, 1]} : vector<8x128xf32> to vector<8x32xf32>
    %254 = arith.mulf %251, %236 : vector<8x32xf32>
    %255 = arith.mulf %250, %253 : vector<8x32xf32>
    %256 = arith.addf %254, %255 : vector<8x32xf32>
    %257 = math.tanh %256 : vector<8x32xf32>
    %258 = arith.mulf %252, %257 : vector<8x32xf32>
    %259 = arith.truncf %258 : vector<8x32xf32> to vector<8x32xbf16>
    %c24_63 = arith.constant 24 : index
    %c32_64 = arith.constant 32 : index
    %260 = vector.load %arg12[%c24_63, %c32_64] : memref<64x64xbf16, #tpu.memory_space<vmem>>, vector<8x32xbf16>
    tpu.vector_store %arg12[%c24_63, %c32_64], %259 {strides = array<i32>} : memref<64x64xbf16, #tpu.memory_space<vmem>>, vector<8x32xbf16>,
    %261 = vector.extract_strided_slice %2 {offsets = [16, 128], sizes = [8, 128], strides = [1, 1]} : vector<64x256xf32> to vector<8x128xf32>
    %262 = arith.truncf %258 : vector<8x32xf32> to vector<8x32xbf16>
    %cst_65 = arith.constant dense<0.000000e+00> : vector<8x128xf32>
    %263 = tpu.matmul %262, %162, %cst_65 {dimension_numbers = #tpu.dot_dimension_numbers<[1], [0], [0], [1], [0, 0, 1, 1], [], []>} : vector<8x32xbf16>, vector<32x128xbf16>, vector<8x128xf32> -> vector<8x128xf32>
    %264 = arith.addf %261, %263 : vector<8x128xf32>
    %265 = math.tanh %264 : vector<8x128xf32>
    %cst_66 = arith.constant 5.000000e-01 : f32
    %266 = vector.broadcast %cst_66 : f32 to vector<8x128xf32>
    %267 = arith.mulf %266, %265 : vector<8x128xf32>
    %cst_67 = arith.constant 5.000000e-01 : f32
    %268 = vector.broadcast %cst_67 : f32 to vector<8x128xf32>
    %269 = arith.addf %267, %268 : vector<8x128xf32>
    %270 = vector.extract_strided_slice %269 {offsets = [0, 0], sizes = [8, 32], strides = [1, 1]} : vector<8x128xf32> to vector<8x32xf32>
    %271 = vector.extract_strided_slice %269 {offsets = [0, 32], sizes = [8, 32], strides = [1, 1]} : vector<8x128xf32> to vector<8x32xf32>
    %272 = vector.extract_strided_slice %269 {offsets = [0, 64], sizes = [8, 32], strides = [1, 1]} : vector<8x128xf32> to vector<8x32xf32>
    %273 = vector.extract_strided_slice %265 {offsets = [0, 96], sizes = [8, 32], strides = [1, 1]} : vector<8x128xf32> to vector<8x32xf32>
    %274 = arith.mulf %271, %256 : vector<8x32xf32>
    %275 = arith.mulf %270, %273 : vector<8x32xf32>
    %276 = arith.addf %274, %275 : vector<8x32xf32>
    %277 = math.tanh %276 : vector<8x32xf32>
    %278 = arith.mulf %272, %277 : vector<8x32xf32>
    %279 = arith.truncf %278 : vector<8x32xf32> to vector<8x32xbf16>
    %c16_68 = arith.constant 16 : index
    %c32_69 = arith.constant 32 : index
    %280 = vector.load %arg12[%c16_68, %c32_69] : memref<64x64xbf16, #tpu.memory_space<vmem>>, vector<8x32xbf16>
    tpu.vector_store %arg12[%c16_68, %c32_69], %279 {strides = array<i32>} : memref<64x64xbf16, #tpu.memory_space<vmem>>, vector<8x32xbf16>,
    %281 = vector.extract_strided_slice %2 {offsets = [8, 128], sizes = [8, 128], strides = [1, 1]} : vector<64x256xf32> to vector<8x128xf32>
    %282 = arith.truncf %278 : vector<8x32xf32> to vector<8x32xbf16>
    %cst_70 = arith.constant dense<0.000000e+00> : vector<8x128xf32>
    %283 = tpu.matmul %282, %162, %cst_70 {dimension_numbers = #tpu.dot_dimension_numbers<[1], [0], [0], [1], [0, 0, 1, 1], [], []>} : vector<8x32xbf16>, vector<32x128xbf16>, vector<8x128xf32> -> vector<8x128xf32>
    %284 = arith.addf %281, %283 : vector<8x128xf32>
    %285 = math.tanh %284 : vector<8x128xf32>
    %cst_71 = arith.constant 5.000000e-01 : f32
    %286 = vector.broadcast %cst_71 : f32 to vector<8x128xf32>
    %287 = arith.mulf %286, %285 : vector<8x128xf32>
    %cst_72 = arith.constant 5.000000e-01 : f32
    %288 = vector.broadcast %cst_72 : f32 to vector<8x128xf32>
    %289 = arith.addf %287, %288 : vector<8x128xf32>
    %290 = vector.extract_strided_slice %289 {offsets = [0, 0], sizes = [8, 32], strides = [1, 1]} : vector<8x128xf32> to vector<8x32xf32>
    %291 = vector.extract_strided_slice %289 {offsets = [0, 32], sizes = [8, 32], strides = [1, 1]} : vector<8x128xf32> to vector<8x32xf32>
    %292 = vector.extract_strided_slice %289 {offsets = [0, 64], sizes = [8, 32], strides = [1, 1]} : vector<8x128xf32> to vector<8x32xf32>
    %293 = vector.extract_strided_slice %285 {offsets = [0, 96], sizes = [8, 32], strides = [1, 1]} : vector<8x128xf32> to vector<8x32xf32>
    %294 = arith.mulf %291, %276 : vector<8x32xf32>
    %295 = arith.mulf %290, %293 : vector<8x32xf32>
    %296 = arith.addf %294, %295 : vector<8x32xf32>
    %297 = math.tanh %296 : vector<8x32xf32>
    %298 = arith.mulf %292, %297 : vector<8x32xf32>
    %299 = arith.truncf %298 : vector<8x32xf32> to vector<8x32xbf16>
    %c8_73 = arith.constant 8 : index
    %c32_74 = arith.constant 32 : index
    %300 = vector.load %arg12[%c8_73, %c32_74] : memref<64x64xbf16, #tpu.memory_space<vmem>>, vector<8x32xbf16>
    tpu.vector_store %arg12[%c8_73, %c32_74], %299 {strides = array<i32>} : memref<64x64xbf16, #tpu.memory_space<vmem>>, vector<8x32xbf16>,
    %301 = vector.extract_strided_slice %2 {offsets = [0, 128], sizes = [8, 128], strides = [1, 1]} : vector<64x256xf32> to vector<8x128xf32>
    %302 = arith.truncf %298 : vector<8x32xf32> to vector<8x32xbf16>
    %cst_75 = arith.constant dense<0.000000e+00> : vector<8x128xf32>
    %303 = tpu.matmul %302, %162, %cst_75 {dimension_numbers = #tpu.dot_dimension_numbers<[1], [0], [0], [1], [0, 0, 1, 1], [], []>} : vector<8x32xbf16>, vector<32x128xbf16>, vector<8x128xf32> -> vector<8x128xf32>
    %304 = arith.addf %301, %303 : vector<8x128xf32>
    %305 = math.tanh %304 : vector<8x128xf32>
    %cst_76 = arith.constant 5.000000e-01 : f32
    %306 = vector.broadcast %cst_76 : f32 to vector<8x128xf32>
    %307 = arith.mulf %306, %305 : vector<8x128xf32>
    %cst_77 = arith.constant 5.000000e-01 : f32
    %308 = vector.broadcast %cst_77 : f32 to vector<8x128xf32>
    %309 = arith.addf %307, %308 : vector<8x128xf32>
    %310 = vector.extract_strided_slice %309 {offsets = [0, 0], sizes = [8, 32], strides = [1, 1]} : vector<8x128xf32> to vector<8x32xf32>
    %311 = vector.extract_strided_slice %309 {offsets = [0, 32], sizes = [8, 32], strides = [1, 1]} : vector<8x128xf32> to vector<8x32xf32>
    %312 = vector.extract_strided_slice %309 {offsets = [0, 64], sizes = [8, 32], strides = [1, 1]} : vector<8x128xf32> to vector<8x32xf32>
    %313 = vector.extract_strided_slice %305 {offsets = [0, 96], sizes = [8, 32], strides = [1, 1]} : vector<8x128xf32> to vector<8x32xf32>
    %314 = arith.mulf %311, %296 : vector<8x32xf32>
    %315 = arith.mulf %310, %313 : vector<8x32xf32>
    %316 = arith.addf %314, %315 : vector<8x32xf32>
    %317 = math.tanh %316 : vector<8x32xf32>
    %318 = arith.mulf %312, %317 : vector<8x32xf32>
    %319 = arith.truncf %318 : vector<8x32xf32> to vector<8x32xbf16>
    %c0_78 = arith.constant 0 : index
    %c32_79 = arith.constant 32 : index
    %320 = vector.load %arg12[%c0_78, %c32_79] : memref<64x64xbf16, #tpu.memory_space<vmem>>, vector<8x32xbf16>
    tpu.vector_store %arg12[%c0_78, %c32_79], %319 {strides = array<i32>} : memref<64x64xbf16, #tpu.memory_space<vmem>>, vector<8x32xbf16>,
    %c0_80 = arith.constant 0 : index
    %c0_81 = arith.constant 0 : index
    %321 = vector.load %arg12[%c0_80, %c0_81] : memref<64x64xbf16, #tpu.memory_space<vmem>>, vector<64x64xbf16>
    %c0_82 = arith.constant 0 : index
    %c0_83 = arith.constant 0 : index
    %322 = vector.load %arg4[%c0_82, %c0_83] : memref<64x256xbf16, #tpu.memory_space<vmem>>, vector<64x256xbf16>
    %cst_84 = arith.constant dense<0.000000e+00> : vector<64x256xf32>
    %323 = tpu.matmul %321, %322, %cst_84 {dimension_numbers = #tpu.dot_dimension_numbers<[1], [0], [0], [1], [0, 0, 1, 1], [], []>} : vector<64x64xbf16>, vector<64x256xbf16>, vector<64x256xf32> -> vector<64x256xf32>
    %c0_85 = arith.constant 0 : index
    %c0_86 = arith.constant 0 : index
    %324 = vector.load %arg5[%c0_85, %c0_86] : memref<32x128xbf16, #tpu.memory_space<vmem>>, vector<32x128xbf16>
    %cst_87 = arith.constant 0.000000e+00 : f32
    %325 = vector.broadcast %cst_87 : f32 to vector<8x32xf32>
    %326 = vector.extract_strided_slice %323 {offsets = [0, 0], sizes = [8, 128], strides = [1, 1]} : vector<64x256xf32> to vector<8x128xf32>
    %327 = math.tanh %326 : vector<8x128xf32>
    %cst_88 = arith.constant 5.000000e-01 : f32
    %328 = vector.broadcast %cst_88 : f32 to vector<8x128xf32>
    %329 = arith.mulf %328, %327 : vector<8x128xf32>
    %cst_89 = arith.constant 5.000000e-01 : f32
    %330 = vector.broadcast %cst_89 : f32 to vector<8x128xf32>
    %331 = arith.addf %329, %330 : vector<8x128xf32>
    %332 = vector.extract_strided_slice %331 {offsets = [0, 0], sizes = [8, 32], strides = [1, 1]} : vector<8x128xf32> to vector<8x32xf32>
    %333 = vector.extract_strided_slice %331 {offsets = [0, 32], sizes = [8, 32], strides = [1, 1]} : vector<8x128xf32> to vector<8x32xf32>
    %334 = vector.extract_strided_slice %331 {offsets = [0, 64], sizes = [8, 32], strides = [1, 1]} : vector<8x128xf32> to vector<8x32xf32>
    %335 = vector.extract_strided_slice %327 {offsets = [0, 96], sizes = [8, 32], strides = [1, 1]} : vector<8x128xf32> to vector<8x32xf32>
    %336 = arith.mulf %333, %325 : vector<8x32xf32>
    %337 = arith.mulf %332, %335 : vector<8x32xf32>
    %338 = arith.addf %336, %337 : vector<8x32xf32>
    %339 = math.tanh %338 : vector<8x32xf32>
    %340 = arith.mulf %334, %339 : vector<8x32xf32>
    %341 = arith.truncf %340 : vector<8x32xf32> to vector<8x32xbf16>
    %c0_90 = arith.constant 0 : index
    %c0_91 = arith.constant 0 : index
    %342 = vector.load %arg12[%c0_90, %c0_91] : memref<64x64xbf16, #tpu.memory_space<vmem>>, vector<8x32xbf16>
    tpu.vector_store %arg12[%c0_90, %c0_91], %341 {strides = array<i32>} : memref<64x64xbf16, #tpu.memory_space<vmem>>, vector<8x32xbf16>,
    %343 = vector.extract_strided_slice %323 {offsets = [8, 0], sizes = [8, 128], strides = [1, 1]} : vector<64x256xf32> to vector<8x128xf32>
    %344 = arith.truncf %340 : vector<8x32xf32> to vector<8x32xbf16>
    %cst_92 = arith.constant dense<0.000000e+00> : vector<8x128xf32>
    %345 = tpu.matmul %344, %324, %cst_92 {dimension_numbers = #tpu.dot_dimension_numbers<[1], [0], [0], [1], [0, 0, 1, 1], [], []>} : vector<8x32xbf16>, vector<32x128xbf16>, vector<8x128xf32> -> vector<8x128xf32>
    %346 = arith.addf %343, %345 : vector<8x128xf32>
    %347 = math.tanh %346 : vector<8x128xf32>
    %cst_93 = arith.constant 5.000000e-01 : f32
    %348 = vector.broadcast %cst_93 : f32 to vector<8x128xf32>
    %349 = arith.mulf %348, %347 : vector<8x128xf32>
    %cst_94 = arith.constant 5.000000e-01 : f32
    %350 = vector.broadcast %cst_94 : f32 to vector<8x128xf32>
    %351 = arith.addf %349, %350 : vector<8x128xf32>
    %352 = vector.extract_strided_slice %351 {offsets = [0, 0], sizes = [8, 32], strides = [1, 1]} : vector<8x128xf32> to vector<8x32xf32>
    %353 = vector.extract_strided_slice %351 {offsets = [0, 32], sizes = [8, 32], strides = [1, 1]} : vector<8x128xf32> to vector<8x32xf32>
    %354 = vector.extract_strided_slice %351 {offsets = [0, 64], sizes = [8, 32], strides = [1, 1]} : vector<8x128xf32> to vector<8x32xf32>
    %355 = vector.extract_strided_slice %347 {offsets = [0, 96], sizes = [8, 32], strides = [1, 1]} : vector<8x128xf32> to vector<8x32xf32>
    %356 = arith.mulf %353, %338 : vector<8x32xf32>
    %357 = arith.mulf %352, %355 : vector<8x32xf32>
    %358 = arith.addf %356, %357 : vector<8x32xf32>
    %359 = math.tanh %358 : vector<8x32xf32>
    %360 = arith.mulf %354, %359 : vector<8x32xf32>
    %361 = arith.truncf %360 : vector<8x32xf32> to vector<8x32xbf16>
    %c8_95 = arith.constant 8 : index
    %c0_96 = arith.constant 0 : index
    %362 = vector.load %arg12[%c8_95, %c0_96] : memref<64x64xbf16, #tpu.memory_space<vmem>>, vector<8x32xbf16>
    tpu.vector_store %arg12[%c8_95, %c0_96], %361 {strides = array<i32>} : memref<64x64xbf16, #tpu.memory_space<vmem>>, vector<8x32xbf16>,
    %363 = vector.extract_strided_slice %323 {offsets = [16, 0], sizes = [8, 128], strides = [1, 1]} : vector<64x256xf32> to vector<8x128xf32>
    %364 = arith.truncf %360 : vector<8x32xf32> to vector<8x32xbf16>
    %cst_97 = arith.constant dense<0.000000e+00> : vector<8x128xf32>
    %365 = tpu.matmul %364, %324, %cst_97 {dimension_numbers = #tpu.dot_dimension_numbers<[1], [0], [0], [1], [0, 0, 1, 1], [], []>} : vector<8x32xbf16>, vector<32x128xbf16>, vector<8x128xf32> -> vector<8x128xf32>
    %366 = arith.addf %363, %365 : vector<8x128xf32>
    %367 = math.tanh %366 : vector<8x128xf32>
    %cst_98 = arith.constant 5.000000e-01 : f32
    %368 = vector.broadcast %cst_98 : f32 to vector<8x128xf32>
    %369 = arith.mulf %368, %367 : vector<8x128xf32>
    %cst_99 = arith.constant 5.000000e-01 : f32
    %370 = vector.broadcast %cst_99 : f32 to vector<8x128xf32>
    %371 = arith.addf %369, %370 : vector<8x128xf32>
    %372 = vector.extract_strided_slice %371 {offsets = [0, 0], sizes = [8, 32], strides = [1, 1]} : vector<8x128xf32> to vector<8x32xf32>
    %373 = vector.extract_strided_slice %371 {offsets = [0, 32], sizes = [8, 32], strides = [1, 1]} : vector<8x128xf32> to vector<8x32xf32>
    %374 = vector.extract_strided_slice %371 {offsets = [0, 64], sizes = [8, 32], strides = [1, 1]} : vector<8x128xf32> to vector<8x32xf32>
    %375 = vector.extract_strided_slice %367 {offsets = [0, 96], sizes = [8, 32], strides = [1, 1]} : vector<8x128xf32> to vector<8x32xf32>
    %376 = arith.mulf %373, %358 : vector<8x32xf32>
    %377 = arith.mulf %372, %375 : vector<8x32xf32>
    %378 = arith.addf %376, %377 : vector<8x32xf32>
    %379 = math.tanh %378 : vector<8x32xf32>
    %380 = arith.mulf %374, %379 : vector<8x32xf32>
    %381 = arith.truncf %380 : vector<8x32xf32> to vector<8x32xbf16>
    %c16_100 = arith.constant 16 : index
    %c0_101 = arith.constant 0 : index
    %382 = vector.load %arg12[%c16_100, %c0_101] : memref<64x64xbf16, #tpu.memory_space<vmem>>, vector<8x32xbf16>
    tpu.vector_store %arg12[%c16_100, %c0_101], %381 {strides = array<i32>} : memref<64x64xbf16, #tpu.memory_space<vmem>>, vector<8x32xbf16>,
    %383 = vector.extract_strided_slice %323 {offsets = [24, 0], sizes = [8, 128], strides = [1, 1]} : vector<64x256xf32> to vector<8x128xf32>
    %384 = arith.truncf %380 : vector<8x32xf32> to vector<8x32xbf16>
    %cst_102 = arith.constant dense<0.000000e+00> : vector<8x128xf32>
    %385 = tpu.matmul %384, %324, %cst_102 {dimension_numbers = #tpu.dot_dimension_numbers<[1], [0], [0], [1], [0, 0, 1, 1], [], []>} : vector<8x32xbf16>, vector<32x128xbf16>, vector<8x128xf32> -> vector<8x128xf32>
    %386 = arith.addf %383, %385 : vector<8x128xf32>
    %387 = math.tanh %386 : vector<8x128xf32>
    %cst_103 = arith.constant 5.000000e-01 : f32
    %388 = vector.broadcast %cst_103 : f32 to vector<8x128xf32>
    %389 = arith.mulf %388, %387 : vector<8x128xf32>
    %cst_104 = arith.constant 5.000000e-01 : f32
    %390 = vector.broadcast %cst_104 : f32 to vector<8x128xf32>
    %391 = arith.addf %389, %390 : vector<8x128xf32>
    %392 = vector.extract_strided_slice %391 {offsets = [0, 0], sizes = [8, 32], strides = [1, 1]} : vector<8x128xf32> to vector<8x32xf32>
    %393 = vector.extract_strided_slice %391 {offsets = [0, 32], sizes = [8, 32], strides = [1, 1]} : vector<8x128xf32> to vector<8x32xf32>
    %394 = vector.extract_strided_slice %391 {offsets = [0, 64], sizes = [8, 32], strides = [1, 1]} : vector<8x128xf32> to vector<8x32xf32>
    %395 = vector.extract_strided_slice %387 {offsets = [0, 96], sizes = [8, 32], strides = [1, 1]} : vector<8x128xf32> to vector<8x32xf32>
    %396 = arith.mulf %393, %378 : vector<8x32xf32>
    %397 = arith.mulf %392, %395 : vector<8x32xf32>
    %398 = arith.addf %396, %397 : vector<8x32xf32>
    %399 = math.tanh %398 : vector<8x32xf32>
    %400 = arith.mulf %394, %399 : vector<8x32xf32>
    %401 = arith.truncf %400 : vector<8x32xf32> to vector<8x32xbf16>
    %c24_105 = arith.constant 24 : index
    %c0_106 = arith.constant 0 : index
    %402 = vector.load %arg12[%c24_105, %c0_106] : memref<64x64xbf16, #tpu.memory_space<vmem>>, vector<8x32xbf16>
    tpu.vector_store %arg12[%c24_105, %c0_106], %401 {strides = array<i32>} : memref<64x64xbf16, #tpu.memory_space<vmem>>, vector<8x32xbf16>,
    %403 = vector.extract_strided_slice %323 {offsets = [32, 0], sizes = [8, 128], strides = [1, 1]} : vector<64x256xf32> to vector<8x128xf32>
    %404 = arith.truncf %400 : vector<8x32xf32> to vector<8x32xbf16>
    %cst_107 = arith.constant dense<0.000000e+00> : vector<8x128xf32>
    %405 = tpu.matmul %404, %324, %cst_107 {dimension_numbers = #tpu.dot_dimension_numbers<[1], [0], [0], [1], [0, 0, 1, 1], [], []>} : vector<8x32xbf16>, vector<32x128xbf16>, vector<8x128xf32> -> vector<8x128xf32>
    %406 = arith.addf %403, %405 : vector<8x128xf32>
    %407 = math.tanh %406 : vector<8x128xf32>
    %cst_108 = arith.constant 5.000000e-01 : f32
    %408 = vector.broadcast %cst_108 : f32 to vector<8x128xf32>
    %409 = arith.mulf %408, %407 : vector<8x128xf32>
    %cst_109 = arith.constant 5.000000e-01 : f32
    %410 = vector.broadcast %cst_109 : f32 to vector<8x128xf32>
    %411 = arith.addf %409, %410 : vector<8x128xf32>
    %412 = vector.extract_strided_slice %411 {offsets = [0, 0], sizes = [8, 32], strides = [1, 1]} : vector<8x128xf32> to vector<8x32xf32>
    %413 = vector.extract_strided_slice %411 {offsets = [0, 32], sizes = [8, 32], strides = [1, 1]} : vector<8x128xf32> to vector<8x32xf32>
    %414 = vector.extract_strided_slice %411 {offsets = [0, 64], sizes = [8, 32], strides = [1, 1]} : vector<8x128xf32> to vector<8x32xf32>
    %415 = vector.extract_strided_slice %407 {offsets = [0, 96], sizes = [8, 32], strides = [1, 1]} : vector<8x128xf32> to vector<8x32xf32>
    %416 = arith.mulf %413, %398 : vector<8x32xf32>
    %417 = arith.mulf %412, %415 : vector<8x32xf32>
    %418 = arith.addf %416, %417 : vector<8x32xf32>
    %419 = math.tanh %418 : vector<8x32xf32>
    %420 = arith.mulf %414, %419 : vector<8x32xf32>
    %421 = arith.truncf %420 : vector<8x32xf32> to vector<8x32xbf16>
    %c32_110 = arith.constant 32 : index
    %c0_111 = arith.constant 0 : index
    %422 = vector.load %arg12[%c32_110, %c0_111] : memref<64x64xbf16, #tpu.memory_space<vmem>>, vector<8x32xbf16>
    tpu.vector_store %arg12[%c32_110, %c0_111], %421 {strides = array<i32>} : memref<64x64xbf16, #tpu.memory_space<vmem>>, vector<8x32xbf16>,
    %423 = vector.extract_strided_slice %323 {offsets = [40, 0], sizes = [8, 128], strides = [1, 1]} : vector<64x256xf32> to vector<8x128xf32>
    %424 = arith.truncf %420 : vector<8x32xf32> to vector<8x32xbf16>
    %cst_112 = arith.constant dense<0.000000e+00> : vector<8x128xf32>
    %425 = tpu.matmul %424, %324, %cst_112 {dimension_numbers = #tpu.dot_dimension_numbers<[1], [0], [0], [1], [0, 0, 1, 1], [], []>} : vector<8x32xbf16>, vector<32x128xbf16>, vector<8x128xf32> -> vector<8x128xf32>
    %426 = arith.addf %423, %425 : vector<8x128xf32>
    %427 = math.tanh %426 : vector<8x128xf32>
    %cst_113 = arith.constant 5.000000e-01 : f32
    %428 = vector.broadcast %cst_113 : f32 to vector<8x128xf32>
    %429 = arith.mulf %428, %427 : vector<8x128xf32>
    %cst_114 = arith.constant 5.000000e-01 : f32
    %430 = vector.broadcast %cst_114 : f32 to vector<8x128xf32>
    %431 = arith.addf %429, %430 : vector<8x128xf32>
    %432 = vector.extract_strided_slice %431 {offsets = [0, 0], sizes = [8, 32], strides = [1, 1]} : vector<8x128xf32> to vector<8x32xf32>
    %433 = vector.extract_strided_slice %431 {offsets = [0, 32], sizes = [8, 32], strides = [1, 1]} : vector<8x128xf32> to vector<8x32xf32>
    %434 = vector.extract_strided_slice %431 {offsets = [0, 64], sizes = [8, 32], strides = [1, 1]} : vector<8x128xf32> to vector<8x32xf32>
    %435 = vector.extract_strided_slice %427 {offsets = [0, 96], sizes = [8, 32], strides = [1, 1]} : vector<8x128xf32> to vector<8x32xf32>
    %436 = arith.mulf %433, %418 : vector<8x32xf32>
    %437 = arith.mulf %432, %435 : vector<8x32xf32>
    %438 = arith.addf %436, %437 : vector<8x32xf32>
    %439 = math.tanh %438 : vector<8x32xf32>
    %440 = arith.mulf %434, %439 : vector<8x32xf32>
    %441 = arith.truncf %440 : vector<8x32xf32> to vector<8x32xbf16>
    %c40_115 = arith.constant 40 : index
    %c0_116 = arith.constant 0 : index
    %442 = vector.load %arg12[%c40_115, %c0_116] : memref<64x64xbf16, #tpu.memory_space<vmem>>, vector<8x32xbf16>
    tpu.vector_store %arg12[%c40_115, %c0_116], %441 {strides = array<i32>} : memref<64x64xbf16, #tpu.memory_space<vmem>>, vector<8x32xbf16>,
    %443 = vector.extract_strided_slice %323 {offsets = [48, 0], sizes = [8, 128], strides = [1, 1]} : vector<64x256xf32> to vector<8x128xf32>
    %444 = arith.truncf %440 : vector<8x32xf32> to vector<8x32xbf16>
    %cst_117 = arith.constant dense<0.000000e+00> : vector<8x128xf32>
    %445 = tpu.matmul %444, %324, %cst_117 {dimension_numbers = #tpu.dot_dimension_numbers<[1], [0], [0], [1], [0, 0, 1, 1], [], []>} : vector<8x32xbf16>, vector<32x128xbf16>, vector<8x128xf32> -> vector<8x128xf32>
    %446 = arith.addf %443, %445 : vector<8x128xf32>
    %447 = math.tanh %446 : vector<8x128xf32>
    %cst_118 = arith.constant 5.000000e-01 : f32
    %448 = vector.broadcast %cst_118 : f32 to vector<8x128xf32>
    %449 = arith.mulf %448, %447 : vector<8x128xf32>
    %cst_119 = arith.constant 5.000000e-01 : f32
    %450 = vector.broadcast %cst_119 : f32 to vector<8x128xf32>
    %451 = arith.addf %449, %450 : vector<8x128xf32>
    %452 = vector.extract_strided_slice %451 {offsets = [0, 0], sizes = [8, 32], strides = [1, 1]} : vector<8x128xf32> to vector<8x32xf32>
    %453 = vector.extract_strided_slice %451 {offsets = [0, 32], sizes = [8, 32], strides = [1, 1]} : vector<8x128xf32> to vector<8x32xf32>
    %454 = vector.extract_strided_slice %451 {offsets = [0, 64], sizes = [8, 32], strides = [1, 1]} : vector<8x128xf32> to vector<8x32xf32>
    %455 = vector.extract_strided_slice %447 {offsets = [0, 96], sizes = [8, 32], strides = [1, 1]} : vector<8x128xf32> to vector<8x32xf32>
    %456 = arith.mulf %453, %438 : vector<8x32xf32>
    %457 = arith.mulf %452, %455 : vector<8x32xf32>
    %458 = arith.addf %456, %457 : vector<8x32xf32>
    %459 = math.tanh %458 : vector<8x32xf32>
    %460 = arith.mulf %454, %459 : vector<8x32xf32>
    %461 = arith.truncf %460 : vector<8x32xf32> to vector<8x32xbf16>
    %c48_120 = arith.constant 48 : index
    %c0_121 = arith.constant 0 : index
    %462 = vector.load %arg12[%c48_120, %c0_121] : memref<64x64xbf16, #tpu.memory_space<vmem>>, vector<8x32xbf16>
    tpu.vector_store %arg12[%c48_120, %c0_121], %461 {strides = array<i32>} : memref<64x64xbf16, #tpu.memory_space<vmem>>, vector<8x32xbf16>,
    %463 = vector.extract_strided_slice %323 {offsets = [56, 0], sizes = [8, 128], strides = [1, 1]} : vector<64x256xf32> to vector<8x128xf32>
    %464 = arith.truncf %460 : vector<8x32xf32> to vector<8x32xbf16>
    %cst_122 = arith.constant dense<0.000000e+00> : vector<8x128xf32>
    %465 = tpu.matmul %464, %324, %cst_122 {dimension_numbers = #tpu.dot_dimension_numbers<[1], [0], [0], [1], [0, 0, 1, 1], [], []>} : vector<8x32xbf16>, vector<32x128xbf16>, vector<8x128xf32> -> vector<8x128xf32>
    %466 = arith.addf %463, %465 : vector<8x128xf32>
    %467 = math.tanh %466 : vector<8x128xf32>
    %cst_123 = arith.constant 5.000000e-01 : f32
    %468 = vector.broadcast %cst_123 : f32 to vector<8x128xf32>
    %469 = arith.mulf %468, %467 : vector<8x128xf32>
    %cst_124 = arith.constant 5.000000e-01 : f32
    %470 = vector.broadcast %cst_124 : f32 to vector<8x128xf32>
    %471 = arith.addf %469, %470 : vector<8x128xf32>
    %472 = vector.extract_strided_slice %471 {offsets = [0, 0], sizes = [8, 32], strides = [1, 1]} : vector<8x128xf32> to vector<8x32xf32>
    %473 = vector.extract_strided_slice %471 {offsets = [0, 32], sizes = [8, 32], strides = [1, 1]} : vector<8x128xf32> to vector<8x32xf32>
    %474 = vector.extract_strided_slice %471 {offsets = [0, 64], sizes = [8, 32], strides = [1, 1]} : vector<8x128xf32> to vector<8x32xf32>
    %475 = vector.extract_strided_slice %467 {offsets = [0, 96], sizes = [8, 32], strides = [1, 1]} : vector<8x128xf32> to vector<8x32xf32>
    %476 = arith.mulf %473, %458 : vector<8x32xf32>
    %477 = arith.mulf %472, %475 : vector<8x32xf32>
    %478 = arith.addf %476, %477 : vector<8x32xf32>
    %479 = math.tanh %478 : vector<8x32xf32>
    %480 = arith.mulf %474, %479 : vector<8x32xf32>
    %481 = arith.truncf %480 : vector<8x32xf32> to vector<8x32xbf16>
    %c56_125 = arith.constant 56 : index
    %c0_126 = arith.constant 0 : index
    %482 = vector.load %arg12[%c56_125, %c0_126] : memref<64x64xbf16, #tpu.memory_space<vmem>>, vector<8x32xbf16>
    tpu.vector_store %arg12[%c56_125, %c0_126], %481 {strides = array<i32>} : memref<64x64xbf16, #tpu.memory_space<vmem>>, vector<8x32xbf16>,
    %c0_127 = arith.constant 0 : index
    %c0_128 = arith.constant 0 : index
    %483 = vector.load %arg6[%c0_127, %c0_128] : memref<32x128xbf16, #tpu.memory_space<vmem>>, vector<32x128xbf16>
    %cst_129 = arith.constant 0.000000e+00 : f32
    %484 = vector.broadcast %cst_129 : f32 to vector<8x32xf32>
    %485 = vector.extract_strided_slice %323 {offsets = [56, 128], sizes = [8, 128], strides = [1, 1]} : vector<64x256xf32> to vector<8x128xf32>
    %486 = math.tanh %485 : vector<8x128xf32>
    %cst_130 = arith.constant 5.000000e-01 : f32
    %487 = vector.broadcast %cst_130 : f32 to vector<8x128xf32>
    %488 = arith.mulf %487, %486 : vector<8x128xf32>
    %cst_131 = arith.constant 5.000000e-01 : f32
    %489 = vector.broadcast %cst_131 : f32 to vector<8x128xf32>
    %490 = arith.addf %488, %489 : vector<8x128xf32>
    %491 = vector.extract_strided_slice %490 {offsets = [0, 0], sizes = [8, 32], strides = [1, 1]} : vector<8x128xf32> to vector<8x32xf32>
    %492 = vector.extract_strided_slice %490 {offsets = [0, 32], sizes = [8, 32], strides = [1, 1]} : vector<8x128xf32> to vector<8x32xf32>
    %493 = vector.extract_strided_slice %490 {offsets = [0, 64], sizes = [8, 32], strides = [1, 1]} : vector<8x128xf32> to vector<8x32xf32>
    %494 = vector.extract_strided_slice %486 {offsets = [0, 96], sizes = [8, 32], strides = [1, 1]} : vector<8x128xf32> to vector<8x32xf32>
    %495 = arith.mulf %492, %484 : vector<8x32xf32>
    %496 = arith.mulf %491, %494 : vector<8x32xf32>
    %497 = arith.addf %495, %496 : vector<8x32xf32>
    %498 = math.tanh %497 : vector<8x32xf32>
    %499 = arith.mulf %493, %498 : vector<8x32xf32>
    %500 = arith.truncf %499 : vector<8x32xf32> to vector<8x32xbf16>
    %c56_132 = arith.constant 56 : index
    %c32_133 = arith.constant 32 : index
    %501 = vector.load %arg12[%c56_132, %c32_133] : memref<64x64xbf16, #tpu.memory_space<vmem>>, vector<8x32xbf16>
    tpu.vector_store %arg12[%c56_132, %c32_133], %500 {strides = array<i32>} : memref<64x64xbf16, #tpu.memory_space<vmem>>, vector<8x32xbf16>,
    %502 = vector.extract_strided_slice %323 {offsets = [48, 128], sizes = [8, 128], strides = [1, 1]} : vector<64x256xf32> to vector<8x128xf32>
    %503 = arith.truncf %499 : vector<8x32xf32> to vector<8x32xbf16>
    %cst_134 = arith.constant dense<0.000000e+00> : vector<8x128xf32>
    %504 = tpu.matmul %503, %483, %cst_134 {dimension_numbers = #tpu.dot_dimension_numbers<[1], [0], [0], [1], [0, 0, 1, 1], [], []>} : vector<8x32xbf16>, vector<32x128xbf16>, vector<8x128xf32> -> vector<8x128xf32>
    %505 = arith.addf %502, %504 : vector<8x128xf32>
    %506 = math.tanh %505 : vector<8x128xf32>
    %cst_135 = arith.constant 5.000000e-01 : f32
    %507 = vector.broadcast %cst_135 : f32 to vector<8x128xf32>
    %508 = arith.mulf %507, %506 : vector<8x128xf32>
    %cst_136 = arith.constant 5.000000e-01 : f32
    %509 = vector.broadcast %cst_136 : f32 to vector<8x128xf32>
    %510 = arith.addf %508, %509 : vector<8x128xf32>
    %511 = vector.extract_strided_slice %510 {offsets = [0, 0], sizes = [8, 32], strides = [1, 1]} : vector<8x128xf32> to vector<8x32xf32>
    %512 = vector.extract_strided_slice %510 {offsets = [0, 32], sizes = [8, 32], strides = [1, 1]} : vector<8x128xf32> to vector<8x32xf32>
    %513 = vector.extract_strided_slice %510 {offsets = [0, 64], sizes = [8, 32], strides = [1, 1]} : vector<8x128xf32> to vector<8x32xf32>
    %514 = vector.extract_strided_slice %506 {offsets = [0, 96], sizes = [8, 32], strides = [1, 1]} : vector<8x128xf32> to vector<8x32xf32>
    %515 = arith.mulf %512, %497 : vector<8x32xf32>
    %516 = arith.mulf %511, %514 : vector<8x32xf32>
    %517 = arith.addf %515, %516 : vector<8x32xf32>
    %518 = math.tanh %517 : vector<8x32xf32>
    %519 = arith.mulf %513, %518 : vector<8x32xf32>
    %520 = arith.truncf %519 : vector<8x32xf32> to vector<8x32xbf16>
    %c48_137 = arith.constant 48 : index
    %c32_138 = arith.constant 32 : index
    %521 = vector.load %arg12[%c48_137, %c32_138] : memref<64x64xbf16, #tpu.memory_space<vmem>>, vector<8x32xbf16>
    tpu.vector_store %arg12[%c48_137, %c32_138], %520 {strides = array<i32>} : memref<64x64xbf16, #tpu.memory_space<vmem>>, vector<8x32xbf16>,
    %522 = vector.extract_strided_slice %323 {offsets = [40, 128], sizes = [8, 128], strides = [1, 1]} : vector<64x256xf32> to vector<8x128xf32>
    %523 = arith.truncf %519 : vector<8x32xf32> to vector<8x32xbf16>
    %cst_139 = arith.constant dense<0.000000e+00> : vector<8x128xf32>
    %524 = tpu.matmul %523, %483, %cst_139 {dimension_numbers = #tpu.dot_dimension_numbers<[1], [0], [0], [1], [0, 0, 1, 1], [], []>} : vector<8x32xbf16>, vector<32x128xbf16>, vector<8x128xf32> -> vector<8x128xf32>
    %525 = arith.addf %522, %524 : vector<8x128xf32>
    %526 = math.tanh %525 : vector<8x128xf32>
    %cst_140 = arith.constant 5.000000e-01 : f32
    %527 = vector.broadcast %cst_140 : f32 to vector<8x128xf32>
    %528 = arith.mulf %527, %526 : vector<8x128xf32>
    %cst_141 = arith.constant 5.000000e-01 : f32
    %529 = vector.broadcast %cst_141 : f32 to vector<8x128xf32>
    %530 = arith.addf %528, %529 : vector<8x128xf32>
    %531 = vector.extract_strided_slice %530 {offsets = [0, 0], sizes = [8, 32], strides = [1, 1]} : vector<8x128xf32> to vector<8x32xf32>
    %532 = vector.extract_strided_slice %530 {offsets = [0, 32], sizes = [8, 32], strides = [1, 1]} : vector<8x128xf32> to vector<8x32xf32>
    %533 = vector.extract_strided_slice %530 {offsets = [0, 64], sizes = [8, 32], strides = [1, 1]} : vector<8x128xf32> to vector<8x32xf32>
    %534 = vector.extract_strided_slice %526 {offsets = [0, 96], sizes = [8, 32], strides = [1, 1]} : vector<8x128xf32> to vector<8x32xf32>
    %535 = arith.mulf %532, %517 : vector<8x32xf32>
    %536 = arith.mulf %531, %534 : vector<8x32xf32>
    %537 = arith.addf %535, %536 : vector<8x32xf32>
    %538 = math.tanh %537 : vector<8x32xf32>
    %539 = arith.mulf %533, %538 : vector<8x32xf32>
    %540 = arith.truncf %539 : vector<8x32xf32> to vector<8x32xbf16>
    %c40_142 = arith.constant 40 : index
    %c32_143 = arith.constant 32 : index
    %541 = vector.load %arg12[%c40_142, %c32_143] : memref<64x64xbf16, #tpu.memory_space<vmem>>, vector<8x32xbf16>
    tpu.vector_store %arg12[%c40_142, %c32_143], %540 {strides = array<i32>} : memref<64x64xbf16, #tpu.memory_space<vmem>>, vector<8x32xbf16>,
    %542 = vector.extract_strided_slice %323 {offsets = [32, 128], sizes = [8, 128], strides = [1, 1]} : vector<64x256xf32> to vector<8x128xf32>
    %543 = arith.truncf %539 : vector<8x32xf32> to vector<8x32xbf16>
    %cst_144 = arith.constant dense<0.000000e+00> : vector<8x128xf32>
    %544 = tpu.matmul %543, %483, %cst_144 {dimension_numbers = #tpu.dot_dimension_numbers<[1], [0], [0], [1], [0, 0, 1, 1], [], []>} : vector<8x32xbf16>, vector<32x128xbf16>, vector<8x128xf32> -> vector<8x128xf32>
    %545 = arith.addf %542, %544 : vector<8x128xf32>
    %546 = math.tanh %545 : vector<8x128xf32>
    %cst_145 = arith.constant 5.000000e-01 : f32
    %547 = vector.broadcast %cst_145 : f32 to vector<8x128xf32>
    %548 = arith.mulf %547, %546 : vector<8x128xf32>
    %cst_146 = arith.constant 5.000000e-01 : f32
    %549 = vector.broadcast %cst_146 : f32 to vector<8x128xf32>
    %550 = arith.addf %548, %549 : vector<8x128xf32>
    %551 = vector.extract_strided_slice %550 {offsets = [0, 0], sizes = [8, 32], strides = [1, 1]} : vector<8x128xf32> to vector<8x32xf32>
    %552 = vector.extract_strided_slice %550 {offsets = [0, 32], sizes = [8, 32], strides = [1, 1]} : vector<8x128xf32> to vector<8x32xf32>
    %553 = vector.extract_strided_slice %550 {offsets = [0, 64], sizes = [8, 32], strides = [1, 1]} : vector<8x128xf32> to vector<8x32xf32>
    %554 = vector.extract_strided_slice %546 {offsets = [0, 96], sizes = [8, 32], strides = [1, 1]} : vector<8x128xf32> to vector<8x32xf32>
    %555 = arith.mulf %552, %537 : vector<8x32xf32>
    %556 = arith.mulf %551, %554 : vector<8x32xf32>
    %557 = arith.addf %555, %556 : vector<8x32xf32>
    %558 = math.tanh %557 : vector<8x32xf32>
    %559 = arith.mulf %553, %558 : vector<8x32xf32>
    %560 = arith.truncf %559 : vector<8x32xf32> to vector<8x32xbf16>
    %c32_147 = arith.constant 32 : index
    %c32_148 = arith.constant 32 : index
    %561 = vector.load %arg12[%c32_147, %c32_148] : memref<64x64xbf16, #tpu.memory_space<vmem>>, vector<8x32xbf16>
    tpu.vector_store %arg12[%c32_147, %c32_148], %560 {strides = array<i32>} : memref<64x64xbf16, #tpu.memory_space<vmem>>, vector<8x32xbf16>,
    %562 = vector.extract_strided_slice %323 {offsets = [24, 128], sizes = [8, 128], strides = [1, 1]} : vector<64x256xf32> to vector<8x128xf32>
    %563 = arith.truncf %559 : vector<8x32xf32> to vector<8x32xbf16>
    %cst_149 = arith.constant dense<0.000000e+00> : vector<8x128xf32>
    %564 = tpu.matmul %563, %483, %cst_149 {dimension_numbers = #tpu.dot_dimension_numbers<[1], [0], [0], [1], [0, 0, 1, 1], [], []>} : vector<8x32xbf16>, vector<32x128xbf16>, vector<8x128xf32> -> vector<8x128xf32>
    %565 = arith.addf %562, %564 : vector<8x128xf32>
    %566 = math.tanh %565 : vector<8x128xf32>
    %cst_150 = arith.constant 5.000000e-01 : f32
    %567 = vector.broadcast %cst_150 : f32 to vector<8x128xf32>
    %568 = arith.mulf %567, %566 : vector<8x128xf32>
    %cst_151 = arith.constant 5.000000e-01 : f32
    %569 = vector.broadcast %cst_151 : f32 to vector<8x128xf32>
    %570 = arith.addf %568, %569 : vector<8x128xf32>
    %571 = vector.extract_strided_slice %570 {offsets = [0, 0], sizes = [8, 32], strides = [1, 1]} : vector<8x128xf32> to vector<8x32xf32>
    %572 = vector.extract_strided_slice %570 {offsets = [0, 32], sizes = [8, 32], strides = [1, 1]} : vector<8x128xf32> to vector<8x32xf32>
    %573 = vector.extract_strided_slice %570 {offsets = [0, 64], sizes = [8, 32], strides = [1, 1]} : vector<8x128xf32> to vector<8x32xf32>
    %574 = vector.extract_strided_slice %566 {offsets = [0, 96], sizes = [8, 32], strides = [1, 1]} : vector<8x128xf32> to vector<8x32xf32>
    %575 = arith.mulf %572, %557 : vector<8x32xf32>
    %576 = arith.mulf %571, %574 : vector<8x32xf32>
    %577 = arith.addf %575, %576 : vector<8x32xf32>
    %578 = math.tanh %577 : vector<8x32xf32>
    %579 = arith.mulf %573, %578 : vector<8x32xf32>
    %580 = arith.truncf %579 : vector<8x32xf32> to vector<8x32xbf16>
    %c24_152 = arith.constant 24 : index
    %c32_153 = arith.constant 32 : index
    %581 = vector.load %arg12[%c24_152, %c32_153] : memref<64x64xbf16, #tpu.memory_space<vmem>>, vector<8x32xbf16>
    tpu.vector_store %arg12[%c24_152, %c32_153], %580 {strides = array<i32>} : memref<64x64xbf16, #tpu.memory_space<vmem>>, vector<8x32xbf16>,
    %582 = vector.extract_strided_slice %323 {offsets = [16, 128], sizes = [8, 128], strides = [1, 1]} : vector<64x256xf32> to vector<8x128xf32>
    %583 = arith.truncf %579 : vector<8x32xf32> to vector<8x32xbf16>
    %cst_154 = arith.constant dense<0.000000e+00> : vector<8x128xf32>
    %584 = tpu.matmul %583, %483, %cst_154 {dimension_numbers = #tpu.dot_dimension_numbers<[1], [0], [0], [1], [0, 0, 1, 1], [], []>} : vector<8x32xbf16>, vector<32x128xbf16>, vector<8x128xf32> -> vector<8x128xf32>
    %585 = arith.addf %582, %584 : vector<8x128xf32>
    %586 = math.tanh %585 : vector<8x128xf32>
    %cst_155 = arith.constant 5.000000e-01 : f32
    %587 = vector.broadcast %cst_155 : f32 to vector<8x128xf32>
    %588 = arith.mulf %587, %586 : vector<8x128xf32>
    %cst_156 = arith.constant 5.000000e-01 : f32
    %589 = vector.broadcast %cst_156 : f32 to vector<8x128xf32>
    %590 = arith.addf %588, %589 : vector<8x128xf32>
    %591 = vector.extract_strided_slice %590 {offsets = [0, 0], sizes = [8, 32], strides = [1, 1]} : vector<8x128xf32> to vector<8x32xf32>
    %592 = vector.extract_strided_slice %590 {offsets = [0, 32], sizes = [8, 32], strides = [1, 1]} : vector<8x128xf32> to vector<8x32xf32>
    %593 = vector.extract_strided_slice %590 {offsets = [0, 64], sizes = [8, 32], strides = [1, 1]} : vector<8x128xf32> to vector<8x32xf32>
    %594 = vector.extract_strided_slice %586 {offsets = [0, 96], sizes = [8, 32], strides = [1, 1]} : vector<8x128xf32> to vector<8x32xf32>
    %595 = arith.mulf %592, %577 : vector<8x32xf32>
    %596 = arith.mulf %591, %594 : vector<8x32xf32>
    %597 = arith.addf %595, %596 : vector<8x32xf32>
    %598 = math.tanh %597 : vector<8x32xf32>
    %599 = arith.mulf %593, %598 : vector<8x32xf32>
    %600 = arith.truncf %599 : vector<8x32xf32> to vector<8x32xbf16>
    %c16_157 = arith.constant 16 : index
    %c32_158 = arith.constant 32 : index
    %601 = vector.load %arg12[%c16_157, %c32_158] : memref<64x64xbf16, #tpu.memory_space<vmem>>, vector<8x32xbf16>
    tpu.vector_store %arg12[%c16_157, %c32_158], %600 {strides = array<i32>} : memref<64x64xbf16, #tpu.memory_space<vmem>>, vector<8x32xbf16>,
    %602 = vector.extract_strided_slice %323 {offsets = [8, 128], sizes = [8, 128], strides = [1, 1]} : vector<64x256xf32> to vector<8x128xf32>
    %603 = arith.truncf %599 : vector<8x32xf32> to vector<8x32xbf16>
    %cst_159 = arith.constant dense<0.000000e+00> : vector<8x128xf32>
    %604 = tpu.matmul %603, %483, %cst_159 {dimension_numbers = #tpu.dot_dimension_numbers<[1], [0], [0], [1], [0, 0, 1, 1], [], []>} : vector<8x32xbf16>, vector<32x128xbf16>, vector<8x128xf32> -> vector<8x128xf32>
    %605 = arith.addf %602, %604 : vector<8x128xf32>
    %606 = math.tanh %605 : vector<8x128xf32>
    %cst_160 = arith.constant 5.000000e-01 : f32
    %607 = vector.broadcast %cst_160 : f32 to vector<8x128xf32>
    %608 = arith.mulf %607, %606 : vector<8x128xf32>
    %cst_161 = arith.constant 5.000000e-01 : f32
    %609 = vector.broadcast %cst_161 : f32 to vector<8x128xf32>
    %610 = arith.addf %608, %609 : vector<8x128xf32>
    %611 = vector.extract_strided_slice %610 {offsets = [0, 0], sizes = [8, 32], strides = [1, 1]} : vector<8x128xf32> to vector<8x32xf32>
    %612 = vector.extract_strided_slice %610 {offsets = [0, 32], sizes = [8, 32], strides = [1, 1]} : vector<8x128xf32> to vector<8x32xf32>
    %613 = vector.extract_strided_slice %610 {offsets = [0, 64], sizes = [8, 32], strides = [1, 1]} : vector<8x128xf32> to vector<8x32xf32>
    %614 = vector.extract_strided_slice %606 {offsets = [0, 96], sizes = [8, 32], strides = [1, 1]} : vector<8x128xf32> to vector<8x32xf32>
    %615 = arith.mulf %612, %597 : vector<8x32xf32>
    %616 = arith.mulf %611, %614 : vector<8x32xf32>
    %617 = arith.addf %615, %616 : vector<8x32xf32>
    %618 = math.tanh %617 : vector<8x32xf32>
    %619 = arith.mulf %613, %618 : vector<8x32xf32>
    %620 = arith.truncf %619 : vector<8x32xf32> to vector<8x32xbf16>
    %c8_162 = arith.constant 8 : index
    %c32_163 = arith.constant 32 : index
    %621 = vector.load %arg12[%c8_162, %c32_163] : memref<64x64xbf16, #tpu.memory_space<vmem>>, vector<8x32xbf16>
    tpu.vector_store %arg12[%c8_162, %c32_163], %620 {strides = array<i32>} : memref<64x64xbf16, #tpu.memory_space<vmem>>, vector<8x32xbf16>,
    %622 = vector.extract_strided_slice %323 {offsets = [0, 128], sizes = [8, 128], strides = [1, 1]} : vector<64x256xf32> to vector<8x128xf32>
    %623 = arith.truncf %619 : vector<8x32xf32> to vector<8x32xbf16>
    %cst_164 = arith.constant dense<0.000000e+00> : vector<8x128xf32>
    %624 = tpu.matmul %623, %483, %cst_164 {dimension_numbers = #tpu.dot_dimension_numbers<[1], [0], [0], [1], [0, 0, 1, 1], [], []>} : vector<8x32xbf16>, vector<32x128xbf16>, vector<8x128xf32> -> vector<8x128xf32>
    %625 = arith.addf %622, %624 : vector<8x128xf32>
    %626 = math.tanh %625 : vector<8x128xf32>
    %cst_165 = arith.constant 5.000000e-01 : f32
    %627 = vector.broadcast %cst_165 : f32 to vector<8x128xf32>
    %628 = arith.mulf %627, %626 : vector<8x128xf32>
    %cst_166 = arith.constant 5.000000e-01 : f32
    %629 = vector.broadcast %cst_166 : f32 to vector<8x128xf32>
    %630 = arith.addf %628, %629 : vector<8x128xf32>
    %631 = vector.extract_strided_slice %630 {offsets = [0, 0], sizes = [8, 32], strides = [1, 1]} : vector<8x128xf32> to vector<8x32xf32>
    %632 = vector.extract_strided_slice %630 {offsets = [0, 32], sizes = [8, 32], strides = [1, 1]} : vector<8x128xf32> to vector<8x32xf32>
    %633 = vector.extract_strided_slice %630 {offsets = [0, 64], sizes = [8, 32], strides = [1, 1]} : vector<8x128xf32> to vector<8x32xf32>
    %634 = vector.extract_strided_slice %626 {offsets = [0, 96], sizes = [8, 32], strides = [1, 1]} : vector<8x128xf32> to vector<8x32xf32>
    %635 = arith.mulf %632, %617 : vector<8x32xf32>
    %636 = arith.mulf %631, %634 : vector<8x32xf32>
    %637 = arith.addf %635, %636 : vector<8x32xf32>
    %638 = math.tanh %637 : vector<8x32xf32>
    %639 = arith.mulf %633, %638 : vector<8x32xf32>
    %640 = arith.truncf %639 : vector<8x32xf32> to vector<8x32xbf16>
    %c0_167 = arith.constant 0 : index
    %c32_168 = arith.constant 32 : index
    %641 = vector.load %arg12[%c0_167, %c32_168] : memref<64x64xbf16, #tpu.memory_space<vmem>>, vector<8x32xbf16>
    tpu.vector_store %arg12[%c0_167, %c32_168], %640 {strides = array<i32>} : memref<64x64xbf16, #tpu.memory_space<vmem>>, vector<8x32xbf16>,
    %c0_169 = arith.constant 0 : index
    %c0_170 = arith.constant 0 : index
    %642 = vector.load %arg12[%c0_169, %c0_170] : memref<64x64xbf16, #tpu.memory_space<vmem>>, vector<64x64xbf16>
    %c0_171 = arith.constant 0 : index
    %c0_172 = arith.constant 0 : index
    %643 = vector.load %arg7[%c0_171, %c0_172] : memref<64x256xbf16, #tpu.memory_space<vmem>>, vector<64x256xbf16>
    %cst_173 = arith.constant dense<0.000000e+00> : vector<64x256xf32>
    %644 = tpu.matmul %642, %643, %cst_173 {dimension_numbers = #tpu.dot_dimension_numbers<[1], [0], [0], [1], [0, 0, 1, 1], [], []>} : vector<64x64xbf16>, vector<64x256xbf16>, vector<64x256xf32> -> vector<64x256xf32>
    %c0_174 = arith.constant 0 : index
    %c0_175 = arith.constant 0 : index
    %645 = vector.load %arg8[%c0_174, %c0_175] : memref<32x128xbf16, #tpu.memory_space<vmem>>, vector<32x128xbf16>
    %cst_176 = arith.constant 0.000000e+00 : f32
    %646 = vector.broadcast %cst_176 : f32 to vector<8x32xf32>
    %647 = vector.extract_strided_slice %644 {offsets = [0, 0], sizes = [8, 128], strides = [1, 1]} : vector<64x256xf32> to vector<8x128xf32>
    %648 = math.tanh %647 : vector<8x128xf32>
    %cst_177 = arith.constant 5.000000e-01 : f32
    %649 = vector.broadcast %cst_177 : f32 to vector<8x128xf32>
    %650 = arith.mulf %649, %648 : vector<8x128xf32>
    %cst_178 = arith.constant 5.000000e-01 : f32
    %651 = vector.broadcast %cst_178 : f32 to vector<8x128xf32>
    %652 = arith.addf %650, %651 : vector<8x128xf32>
    %653 = vector.extract_strided_slice %652 {offsets = [0, 0], sizes = [8, 32], strides = [1, 1]} : vector<8x128xf32> to vector<8x32xf32>
    %654 = vector.extract_strided_slice %652 {offsets = [0, 32], sizes = [8, 32], strides = [1, 1]} : vector<8x128xf32> to vector<8x32xf32>
    %655 = vector.extract_strided_slice %652 {offsets = [0, 64], sizes = [8, 32], strides = [1, 1]} : vector<8x128xf32> to vector<8x32xf32>
    %656 = vector.extract_strided_slice %648 {offsets = [0, 96], sizes = [8, 32], strides = [1, 1]} : vector<8x128xf32> to vector<8x32xf32>
    %657 = arith.mulf %654, %646 : vector<8x32xf32>
    %658 = arith.mulf %653, %656 : vector<8x32xf32>
    %659 = arith.addf %657, %658 : vector<8x32xf32>
    %660 = math.tanh %659 : vector<8x32xf32>
    %661 = arith.mulf %655, %660 : vector<8x32xf32>
    %662 = vector.extract_strided_slice %644 {offsets = [8, 0], sizes = [8, 128], strides = [1, 1]} : vector<64x256xf32> to vector<8x128xf32>
    %663 = arith.truncf %661 : vector<8x32xf32> to vector<8x32xbf16>
    %cst_179 = arith.constant dense<0.000000e+00> : vector<8x128xf32>
    %664 = tpu.matmul %663, %645, %cst_179 {dimension_numbers = #tpu.dot_dimension_numbers<[1], [0], [0], [1], [0, 0, 1, 1], [], []>} : vector<8x32xbf16>, vector<32x128xbf16>, vector<8x128xf32> -> vector<8x128xf32>
    %665 = arith.addf %662, %664 : vector<8x128xf32>
    %666 = math.tanh %665 : vector<8x128xf32>
    %cst_180 = arith.constant 5.000000e-01 : f32
    %667 = vector.broadcast %cst_180 : f32 to vector<8x128xf32>
    %668 = arith.mulf %667, %666 : vector<8x128xf32>
    %cst_181 = arith.constant 5.000000e-01 : f32
    %669 = vector.broadcast %cst_181 : f32 to vector<8x128xf32>
    %670 = arith.addf %668, %669 : vector<8x128xf32>
    %671 = vector.extract_strided_slice %670 {offsets = [0, 0], sizes = [8, 32], strides = [1, 1]} : vector<8x128xf32> to vector<8x32xf32>
    %672 = vector.extract_strided_slice %670 {offsets = [0, 32], sizes = [8, 32], strides = [1, 1]} : vector<8x128xf32> to vector<8x32xf32>
    %673 = vector.extract_strided_slice %670 {offsets = [0, 64], sizes = [8, 32], strides = [1, 1]} : vector<8x128xf32> to vector<8x32xf32>
    %674 = vector.extract_strided_slice %666 {offsets = [0, 96], sizes = [8, 32], strides = [1, 1]} : vector<8x128xf32> to vector<8x32xf32>
    %675 = arith.mulf %672, %659 : vector<8x32xf32>
    %676 = arith.mulf %671, %674 : vector<8x32xf32>
    %677 = arith.addf %675, %676 : vector<8x32xf32>
    %678 = math.tanh %677 : vector<8x32xf32>
    %679 = arith.mulf %673, %678 : vector<8x32xf32>
    %680 = vector.extract_strided_slice %644 {offsets = [16, 0], sizes = [8, 128], strides = [1, 1]} : vector<64x256xf32> to vector<8x128xf32>
    %681 = arith.truncf %679 : vector<8x32xf32> to vector<8x32xbf16>
    %cst_182 = arith.constant dense<0.000000e+00> : vector<8x128xf32>
    %682 = tpu.matmul %681, %645, %cst_182 {dimension_numbers = #tpu.dot_dimension_numbers<[1], [0], [0], [1], [0, 0, 1, 1], [], []>} : vector<8x32xbf16>, vector<32x128xbf16>, vector<8x128xf32> -> vector<8x128xf32>
    %683 = arith.addf %680, %682 : vector<8x128xf32>
    %684 = math.tanh %683 : vector<8x128xf32>
    %cst_183 = arith.constant 5.000000e-01 : f32
    %685 = vector.broadcast %cst_183 : f32 to vector<8x128xf32>
    %686 = arith.mulf %685, %684 : vector<8x128xf32>
    %cst_184 = arith.constant 5.000000e-01 : f32
    %687 = vector.broadcast %cst_184 : f32 to vector<8x128xf32>
    %688 = arith.addf %686, %687 : vector<8x128xf32>
    %689 = vector.extract_strided_slice %688 {offsets = [0, 0], sizes = [8, 32], strides = [1, 1]} : vector<8x128xf32> to vector<8x32xf32>
    %690 = vector.extract_strided_slice %688 {offsets = [0, 32], sizes = [8, 32], strides = [1, 1]} : vector<8x128xf32> to vector<8x32xf32>
    %691 = vector.extract_strided_slice %688 {offsets = [0, 64], sizes = [8, 32], strides = [1, 1]} : vector<8x128xf32> to vector<8x32xf32>
    %692 = vector.extract_strided_slice %684 {offsets = [0, 96], sizes = [8, 32], strides = [1, 1]} : vector<8x128xf32> to vector<8x32xf32>
    %693 = arith.mulf %690, %677 : vector<8x32xf32>
    %694 = arith.mulf %689, %692 : vector<8x32xf32>
    %695 = arith.addf %693, %694 : vector<8x32xf32>
    %696 = math.tanh %695 : vector<8x32xf32>
    %697 = arith.mulf %691, %696 : vector<8x32xf32>
    %698 = vector.extract_strided_slice %644 {offsets = [24, 0], sizes = [8, 128], strides = [1, 1]} : vector<64x256xf32> to vector<8x128xf32>
    %699 = arith.truncf %697 : vector<8x32xf32> to vector<8x32xbf16>
    %cst_185 = arith.constant dense<0.000000e+00> : vector<8x128xf32>
    %700 = tpu.matmul %699, %645, %cst_185 {dimension_numbers = #tpu.dot_dimension_numbers<[1], [0], [0], [1], [0, 0, 1, 1], [], []>} : vector<8x32xbf16>, vector<32x128xbf16>, vector<8x128xf32> -> vector<8x128xf32>
    %701 = arith.addf %698, %700 : vector<8x128xf32>
    %702 = math.tanh %701 : vector<8x128xf32>
    %cst_186 = arith.constant 5.000000e-01 : f32
    %703 = vector.broadcast %cst_186 : f32 to vector<8x128xf32>
    %704 = arith.mulf %703, %702 : vector<8x128xf32>
    %cst_187 = arith.constant 5.000000e-01 : f32
    %705 = vector.broadcast %cst_187 : f32 to vector<8x128xf32>
    %706 = arith.addf %704, %705 : vector<8x128xf32>
    %707 = vector.extract_strided_slice %706 {offsets = [0, 0], sizes = [8, 32], strides = [1, 1]} : vector<8x128xf32> to vector<8x32xf32>
    %708 = vector.extract_strided_slice %706 {offsets = [0, 32], sizes = [8, 32], strides = [1, 1]} : vector<8x128xf32> to vector<8x32xf32>
    %709 = vector.extract_strided_slice %706 {offsets = [0, 64], sizes = [8, 32], strides = [1, 1]} : vector<8x128xf32> to vector<8x32xf32>
    %710 = vector.extract_strided_slice %702 {offsets = [0, 96], sizes = [8, 32], strides = [1, 1]} : vector<8x128xf32> to vector<8x32xf32>
    %711 = arith.mulf %708, %695 : vector<8x32xf32>
    %712 = arith.mulf %707, %710 : vector<8x32xf32>
    %713 = arith.addf %711, %712 : vector<8x32xf32>
    %714 = math.tanh %713 : vector<8x32xf32>
    %715 = arith.mulf %709, %714 : vector<8x32xf32>
    %716 = vector.extract_strided_slice %644 {offsets = [32, 0], sizes = [8, 128], strides = [1, 1]} : vector<64x256xf32> to vector<8x128xf32>
    %717 = arith.truncf %715 : vector<8x32xf32> to vector<8x32xbf16>
    %cst_188 = arith.constant dense<0.000000e+00> : vector<8x128xf32>
    %718 = tpu.matmul %717, %645, %cst_188 {dimension_numbers = #tpu.dot_dimension_numbers<[1], [0], [0], [1], [0, 0, 1, 1], [], []>} : vector<8x32xbf16>, vector<32x128xbf16>, vector<8x128xf32> -> vector<8x128xf32>
    %719 = arith.addf %716, %718 : vector<8x128xf32>
    %720 = math.tanh %719 : vector<8x128xf32>
    %cst_189 = arith.constant 5.000000e-01 : f32
    %721 = vector.broadcast %cst_189 : f32 to vector<8x128xf32>
    %722 = arith.mulf %721, %720 : vector<8x128xf32>
    %cst_190 = arith.constant 5.000000e-01 : f32
    %723 = vector.broadcast %cst_190 : f32 to vector<8x128xf32>
    %724 = arith.addf %722, %723 : vector<8x128xf32>
    %725 = vector.extract_strided_slice %724 {offsets = [0, 0], sizes = [8, 32], strides = [1, 1]} : vector<8x128xf32> to vector<8x32xf32>
    %726 = vector.extract_strided_slice %724 {offsets = [0, 32], sizes = [8, 32], strides = [1, 1]} : vector<8x128xf32> to vector<8x32xf32>
    %727 = vector.extract_strided_slice %724 {offsets = [0, 64], sizes = [8, 32], strides = [1, 1]} : vector<8x128xf32> to vector<8x32xf32>
    %728 = vector.extract_strided_slice %720 {offsets = [0, 96], sizes = [8, 32], strides = [1, 1]} : vector<8x128xf32> to vector<8x32xf32>
    %729 = arith.mulf %726, %713 : vector<8x32xf32>
    %730 = arith.mulf %725, %728 : vector<8x32xf32>
    %731 = arith.addf %729, %730 : vector<8x32xf32>
    %732 = math.tanh %731 : vector<8x32xf32>
    %733 = arith.mulf %727, %732 : vector<8x32xf32>
    %734 = vector.extract_strided_slice %644 {offsets = [40, 0], sizes = [8, 128], strides = [1, 1]} : vector<64x256xf32> to vector<8x128xf32>
    %735 = arith.truncf %733 : vector<8x32xf32> to vector<8x32xbf16>
    %cst_191 = arith.constant dense<0.000000e+00> : vector<8x128xf32>
    %736 = tpu.matmul %735, %645, %cst_191 {dimension_numbers = #tpu.dot_dimension_numbers<[1], [0], [0], [1], [0, 0, 1, 1], [], []>} : vector<8x32xbf16>, vector<32x128xbf16>, vector<8x128xf32> -> vector<8x128xf32>
    %737 = arith.addf %734, %736 : vector<8x128xf32>
    %738 = math.tanh %737 : vector<8x128xf32>
    %cst_192 = arith.constant 5.000000e-01 : f32
    %739 = vector.broadcast %cst_192 : f32 to vector<8x128xf32>
    %740 = arith.mulf %739, %738 : vector<8x128xf32>
    %cst_193 = arith.constant 5.000000e-01 : f32
    %741 = vector.broadcast %cst_193 : f32 to vector<8x128xf32>
    %742 = arith.addf %740, %741 : vector<8x128xf32>
    %743 = vector.extract_strided_slice %742 {offsets = [0, 0], sizes = [8, 32], strides = [1, 1]} : vector<8x128xf32> to vector<8x32xf32>
    %744 = vector.extract_strided_slice %742 {offsets = [0, 32], sizes = [8, 32], strides = [1, 1]} : vector<8x128xf32> to vector<8x32xf32>
    %745 = vector.extract_strided_slice %742 {offsets = [0, 64], sizes = [8, 32], strides = [1, 1]} : vector<8x128xf32> to vector<8x32xf32>
    %746 = vector.extract_strided_slice %738 {offsets = [0, 96], sizes = [8, 32], strides = [1, 1]} : vector<8x128xf32> to vector<8x32xf32>
    %747 = arith.mulf %744, %731 : vector<8x32xf32>
    %748 = arith.mulf %743, %746 : vector<8x32xf32>
    %749 = arith.addf %747, %748 : vector<8x32xf32>
    %750 = math.tanh %749 : vector<8x32xf32>
    %751 = arith.mulf %745, %750 : vector<8x32xf32>
    %752 = vector.extract_strided_slice %644 {offsets = [48, 0], sizes = [8, 128], strides = [1, 1]} : vector<64x256xf32> to vector<8x128xf32>
    %753 = arith.truncf %751 : vector<8x32xf32> to vector<8x32xbf16>
    %cst_194 = arith.constant dense<0.000000e+00> : vector<8x128xf32>
    %754 = tpu.matmul %753, %645, %cst_194 {dimension_numbers = #tpu.dot_dimension_numbers<[1], [0], [0], [1], [0, 0, 1, 1], [], []>} : vector<8x32xbf16>, vector<32x128xbf16>, vector<8x128xf32> -> vector<8x128xf32>
    %755 = arith.addf %752, %754 : vector<8x128xf32>
    %756 = math.tanh %755 : vector<8x128xf32>
    %cst_195 = arith.constant 5.000000e-01 : f32
    %757 = vector.broadcast %cst_195 : f32 to vector<8x128xf32>
    %758 = arith.mulf %757, %756 : vector<8x128xf32>
    %cst_196 = arith.constant 5.000000e-01 : f32
    %759 = vector.broadcast %cst_196 : f32 to vector<8x128xf32>
    %760 = arith.addf %758, %759 : vector<8x128xf32>
    %761 = vector.extract_strided_slice %760 {offsets = [0, 0], sizes = [8, 32], strides = [1, 1]} : vector<8x128xf32> to vector<8x32xf32>
    %762 = vector.extract_strided_slice %760 {offsets = [0, 32], sizes = [8, 32], strides = [1, 1]} : vector<8x128xf32> to vector<8x32xf32>
    %763 = vector.extract_strided_slice %760 {offsets = [0, 64], sizes = [8, 32], strides = [1, 1]} : vector<8x128xf32> to vector<8x32xf32>
    %764 = vector.extract_strided_slice %756 {offsets = [0, 96], sizes = [8, 32], strides = [1, 1]} : vector<8x128xf32> to vector<8x32xf32>
    %765 = arith.mulf %762, %749 : vector<8x32xf32>
    %766 = arith.mulf %761, %764 : vector<8x32xf32>
    %767 = arith.addf %765, %766 : vector<8x32xf32>
    %768 = math.tanh %767 : vector<8x32xf32>
    %769 = arith.mulf %763, %768 : vector<8x32xf32>
    %770 = vector.extract_strided_slice %644 {offsets = [56, 0], sizes = [8, 128], strides = [1, 1]} : vector<64x256xf32> to vector<8x128xf32>
    %771 = arith.truncf %769 : vector<8x32xf32> to vector<8x32xbf16>
    %cst_197 = arith.constant dense<0.000000e+00> : vector<8x128xf32>
    %772 = tpu.matmul %771, %645, %cst_197 {dimension_numbers = #tpu.dot_dimension_numbers<[1], [0], [0], [1], [0, 0, 1, 1], [], []>} : vector<8x32xbf16>, vector<32x128xbf16>, vector<8x128xf32> -> vector<8x128xf32>
    %773 = arith.addf %770, %772 : vector<8x128xf32>
    %774 = math.tanh %773 : vector<8x128xf32>
    %cst_198 = arith.constant 5.000000e-01 : f32
    %775 = vector.broadcast %cst_198 : f32 to vector<8x128xf32>
    %776 = arith.mulf %775, %774 : vector<8x128xf32>
    %cst_199 = arith.constant 5.000000e-01 : f32
    %777 = vector.broadcast %cst_199 : f32 to vector<8x128xf32>
    %778 = arith.addf %776, %777 : vector<8x128xf32>
    %779 = vector.extract_strided_slice %778 {offsets = [0, 0], sizes = [8, 32], strides = [1, 1]} : vector<8x128xf32> to vector<8x32xf32>
    %780 = vector.extract_strided_slice %778 {offsets = [0, 32], sizes = [8, 32], strides = [1, 1]} : vector<8x128xf32> to vector<8x32xf32>
    %781 = vector.extract_strided_slice %778 {offsets = [0, 64], sizes = [8, 32], strides = [1, 1]} : vector<8x128xf32> to vector<8x32xf32>
    %782 = vector.extract_strided_slice %774 {offsets = [0, 96], sizes = [8, 32], strides = [1, 1]} : vector<8x128xf32> to vector<8x32xf32>
    %783 = arith.mulf %780, %767 : vector<8x32xf32>
    %784 = arith.mulf %779, %782 : vector<8x32xf32>
    %785 = arith.addf %783, %784 : vector<8x32xf32>
    %786 = math.tanh %785 : vector<8x32xf32>
    %787 = arith.mulf %781, %786 : vector<8x32xf32>
    %cst_200 = arith.constant 0.000000e+00 : f32
    %788 = vector.broadcast %cst_200 : f32 to vector<8x32xf32>
    %789 = vector.extract_strided_slice %644 {offsets = [56, 128], sizes = [8, 128], strides = [1, 1]} : vector<64x256xf32> to vector<8x128xf32>
    %790 = math.tanh %789 : vector<8x128xf32>
    %cst_201 = arith.constant 5.000000e-01 : f32
    %791 = vector.broadcast %cst_201 : f32 to vector<8x128xf32>
    %792 = arith.mulf %791, %790 : vector<8x128xf32>
    %cst_202 = arith.constant 5.000000e-01 : f32
    %793 = vector.broadcast %cst_202 : f32 to vector<8x128xf32>
    %794 = arith.addf %792, %793 : vector<8x128xf32>
    %795 = vector.extract_strided_slice %794 {offsets = [0, 0], sizes = [8, 32], strides = [1, 1]} : vector<8x128xf32> to vector<8x32xf32>
    %796 = vector.extract_strided_slice %794 {offsets = [0, 32], sizes = [8, 32], strides = [1, 1]} : vector<8x128xf32> to vector<8x32xf32>
    %797 = vector.extract_strided_slice %794 {offsets = [0, 64], sizes = [8, 32], strides = [1, 1]} : vector<8x128xf32> to vector<8x32xf32>
    %798 = vector.extract_strided_slice %790 {offsets = [0, 96], sizes = [8, 32], strides = [1, 1]} : vector<8x128xf32> to vector<8x32xf32>
    %799 = arith.mulf %796, %788 : vector<8x32xf32>
    %800 = arith.mulf %795, %798 : vector<8x32xf32>
    %801 = arith.addf %799, %800 : vector<8x32xf32>
    %802 = math.tanh %801 : vector<8x32xf32>
    %803 = arith.mulf %797, %802 : vector<8x32xf32>
    %804 = arith.truncf %787 : vector<8x32xf32> to vector<8x32xbf16>
    %c0_203 = arith.constant 0 : index
    %c0_204 = arith.constant 0 : index
    %805 = vector.load %arg10[%c0_203, %c0_204] : memref<64x8xbf16, #tpu.memory_space<vmem>>, vector<32x8xbf16>
    %cst_205 = arith.constant dense<0.000000e+00> : vector<8x8xf32>
    %806 = tpu.matmul %804, %805, %cst_205 {dimension_numbers = #tpu.dot_dimension_numbers<[1], [0], [0], [1], [0, 0, 1, 1], [], []>} : vector<8x32xbf16>, vector<32x8xbf16>, vector<8x8xf32> -> vector<8x8xf32>
    %807 = arith.truncf %803 : vector<8x32xf32> to vector<8x32xbf16>
    %c32_206 = arith.constant 32 : index
    %c0_207 = arith.constant 0 : index
    %808 = vector.load %arg10[%c32_206, %c0_207] : memref<64x8xbf16, #tpu.memory_space<vmem>>, vector<32x8xbf16>
    %cst_208 = arith.constant dense<0.000000e+00> : vector<8x8xf32>
    %809 = tpu.matmul %807, %808, %cst_208 {dimension_numbers = #tpu.dot_dimension_numbers<[1], [0], [0], [1], [0, 0, 1, 1], [], []>} : vector<8x32xbf16>, vector<32x8xbf16>, vector<8x8xf32> -> vector<8x8xf32>
    %810 = arith.addf %806, %809 : vector<8x8xf32>
    %c0_209 = arith.constant 0 : index
    %c0_210 = arith.constant 0 : index
    %811 = vector.load %arg11[%c0_209, %c0_210] : memref<8x8xf32, #tpu.memory_space<vmem>>, vector<8x8xf32>
    tpu.vector_store %arg11[%c0_209, %c0_210], %810 {strides = array<i32>} : memref<8x8xf32, #tpu.memory_space<vmem>>, vector<8x8xf32>,
    return
  }
}

</mosaic_0001>

<bundles_post_ra>
// kernel: doc_forward.1
= control target key start
LH: loop header
LB: loop body
LE: loop exit
PB: predicated region body
PF: predicated region fallthrough
CT: control target
= control target key end

     0   :  { %16 = vsyncpa [#allocation4], 0  ;;  %s5018_s0 = inlined_call_operand.vmem [shape: bf16[64,16], index: 0, kind: input, shape index: {}]   ;;  %s5019_s1 = inlined_call_operand.vmem [shape: bf16[16,256], index: 1, kind: input, shape index: {}]   ;;  %s5020_s2 = inlined_call_operand.vmem [shape: bf16[32,128], index: 2, kind: input, shape index: {}]   ;;  %s5021_s3 = inlined_call_operand.hbm [shape: bf16[32,128], index: 3, kind: input, shape index: {}]   ;;  %s5022_s4 = inlined_call_operand.vmem [shape: bf16[64,256], index: 4, kind: input, shape index: {}]   ;;  %s5023_s5 = inlined_call_operand.vmem [shape: bf16[32,128], index: 5, kind: input, shape index: {}]   ;;  %s5024_s6 = inlined_call_operand.hbm [shape: bf16[32,128], index: 6, kind: input, shape index: {}]   ;;  %s5025_s7 = inlined_call_operand.vmem [shape: bf16[64,256], index: 7, kind: input, shape index: {}]   ;;  %s5026_s8 = inlined_call_operand.vmem [shape: bf16[32,128], index: 8, kind: input, shape index: {}]   ;;  %s5027_s9 = inlined_call_operand.hbm [shape: bf16[32,128], index: 9, kind: input, shape index: {}]   ;;  %s5028_s10 = inlined_call_operand.vmem [shape: bf16[64,8], index: 10, kind: input, shape index: {}]   ;;  %s5029_s11 = inlined_call_operand.vmem [shape: f32[8,8], index: 11, kind: output, shape index: {}]  }
   0x1   :  { %17 = vsyncpa [#allocation6], 0  ;;  %s4114_s17 = smov [#allocation5]   ;;  %s4115_s19 = smov [#allocation3]  }
   0x2   :  { %s45_s18 = sshll.u32 %s4114_s17, 4  ;;  %s29_s20 = sshll.u32 %s4115_s19, 4  ;;  %s46_s18 = int_to_ptr.vmem [resolvable:$true] %s45_s18  ;;  %s4184_s20 = int_to_ptr.vmem [resolvable:$true] %s29_s20 }
   0x3   :  { %s4044_s23 = scalar_lea.hbm %s5024_s6, 256 }
   0x4   :  { %p4045_p0 = scmp.ne.s32.totalorder %s5024_s6, %s4044_s23  ;;  %p4048_p1 = scmp.lt.u32.totalorder %s4044_s23, %s5024_s6 }
   0x6   :  { %p4050_p2 = pnand %p4048_p1, %p4045_p0 }
   0x8   :  { %4053 = shalt.err (!%p4050_p2)
}
   0x9   :  { %s4054_s28 = scalar_lea.vmem %s46_s18, 256  ;;  %p4059_p4 = scmp.lt.s32.totalorder %s46_s18, %s46_s18 }
   0xa   :  { %p4055_p3 = scmp.ne.s32.totalorder %s46_s18, %s4054_s28  ;;  %p4060_p5 = scmp.lt.s32.totalorder %s4054_s28, %s4054_s28 }
   0xc   :  { %p4061_p6 = por %p4060_p5, %p4059_p4 }
   0xe   :  { %p4062_p7 = pnand %p4061_p6, %p4055_p3 }
  0x10   :  { %4065 = shalt.err (!%p4062_p7)
}
  0x11   :  { %s4116_s29 = smov 64   ;;  %s4117_s30 = smov 4  }
  0x12   :  { %51 = dma.hbm_to_vmem [thread:$0]  %s5024_s6, 256, %s46_s18, [#allocation6], %s4116_s29, %s4116_s29, %s4117_s30  }
  0x13   :  { %s4066_s16 = scalar_lea.hbm %s5021_s3, 256 }
  0x14   :  { %p4067_p8 = scmp.ne.s32.totalorder %s5021_s3, %s4066_s16  ;;  %p4070_p9 = scmp.lt.u32.totalorder %s4066_s16, %s5021_s3 }
  0x16   :  { %p4072_p10 = pnand %p4070_p9, %p4067_p8 }
  0x18   :  { %4075 = shalt.err (!%p4072_p10)
}
  0x19   :  { %s4076_s23 = scalar_lea.vmem %s4184_s20, 256  ;;  %p4081_p12 = scmp.lt.s32.totalorder %s4184_s20, %s4184_s20 }
  0x1a   :  { %p4077_p11 = scmp.ne.s32.totalorder %s4184_s20, %s4076_s23  ;;  %p4082_p13 = scmp.lt.s32.totalorder %s4076_s23, %s4076_s23 }
  0x1c   :  { %p4083_p0 = por %p4082_p13, %p4081_p12 }
  0x1e   :  { %p4084_p1 = pnand %p4083_p0, %p4077_p11 }
  0x20   :  { %4087 = shalt.err (!%p4084_p1)
}
  0x21   :  { %35 = dma.hbm_to_vmem [thread:$0]  %s5021_s3, 256, %s4184_s20, [#allocation4], %s4116_s29, %s4116_s29, %s4117_s30  }
  0x22   :  { %s4118_s24 = smov [#allocation7]   ;;  %s4088_s28 = scalar_lea.hbm %s5027_s9, 256 }
  0x23   :  { %s61_s25 = sshll.u32 %s4118_s24, 4  ;;  %p4089_p2 = scmp.ne.s32.totalorder %s5027_s9, %s4088_s28  ;;  %s62_s25 = int_to_ptr.vmem [resolvable:$true] %s61_s25 }
  0x24   :  { %p4092_p3 = scmp.lt.u32.totalorder %s4088_s28, %s5027_s9 }
  0x26   :  { %p4094_p4 = pnand %p4092_p3, %p4089_p2 }
  0x28   :  { %4097 = shalt.err (!%p4094_p4)
}
  0x29   :  { %s4098_s16 = scalar_lea.vmem %s62_s25, 256  ;;  %p4103_p6 = scmp.lt.s32.totalorder %s62_s25, %s62_s25 }
  0x2a   :  { %p4099_p5 = scmp.ne.s32.totalorder %s62_s25, %s4098_s16  ;;  %p4104_p7 = scmp.lt.s32.totalorder %s4098_s16, %s4098_s16 }
  0x2c   :  { %p4105_p8 = por %p4104_p7, %p4103_p6 }
  0x2e   :  { %p4106_p9 = pnand %p4105_p8, %p4099_p5 }
  0x30   :  { %4109 = shalt.err (!%p4106_p9)
}
  0x31   :  { %67 = dma.hbm_to_vmem [thread:$0]  %s5027_s9, 256, %s62_s25, [#allocation6], %s4116_s29, %s4116_s29, %s4117_s30  }
  0x32   :  { %4110 = dma.done.wait [#allocation4], 256  }
  0x33   :  { %4111 = vsyncadd [#allocation4], 4294967040 }
  0x34   :  { %4112 = dma.done.wait [#allocation6], 512  }
  0x35   :  { %4113 = vsyncadd [#allocation6], 4294966784  ;;  %v4119_v0 = vmov 0   ;;  %v3835_v1 = vld [vmem:[%s5019_s1 + $0x4] ss:$8 sps:$4 sm:$0xff]   ;;  %vm120_vm0 = vcmask 130048  }
  0x36   :  { %165 = vmatprep.mubr.bf16.mxu0 %v4119_v0  ;;  %v3837_v2 = vld [vmem:[%s5019_s1] ss:$8 sps:$4 sm:$0xff]   ;;  %133 = vmatprep.subr.bf16.mxu0 %v3835_v1  ;;  %s4120_s1 = smov 32   ;;  %v4121_v18 = vmov 0.0   ;;  %vm4122_vm1 = vmmov 0   ;;  %v3841_v20 = vld [vmem:[%s5018_s0 + $0x10] sm:$0xff]  }
  0x37   :  { %v3838_v3 = vld [vmem:[%s5018_s0] sm:$0xff]   ;;  %134 = vmatpush1.bf16.msra.mxu0 %v3837_v2  ;;  %v3840_v17 = vld [vmem:[%s5018_s0 + $0x8] sm:$0xff]   ;;  %3533 = vmatprep.subr.bf16.mxu1 %v4121_v18  ;;  %v3843_v22 = vld [vmem:[%s5018_s0 + $0x18] sm:$0xff]   ;;  %vm235_vm2 = vcmask 257024   ;;  %vm249_vm3 = vcmask 261120   ;;  %vm320_vm4 = vcmask 261124  }
  0x38   :  { %v4262_v16 = vld [vmem:[%s5020_s2] sm:$0xff]   ;;  %3525 = vmatprep.subr.bf16.mxu0 %v4121_v18  ;;  %v4273_v19 = vld [vmem:[%s5020_s2 + $0x8] sm:$0xff]   ;;  %3537 = vmatprep.mubr.msk.bf16.mxu1 %vm4122_vm1, %v4121_v18  ;;  %s4123_s19 = smov 96   ;;  %vm781_vm5 = vcmask 523524   ;;  %vm866_vm6 = vcmask 519424   ;;  %vm1355_vm7 = vcmask 523264  }
  0x39   :  { %3534 = vmatpush3.bf16.msra.mxu1 %v4262_v16  ;;  %vm3321_vm8 = vcmask 64512  }
  0x3a   :  { %3335 = vmatmul.mubr.msk.bf16.vlgmr.msra.gmra.mrb[0].mxu0 %vm120_vm0, %v3838_v3  ;;  %3535 = vmatprep.subr.bf16.mxu1 %v4121_v18 }
  0x3b   :  { %175 = vmatprep.mubr.bf16.mxu0 %v4119_v0  ;;  %3526 = vmatpush3.bf16.msra.mxu0 %v4262_v16 }
  0x3c   :  { %3527 = vmatprep.subr.bf16.mxu0 %v4121_v18 }
  0x3d   :  { %3536 = vmatpush3.bf16.msra.mxu1 %v4273_v19 }
  0x3e   :  { %3541 = vmatprep.subr.bf16.mxu1 %v4121_v18 }
  0x3f   :  { %3528 = vmatpush3.bf16.msra.mxu0 %v4273_v19 }
  0x40   :  { %3557 = vmatprep.subr.bf16.mxu0 %v4121_v18 }
  0x42   :  { %3336 = vmatmul.mubr.msk.bf16.gmra.mrb[4].mxu0 %vm120_vm0, %v3840_v17 }
  0x43   :  { %185 = vmatprep.mubr.bf16.mxu0 %v4119_v0 }
  0x4a   :  { %3337 = vmatmul.mubr.msk.bf16.gmra.mrb[8].mxu0 %vm120_vm0, %v3841_v20 }
  0x4b   :  { %195 = vmatprep.mubr.bf16.mxu0 %v4119_v0 }
  0x52   :  { %3338 = vmatmul.mubr.msk.bf16.gmra.mrb[12].mxu0 %vm120_vm0, %v3843_v22 }
  0x53   :  { %3529 = vmatprep.mubr.msk.bf16.mxu0 %vm4122_vm1, %v4121_v18 }
 0x10d   :  { %v167_v4 = vpop.f32.mrb[0].mxu0 }
 0x10e   :  { %3880 = vtanh.f32 %v167_v4  ;;  %v4248_v5 = vpop.f32.mrb[1].mxu0 }
 0x10f   :  { %v4250_v6 = vpop.f32.mrb[2].mxu0 }
 0x110   :  { %v4252_v7 = vpop.f32.mrb[3].mxu0 }
 0x115   :  { %v177_v26 = vpop.f32.mrb[4].mxu0 }
 0x116   :  { %v4299_v27 = vpop.f32.mrb[5].mxu0 }
 0x117   :  { %v4301_v28 = vpop.f32.mrb[6].mxu0 }
 0x118   :  { %v3881_v8 = vpop.eup %3880  ;;  %v4303_v29 = vpop.f32.mrb[7].mxu0 }
 0x119   :  { %215 = vrot.lane.b32.xlu0 %v3881_v8, %s4120_s1  ;;  %v211_v9 = vmul.f32 0.5, %v3881_v8 }
 0x11b   :  { %v212_v10 = vadd.f32 0.5, %v211_v9 }
 0x11d   :  { %v213_v13 = vmul.f32 0.0, %v212_v10  ;;  %v4305_v30 = vpop.f32.mrb[8].mxu0 }
 0x11e   :  { %v4307_v31 = vpop.f32.mrb[9].mxu0 }
 0x11f   :  { %v4309_v32 = vpop.f32.mrb[10].mxu0 }
 0x120   :  { %v4311_v33 = vpop.f32.mrb[11].mxu0 }
 0x125   :  { %v4313_v34 = vpop.f32.mrb[12].mxu0 }
 0x126   :  { %v4315_v35 = vpop.f32.mrb[13].mxu0 }
 0x127   :  { %v4317_v36 = vpop.f32.mrb[14].mxu0 }
 0x128   :  { %v4319_v37 = vpop.f32.mrb[15].mxu0 }
 0x18b   :  { %v216_v11 = vpop.permute.xlu0 %215 }
 0x18c   :  { %v218_v12 = vmul.f32 %v216_v11, %v212_v10 }
 0x18e   :  { %220 = vrot.lane.b32.xlu0 %v218_v12, %s4120_s1 }
 0x200   :  { %v221_v14 = vpop.permute.xlu0 %220 }
 0x201   :  { %v4256_v15 = vadd.f32 %v221_v14, %v213_v13 }
 0x203   :  { %3882 = vtanh.f32 %v4256_v15 }
 0x20d   :  { %v3883_v21 = vpop.eup %3882 }
 0x20e   :  { %226 = vrot.lane.b32.xlu1 %v3883_v21, %s4120_s1 }
 0x280   :  { %v227_v23 = vpop.permute.xlu1 %226 }
 0x281   :  { %v229_v24 = vmul.f32 %v227_v23, %v212_v10 }
 0x283   :  { %v230_v25 = vpack.c.bf16 %v229_v24, %v229_v24 }
 0x285   :  { %232 = vrot.lane.b32.xlu1 %v230_v25, %s4116_s29 }
 0x2f7   :  { %v233_v38 = vpop.permute.xlu1 %232 }
 0x2f8   :  { %236 = vst.msk [vmem:[#allocation2] sm:$0xf] %vm235_vm2, %v233_v38  ;;  %3530 = vmatmul.mubr.msk.bf16.vlgmr.msra.gmra.mrb[16].mxu0 %vm249_vm3, %v233_v38 }
 0x2f9   :  { %3558 = vmatpush3.bf16.msra.mxu0 %v4262_v16  ;;  %3561 = vmatprep.mubr.msk.bf16.mxu0 %vm4122_vm1, %v4121_v18 }
 0x2fa   :  { %3559 = vmatprep.subr.bf16.mxu0 %v4121_v18 }
 0x2fd   :  { %3560 = vmatpush3.bf16.msra.mxu0 %v4273_v19 }
 0x2fe   :  { %3573 = vmatprep.subr.bf16.mxu0 %v4121_v18 }
 0x3cb   :  { %v287_v39 = vpop.f32.mrb[16].mxu0 }
 0x3cc   :  { %v293_v40 = vadd.f32 %v287_v39, %v4250_v6  ;;  %v3531_v41 = vpop.f32.mrb[17].mxu0 }
 0x3cd   :  { %v290_v42 = vpop.f32.mrb[18].mxu0 }
 0x3ce   :  { %3884 = vtanh.f32 %v293_v40  ;;  %v3532_v43 = vpop.f32.mrb[19].mxu0 }
 0x3d8   :  { %v3885_v44 = vpop.eup %3884 }
 0x3d9   :  { %299 = vrot.lane.b32.xlu0 %v3885_v44, %s4120_s1  ;;  %v295_v45 = vmul.f32 0.5, %v3885_v44 }
 0x3db   :  { %v296_v46 = vadd.f32 0.5, %v295_v45 }
 0x3dd   :  { %v297_v49 = vmul.f32 %v296_v46, %v4256_v15 }
 0x44b   :  { %v300_v47 = vpop.permute.xlu0 %299 }
 0x44c   :  { %v302_v48 = vmul.f32 %v300_v47, %v296_v46 }
 0x44e   :  { %304 = vrot.lane.b32.xlu1 %v302_v48, %s4120_s1 }
 0x4c0   :  { %v305_v50 = vpop.permute.xlu1 %304 }
 0x4c1   :  { %v307_v51 = vadd.f32 %v305_v50, %v297_v49 }
 0x4c3   :  { %3886 = vtanh.f32 %v307_v51 }
 0x4cd   :  { %v3887_v52 = vpop.eup %3886 }
 0x4ce   :  { %310 = vrot.lane.b32.xlu0 %v3887_v52, %s4120_s1 }
 0x540   :  { %v311_v53 = vpop.permute.xlu0 %310 }
 0x541   :  { %v313_v54 = vmul.f32 %v311_v53, %v296_v46 }
 0x543   :  { %v4334_v55 = vpack.c.bf16 %v313_v54, %v313_v54 }
 0x545   :  { %322 = vrot.lane.b32.xlu1 %v4334_v55, %s4116_s29 }
 0x5b7   :  { %v323_v56 = vpop.permute.xlu1 %322 }
 0x5b8   :  { %3538 = vmatmul.mubr.msk.bf16.vlgmr.msra.gmra.mrb[0].mxu1 %vm249_vm3, %v323_v56 }
 0x5b9   :  { %3542 = vmatpush3.bf16.msra.mxu1 %v4262_v16  ;;  %3545 = vmatprep.mubr.msk.bf16.mxu1 %vm4122_vm1, %v4121_v18 }
 0x5ba   :  { %3543 = vmatprep.subr.bf16.mxu1 %v4121_v18 }
 0x5bd   :  { %3544 = vmatpush3.bf16.msra.mxu1 %v4273_v19 }
 0x5be   :  { %3549 = vmatprep.subr.bf16.mxu1 %v4121_v18 }
 0x68b   :  { %v361_v57 = vpop.f32.mrb[0].mxu1 }
 0x68c   :  { %v367_v58 = vadd.f32 %v361_v57, %v177_v26  ;;  %v3539_v59 = vpop.f32.mrb[1].mxu1 }
 0x68d   :  { %v364_v60 = vpop.f32.mrb[2].mxu1 }
 0x68e   :  { %3888 = vtanh.f32 %v367_v58  ;;  %v3540_v61 = vpop.f32.mrb[3].mxu1 }
 0x698   :  { %v3889_v62 = vpop.eup %3888 }
 0x699   :  { %373 = vrot.lane.b32.xlu0 %v3889_v62, %s4120_s1  ;;  %v369_v63 = vmul.f32 0.5, %v3889_v62 }
 0x69b   :  { %v370_v1 = vadd.f32 0.5, %v369_v63 }
 0x69d   :  { %v371_v4 = vmul.f32 %v370_v1, %v307_v51 }
 0x70b   :  { %v374_v2 = vpop.permute.xlu0 %373 }
 0x70c   :  { %v376_v3 = vmul.f32 %v374_v2, %v370_v1 }
 0x70e   :  { %378 = vrot.lane.b32.xlu1 %v376_v3, %s4120_s1 }
 0x780   :  { %v379_v6 = vpop.permute.xlu1 %378 }
 0x781   :  { %v381_v8 = vadd.f32 %v379_v6, %v371_v4 }
 0x783   :  { %3890 = vtanh.f32 %v381_v8 }
 0x78d   :  { %v3891_v9 = vpop.eup %3890 }
 0x78e   :  { %384 = vrot.lane.b32.xlu0 %v3891_v9, %s4120_s1 }
 0x800   :  { %v385_v10 = vpop.permute.xlu0 %384 }
 0x801   :  { %v387_v11 = vmul.f32 %v385_v10, %v370_v1 }
 0x803   :  { %v388_v12 = vpack.c.bf16 %v387_v11, %v387_v11 }
 0x805   :  { %390 = vrot.lane.b32.xlu1 %v388_v12, %s4116_s29 }
 0x877   :  { %v391_v13 = vpop.permute.xlu1 %390 }
 0x878   :  { %393 = vst.msk [vmem:[#allocation2 + $0x8] sm:$0xf] %vm235_vm2, %v391_v13  ;;  %3546 = vmatmul.mubr.msk.bf16.vlgmr.msra.gmra.mrb[4].mxu1 %vm249_vm3, %v391_v13 }
 0x879   :  { %3550 = vmatpush3.bf16.msra.mxu1 %v4262_v16  ;;  %3553 = vmatprep.mubr.msk.bf16.mxu1 %vm4122_vm1, %v4121_v18 }
 0x87a   :  { %3551 = vmatprep.subr.bf16.mxu1 %v4121_v18 }
 0x87d   :  { %3552 = vmatpush3.bf16.msra.mxu1 %v4273_v19 }
 0x87e   :  { %3565 = vmatprep.subr.bf16.mxu1 %v4121_v18 }
 0x94b   :  { %v431_v14 = vpop.f32.mrb[4].mxu1 }
 0x94c   :  { %v437_v15 = vadd.f32 %v431_v14, %v4301_v28  ;;  %v3547_v17 = vpop.f32.mrb[5].mxu1 }
 0x94d   :  { %v434_v20 = vpop.f32.mrb[6].mxu1 }
 0x94e   :  { %3892 = vtanh.f32 %v437_v15  ;;  %v3548_v21 = vpop.f32.mrb[7].mxu1 }
 0x958   :  { %v3893_v22 = vpop.eup %3892 }
 0x959   :  { %443 = vrot.lane.b32.xlu0 %v3893_v22, %s4120_s1  ;;  %v439_v23 = vmul.f32 0.5, %v3893_v22 }
 0x95b   :  { %v440_v24 = vadd.f32 0.5, %v439_v23 }
 0x95d   :  { %v441_v38 = vmul.f32 %v440_v24, %v381_v8 }
 0x9cb   :  { %v444_v25 = vpop.permute.xlu0 %443 }
 0x9cc   :  { %v446_v26 = vmul.f32 %v444_v25, %v440_v24 }
 0x9ce   :  { %448 = vrot.lane.b32.xlu1 %v446_v26, %s4120_s1 }
 0xa40   :  { %v449_v39 = vpop.permute.xlu1 %448 }
 0xa41   :  { %v451_v40 = vadd.f32 %v449_v39, %v441_v38 }
 0xa43   :  { %3894 = vtanh.f32 %v451_v40 }
 0xa4d   :  { %v3895_v41 = vpop.eup %3894 }
 0xa4e   :  { %454 = vrot.lane.b32.xlu0 %v3895_v41, %s4120_s1  ;;  %v4404_v41 = vld [vmem:[#allocation3] sm:$0xff]  }
 0xac0   :  { %v455_v28 = vpop.permute.xlu0 %454 }
 0xac1   :  { %v457_v42 = vmul.f32 %v455_v28, %v440_v24 }
 0xac3   :  { %v4361_v43 = vpack.c.bf16 %v457_v42, %v457_v42  ;;  %v4408_v42 = vld [vmem:[#allocation3 + $0x8] sm:$0xff]  }
 0xac5   :  { %465 = vrot.lane.b32.xlu1 %v4361_v43, %s4116_s29 }
 0xb37   :  { %v466_v44 = vpop.permute.xlu1 %465 }
 0xb38   :  { %3554 = vmatmul.mubr.msk.bf16.vlgmr.msra.gmra.mrb[8].mxu1 %vm249_vm3, %v466_v44 }
 0xb39   :  { %3566 = vmatpush3.bf16.msra.mxu1 %v4262_v16  ;;  %3569 = vmatprep.mubr.msk.bf16.mxu1 %vm4122_vm1, %v4121_v18 }
 0xb3a   :  { %3567 = vmatprep.subr.bf16.mxu1 %v4121_v18 }
 0xb3d   :  { %3568 = vmatpush3.bf16.msra.mxu1 %v4273_v19 }
 0xb3e   :  { %3581 = vmatprep.subr.bf16.mxu1 %v4121_v18 }
 0xc0b   :  { %v504_v45 = vpop.f32.mrb[8].mxu1 }
 0xc0c   :  { %v510_v46 = vadd.f32 %v504_v45, %v4305_v30  ;;  %v3555_v47 = vpop.f32.mrb[9].mxu1 }
 0xc0d   :  { %v507_v48 = vpop.f32.mrb[10].mxu1 }
 0xc0e   :  { %3896 = vtanh.f32 %v510_v46  ;;  %v3556_v49 = vpop.f32.mrb[11].mxu1 }
 0xc18   :  { %v3897_v50 = vpop.eup %3896 }
 0xc19   :  { %516 = vrot.lane.b32.xlu0 %v3897_v50, %s4120_s1  ;;  %v512_v51 = vmul.f32 0.5, %v3897_v50 }
 0xc1b   :  { %v513_v52 = vadd.f32 0.5, %v512_v51 }
 0xc1d   :  { %v514_v56 = vmul.f32 %v513_v52, %v451_v40 }
 0xc8b   :  { %v517_v53 = vpop.permute.xlu0 %516 }
 0xc8c   :  { %v519_v54 = vmul.f32 %v517_v53, %v513_v52 }
 0xc8e   :  { %521 = vrot.lane.b32.xlu1 %v519_v54, %s4120_s1 }
 0xd00   :  { %v522_v57 = vpop.permute.xlu1 %521 }
 0xd01   :  { %v524_v58 = vadd.f32 %v522_v57, %v514_v56 }
 0xd03   :  { %3898 = vtanh.f32 %v524_v58 }
 0xd04   :  { %3900 = vtanh.f32 %v4319_v37 }
 0xd0d   :  { %v3899_v59 = vpop.eup %3898 }
 0xd0e   :  { %527 = vrot.lane.b32.xlu0 %v3899_v59, %s4120_s1  ;;  %v3901_v62 = vpop.eup %3900 }
 0xd0f   :  { %v756_v63 = vmul.f32 0.5, %v3901_v62 }
 0xd11   :  { %v757_v37 = vadd.f32 0.5, %v756_v63 }
 0xd13   :  { %v758_v4 = vmul.f32 0.0, %v757_v37 }
 0xd80   :  { %v528_v30 = vpop.permute.xlu0 %527 }
 0xd81   :  { %v530_v60 = vmul.f32 %v528_v30, %v513_v52 }
 0xd83   :  { %v531_v61 = vpack.c.bf16 %v530_v60, %v530_v60 }
 0xd85   :  { %533 = vrot.lane.b32.xlu1 %v531_v61, %s4116_s29 }
 0xd89   :  { %760 = vrot.lane.b32.xlu1 %v3901_v62, %s4120_s1 }
 0xdf7   :  { %v534_v1 = vpop.permute.xlu1 %533 }
 0xdf8   :  { %536 = vst.msk [vmem:[#allocation2 + $0x10] sm:$0xf] %vm235_vm2, %v534_v1  ;;  %3562 = vmatmul.mubr.msk.bf16.vlgmr.msra.gmra.mrb[20].mxu0 %vm249_vm3, %v534_v1 }
 0xdf9   :  { %3574 = vmatpush3.bf16.msra.mxu0 %v4262_v16  ;;  %3577 = vmatprep.mubr.msk.bf16.mxu0 %vm4122_vm1, %v4121_v18 }
 0xdfa   :  { %3575 = vmatprep.subr.bf16.mxu0 %v4121_v18 }
 0xdfb   :  { %v761_v2 = vpop.permute.xlu1 %760 }
 0xdfc   :  { %v763_v3 = vmul.f32 %v761_v2, %v757_v37 }
 0xdfd   :  { %3576 = vmatpush3.bf16.msra.mxu0 %v4273_v19 }
 0xdfe   :  { %765 = vrot.lane.b32.xlu1 %v763_v3, %s4120_s1  ;;  %3589 = vmatprep.subr.bf16.mxu0 %v4121_v18 }
 0xe70   :  { %v766_v6 = vpop.permute.xlu1 %765 }
 0xe71   :  { %v4388_v8 = vadd.f32 %v766_v6, %v758_v4 }
 0xe73   :  { %3902 = vtanh.f32 %v4388_v8 }
 0xe7d   :  { %v3903_v16 = vpop.eup %3902 }
 0xe7e   :  { %771 = vrot.lane.b32.xlu1 %v3903_v16, %s4120_s1 }
 0xecb   :  { %v574_v9 = vpop.f32.mrb[20].mxu0 }
 0xecc   :  { %v580_v10 = vadd.f32 %v574_v9, %v4309_v32  ;;  %v3563_v11 = vpop.f32.mrb[21].mxu0 }
 0xecd   :  { %v577_v12 = vpop.f32.mrb[22].mxu0 }
 0xece   :  { %3904 = vtanh.f32 %v580_v10  ;;  %v3564_v19 = vpop.f32.mrb[23].mxu0 }
 0xed8   :  { %v3905_v13 = vpop.eup %3904 }
 0xed9   :  { %586 = vrot.lane.b32.xlu0 %v3905_v13, %s4120_s1  ;;  %v582_v20 = vmul.f32 0.5, %v3905_v13 }
 0xedb   :  { %v583_v21 = vadd.f32 0.5, %v582_v20 }
 0xedd   :  { %v584_v32 = vmul.f32 %v583_v21, %v524_v58 }
 0xef0   :  { %v772_v14 = vpop.permute.xlu1 %771 }
 0xef1   :  { %v774_v15 = vmul.f32 %v772_v14, %v757_v37 }
 0xef3   :  { %v4394_v17 = vpack.c.bf16 %v774_v15, %v774_v15 }
 0xef5   :  { %783 = vrot.lane.b32.xlu1 %v4394_v17, %s4116_s29 }
 0xf4b   :  { %v587_v22 = vpop.permute.xlu0 %586 }
 0xf4c   :  { %v589_v23 = vmul.f32 %v587_v22, %v583_v21 }
 0xf4e   :  { %591 = vrot.lane.b32.xlu0 %v589_v23, %s4120_s1 }
 0xf67   :  { %v784_v44 = vpop.permute.xlu1 %783 }
 0xfc0   :  { %v592_v24 = vpop.permute.xlu0 %591 }
 0xfc1   :  { %v594_v25 = vadd.f32 %v592_v24, %v584_v32 }
 0xfc3   :  { %3906 = vtanh.f32 %v594_v25 }
 0xfcd   :  { %v3907_v26 = vpop.eup %3906 }
 0xfce   :  { %597 = vrot.lane.b32.xlu0 %v3907_v26, %s4120_s1 }
0x1040   :  { %v598_v38 = vpop.permute.xlu0 %597 }
0x1041   :  { %v600_v39 = vmul.f32 %v598_v38, %v583_v21 }
0x1043   :  { %v4400_v40 = vpack.c.bf16 %v600_v39, %v600_v39 }
0x1045   :  { %608 = vrot.lane.b32.xlu0 %v4400_v40, %s4116_s29 }
0x10b7   :  { %v609_v28 = vpop.permute.xlu0 %608 }
0x10b8   :  { %3570 = vmatmul.mubr.msk.bf16.vlgmr.msra.gmra.mrb[12].mxu1 %vm249_vm3, %v609_v28 }
0x10b9   :  { %3582 = vmatpush3.bf16.msra.mxu1 %v4404_v41  ;;  %3585 = vmatprep.mubr.msk.bf16.mxu1 %vm4122_vm1, %v4121_v18 }
0x10ba   :  { %3583 = vmatprep.subr.bf16.mxu1 %v4121_v18 }
0x10bd   :  { %3584 = vmatpush3.bf16.msra.mxu1 %v4408_v42 }
0x10be   :  { %3597 = vmatprep.subr.bf16.mxu1 %v4121_v18 }
0x10c0   :  { %3586 = vmatmul.mubr.msk.bf16.vlgmr.msra.gmra.mrb[16].mxu1 %vm249_vm3, %v784_v44 }
0x10c1   :  { %3598 = vmatpush3.bf16.msra.mxu1 %v4404_v41  ;;  %3601 = vmatprep.mubr.msk.bf16.mxu1 %vm4122_vm1, %v4121_v18 }
0x10c2   :  { %3599 = vmatprep.subr.bf16.mxu1 %v4121_v18 }
0x10c5   :  { %3600 = vmatpush3.bf16.msra.mxu1 %v4408_v42 }
0x10c6   :  { %3613 = vmatprep.subr.bf16.mxu1 %v4121_v18 }
0x118b   :  { %v647_v45 = vpop.f32.mrb[12].mxu1 }
0x118c   :  { %v653_v46 = vadd.f32 %v647_v45, %v4313_v34  ;;  %v3571_v47 = vpop.f32.mrb[13].mxu1 }
0x118d   :  { %v650_v48 = vpop.f32.mrb[14].mxu1 }
0x118e   :  { %3908 = vtanh.f32 %v653_v46  ;;  %v3572_v49 = vpop.f32.mrb[15].mxu1 }
0x1193   :  { %v834_v50 = vpop.f32.mrb[16].mxu1 }
0x1194   :  { %v840_v51 = vadd.f32 %v834_v50, %v4315_v35  ;;  %v3587_v52 = vpop.f32.mrb[17].mxu1 }
0x1195   :  { %v837_v53 = vpop.f32.mrb[18].mxu1 }
0x1196   :  { %3910 = vtanh.f32 %v840_v51  ;;  %v3588_v54 = vpop.f32.mrb[19].mxu1 }
0x1198   :  { %v3909_v56 = vpop.eup %3908 }
0x1199   :  { %659 = vrot.lane.b32.xlu0 %v3909_v56, %s4120_s1  ;;  %v655_v58 = vmul.f32 0.5, %v3909_v56 }
0x119b   :  { %v656_v59 = vadd.f32 0.5, %v655_v58 }
0x119d   :  { %v657_v63 = vmul.f32 %v656_v59, %v594_v25 }
0x11a0   :  { %v3911_v57 = vpop.eup %3910 }
0x11a1   :  { %846 = vrot.lane.b32.xlu1 %v3911_v57, %s4120_s1  ;;  %v842_v60 = vmul.f32 0.5, %v3911_v57 }
0x11a3   :  { %v843_v61 = vadd.f32 0.5, %v842_v60 }
0x11a5   :  { %v844_v2 = vmul.f32 %v843_v61, %v4388_v8 }
0x120b   :  { %v660_v34 = vpop.permute.xlu0 %659 }
0x120c   :  { %v662_v30 = vmul.f32 %v660_v34, %v656_v59 }
0x120e   :  { %664 = vrot.lane.b32.xlu0 %v662_v30, %s4120_s1 }
0x1213   :  { %v847_v62 = vpop.permute.xlu1 %846 }
0x1214   :  { %v849_v35 = vmul.f32 %v847_v62, %v843_v61 }
0x1216   :  { %851 = vrot.lane.b32.xlu1 %v849_v35, %s4120_s1 }
0x1280   :  { %v665_v1 = vpop.permute.xlu0 %664 }
0x1281   :  { %v4428_v37 = vadd.f32 %v665_v1, %v657_v63 }
0x1283   :  { %3912 = vtanh.f32 %v4428_v37 }
0x1288   :  { %v852_v3 = vpop.permute.xlu1 %851 }
0x1289   :  { %v854_v4 = vadd.f32 %v852_v3, %v844_v2 }
0x128b   :  { %3914 = vtanh.f32 %v854_v4 }
0x128d   :  { %v3913_v6 = vpop.eup %3912 }
0x128e   :  { %670 = vrot.lane.b32.xlu0 %v3913_v6, %s4120_s1 }
0x1295   :  { %v3915_v16 = vpop.eup %3914 }
0x1296   :  { %857 = vrot.lane.b32.xlu1 %v3915_v16, %s4120_s1 }
0x1300   :  { %v671_v9 = vpop.permute.xlu0 %670 }
0x1301   :  { %v673_v10 = vmul.f32 %v671_v9, %v656_v59 }
0x1303   :  { %v674_v11 = vpack.c.bf16 %v673_v10, %v673_v10 }
0x1305   :  { %676 = vrot.lane.b32.xlu0 %v674_v11, %s4116_s29 }
0x1308   :  { %v858_v12 = vpop.permute.xlu1 %857 }
0x1309   :  { %v860_v19 = vmul.f32 %v858_v12, %v843_v61 }
0x130b   :  { %v4435_v13 = vpack.c.bf16 %v860_v19, %v860_v19 }
0x130d   :  { %868 = vrot.lane.b32.xlu1 %v4435_v13, %s4116_s29 }
0x1377   :  { %v677_v8 = vpop.permute.xlu0 %676 }
0x1378   :  { %679 = vst.msk [vmem:[#allocation2 + $0x18] sm:$0xf] %vm235_vm2, %v677_v8  ;;  %3578 = vmatmul.mubr.msk.bf16.vlgmr.msra.gmra.mrb[24].mxu0 %vm249_vm3, %v677_v8 }
0x1379   :  { %3590 = vmatpush3.bf16.msra.mxu0 %v4404_v41  ;;  %3593 = vmatprep.mubr.msk.bf16.mxu0 %vm4122_vm1, %v4121_v18 }
0x137a   :  { %3591 = vmatprep.subr.bf16.mxu0 %v4121_v18 }
0x137d   :  { %3592 = vmatpush3.bf16.msra.mxu0 %v4408_v42 }
0x137e   :  { %3605 = vmatprep.subr.bf16.mxu0 %v4121_v18 }
0x137f   :  { %v869_v14 = vpop.permute.xlu1 %868 }
0x1380   :  { %3594 = vmatmul.mubr.msk.bf16.vlgmr.msra.gmra.mrb[28].mxu0 %vm249_vm3, %v869_v14 }
0x1381   :  { %3606 = vmatpush3.bf16.msra.mxu0 %v4404_v41  ;;  %3609 = vmatprep.mubr.msk.bf16.mxu0 %vm4122_vm1, %v4121_v18 }
0x1382   :  { %3607 = vmatprep.subr.bf16.mxu0 %v4121_v18 }
0x1385   :  { %3608 = vmatpush3.bf16.msra.mxu0 %v4408_v42 }
0x1386   :  { %3621 = vmatprep.subr.bf16.mxu0 %v4121_v18 }
0x144b   :  { %v717_v15 = vpop.f32.mrb[24].mxu0 }
0x144c   :  { %v4455_v20 = vadd.f32 %v717_v15, %v4317_v36  ;;  %v3579_v21 = vpop.f32.mrb[25].mxu0 }
0x144d   :  { %v720_v22 = vpop.f32.mrb[26].mxu0 }
0x144e   :  { %v3580_v23 = vpop.f32.mrb[27].mxu0 }
0x1453   :  { %v907_v32 = vpop.f32.mrb[28].mxu0 }
0x1454   :  { %v913_v24 = vadd.f32 %v907_v32, %v4311_v33  ;;  %v3595_v25 = vpop.f32.mrb[29].mxu0 }
0x1455   :  { %v910_v26 = vpop.f32.mrb[30].mxu0 }
0x1456   :  { %3916 = vtanh.f32 %v913_v24  ;;  %v3596_v38 = vpop.f32.mrb[31].mxu0 }
0x1460   :  { %v3917_v39 = vpop.eup %3916 }
0x1461   :  { %919 = vrot.lane.b32.xlu0 %v3917_v39, %s4120_s1  ;;  %v915_v28 = vmul.f32 0.5, %v3917_v39 }
0x1463   :  { %v916_v44 = vadd.f32 0.5, %v915_v28 }
0x1465   :  { %v917_v36 = vmul.f32 %v916_v44, %v854_v4 }
0x14d3   :  { %v920_v45 = vpop.permute.xlu0 %919 }
0x14d4   :  { %v922_v46 = vmul.f32 %v920_v45, %v916_v44 }
0x14d6   :  { %924 = vrot.lane.b32.xlu1 %v922_v46, %s4120_s1 }
0x1548   :  { %v925_v47 = vpop.permute.xlu1 %924 }
0x1549   :  { %v927_v48 = vadd.f32 %v925_v47, %v917_v36 }
0x154b   :  { %3918 = vtanh.f32 %v927_v48 }
0x1555   :  { %v3919_v49 = vpop.eup %3918 }
0x1556   :  { %930 = vrot.lane.b32.xlu0 %v3919_v49, %s4120_s1 }
0x15c8   :  { %v931_v33 = vpop.permute.xlu0 %930 }
0x15c9   :  { %v933_v50 = vmul.f32 %v931_v33, %v916_v44 }
0x15cb   :  { %v4461_v51 = vpack.c.bf16 %v933_v50, %v933_v50 }
0x15cd   :  { %941 = vrot.lane.b32.xlu1 %v4461_v51, %s4116_s29 }
0x163f   :  { %v942_v52 = vpop.permute.xlu1 %941 }
0x1640   :  { %3602 = vmatmul.mubr.msk.bf16.vlgmr.msra.gmra.mrb[20].mxu1 %vm249_vm3, %v942_v52 }
0x1641   :  { %3614 = vmatpush3.bf16.msra.mxu1 %v4404_v41  ;;  %3617 = vmatprep.mubr.msk.bf16.mxu1 %vm4122_vm1, %v4121_v18 }
0x1642   :  { %3615 = vmatprep.subr.bf16.mxu1 %v4121_v18 }
0x1645   :  { %3616 = vmatpush3.bf16.msra.mxu1 %v4408_v42 }
0x1646   :  { %3629 = vmatprep.subr.bf16.mxu1 %v4121_v18 }
0x1713   :  { %v980_v53 = vpop.f32.mrb[20].mxu1 }
0x1714   :  { %v986_v54 = vadd.f32 %v980_v53, %v4307_v31  ;;  %v3603_v56 = vpop.f32.mrb[21].mxu1 }
0x1715   :  { %v983_v57 = vpop.f32.mrb[22].mxu1 }
0x1716   :  { %3920 = vtanh.f32 %v986_v54  ;;  %v3604_v58 = vpop.f32.mrb[23].mxu1 }
0x1720   :  { %v3921_v59 = vpop.eup %3920 }
0x1721   :  { %992 = vrot.lane.b32.xlu0 %v3921_v59, %s4120_s1  ;;  %v988_v34 = vmul.f32 0.5, %v3921_v59 }
0x1723   :  { %v989_v30 = vadd.f32 0.5, %v988_v34 }
0x1725   :  { %v990_v62 = vmul.f32 %v989_v30, %v927_v48 }
0x1793   :  { %v993_v60 = vpop.permute.xlu0 %992 }
0x1794   :  { %v995_v61 = vmul.f32 %v993_v60, %v989_v30 }
0x1796   :  { %997 = vrot.lane.b32.xlu1 %v995_v61, %s4120_s1 }
0x1808   :  { %v998_v35 = vpop.permute.xlu1 %997 }
0x1809   :  { %v1000_v63 = vadd.f32 %v998_v35, %v990_v62 }
0x180b   :  { %3922 = vtanh.f32 %v1000_v63 }
0x1815   :  { %v3923_v1 = vpop.eup %3922 }
0x1816   :  { %1003 = vrot.lane.b32.xlu0 %v3923_v1, %s4120_s1 }
0x1888   :  { %v1004_v31 = vpop.permute.xlu0 %1003 }
0x1889   :  { %v1006_v2 = vmul.f32 %v1004_v31, %v989_v30 }
0x188b   :  { %v4476_v3 = vpack.c.bf16 %v1006_v2, %v1006_v2 }
0x188d   :  { %1013 = vrot.lane.b32.xlu1 %v4476_v3, %s4116_s29 }
0x18ff   :  { %v1014_v4 = vpop.permute.xlu1 %1013 }
0x1900   :  { %3610 = vmatmul.mubr.msk.bf16.vlgmr.msra.gmra.mrb[32].mxu0 %vm249_vm3, %v1014_v4 }
0x1901   :  { %3622 = vmatpush3.bf16.msra.mxu0 %v4404_v41  ;;  %3625 = vmatprep.mubr.msk.bf16.mxu0 %vm4122_vm1, %v4121_v18 }
0x1902   :  { %3623 = vmatprep.subr.bf16.mxu0 %v4121_v18 }
0x1905   :  { %3624 = vmatpush3.bf16.msra.mxu0 %v4408_v42 }
0x19d3   :  { %v1052_v6 = vpop.f32.mrb[32].mxu0 }
0x19d4   :  { %v1058_v16 = vadd.f32 %v1052_v6, %v4303_v29  ;;  %v3611_v9 = vpop.f32.mrb[33].mxu0 }
0x19d5   :  { %v1055_v10 = vpop.f32.mrb[34].mxu0 }
0x19d6   :  { %3924 = vtanh.f32 %v1058_v16  ;;  %v3612_v11 = vpop.f32.mrb[35].mxu0 }
0x19e0   :  { %v3925_v12 = vpop.eup %3924 }
0x19e1   :  { %1064 = vrot.lane.b32.xlu0 %v3925_v12, %s4120_s1  ;;  %v1060_v19 = vmul.f32 0.5, %v3925_v12 }
0x19e3   :  { %v1061_v8 = vadd.f32 0.5, %v1060_v19 }
0x19e5   :  { %v1062_v21 = vmul.f32 %v1061_v8, %v1000_v63 }
0x1a53   :  { %v1065_v14 = vpop.permute.xlu0 %1064 }
0x1a54   :  { %v1067_v15 = vmul.f32 %v1065_v14, %v1061_v8 }
0x1a56   :  { %1069 = vrot.lane.b32.xlu1 %v1067_v15, %s4120_s1 }
0x1ac8   :  { %v1070_v22 = vpop.permute.xlu1 %1069 }
0x1ac9   :  { %v1072_v23 = vadd.f32 %v1070_v22, %v1062_v21 }
0x1acb   :  { %3926 = vtanh.f32 %v1072_v23 }
0x1ad5   :  { %v3927_v32 = vpop.eup %3926 }
0x1ad6   :  { %1075 = vrot.lane.b32.xlu0 %v3927_v32, %s4120_s1 }
0x1b48   :  { %v1076_v29 = vpop.permute.xlu0 %1075 }
0x1b49   :  { %v1078_v24 = vmul.f32 %v1076_v29, %v1061_v8 }
0x1b4b   :  { %v4490_v25 = vpack.c.bf16 %v1078_v24, %v1078_v24 }
0x1b4d   :  { %1086 = vrot.lane.b32.xlu1 %v4490_v25, %s4116_s29 }
0x1bbf   :  { %v1087_v26 = vpop.permute.xlu1 %1086 }
0x1bc0   :  { %3618 = vmatmul.mubr.msk.bf16.vlgmr.msra.gmra.mrb[24].mxu1 %vm249_vm3, %v1087_v26  ;;  %v3846_v26 = vld [vmem:[%s5022_s4] ss:$8 sps:$4 sm:$0xff]  }
0x1bc1   :  { %3630 = vmatpush3.bf16.msra.mxu1 %v4404_v41  ;;  %3633 = vmatprep.mubr.msk.bf16.mxu1 %vm4122_vm1, %v4121_v18 }
0x1bc2   :  { %3631 = vmatprep.subr.bf16.mxu1 %v4121_v18 }
0x1bc5   :  { %3632 = vmatpush3.bf16.msra.mxu1 %v4408_v42 }
0x1bc6   :  { %3637 = vmatprep.subr.bf16.mxu1 %v4121_v18 }
0x1c93   :  { %v1125_v38 = vpop.f32.mrb[24].mxu1 }
0x1c94   :  { %v1131_v39 = vadd.f32 %v1125_v38, %v4299_v27  ;;  %v3619_v28 = vpop.f32.mrb[25].mxu1  ;;  %v3848_v38 = vld [vmem:[%s5022_s4 + $0x4] ss:$8 sps:$4 sm:$0xff]  }
0x1c95   :  { %v1128_v44 = vpop.f32.mrb[26].mxu1  ;;  %1368 = vmatprep.subr.bf16.mxu0 %v3848_v38 }
0x1c96   :  { %3928 = vtanh.f32 %v1131_v39  ;;  %v3620_v45 = vpop.f32.mrb[27].mxu1  ;;  %v3849_v39 = vld [vmem:[%s5022_s4 + $0x10] ss:$8 sps:$4 sm:$0xff]  }
0x1c97   :  { %v3854_v45 = vld [vmem:[%s5022_s4 + $0x24] ss:$8 sps:$4 sm:$0xff]  }
0x1ca0   :  { %v3929_v46 = vpop.eup %3928 }
0x1ca1   :  { %1137 = vrot.lane.b32.xlu0 %v3929_v46, %s4120_s1  ;;  %v1133_v41 = vmul.f32 0.5, %v3929_v46  ;;  %v3852_v46 = vld [vmem:[%s5022_s4 + $0x20] ss:$8 sps:$4 sm:$0xff]  }
0x1ca3   :  { %v1134_v36 = vadd.f32 0.5, %v1133_v41  ;;  %v3857_v41 = vld [vmem:[%s5022_s4 + $0x34] ss:$8 sps:$4 sm:$0xff]  }
0x1ca5   :  { %v1135_v49 = vmul.f32 %v1134_v36, %v1072_v23  ;;  %v316_v23 = vrot.slane %v4334_v55, 4  ;;  %v3851_v55 = vld [vmem:[%s5022_s4 + $0x14] ss:$8 sps:$4 sm:$0xff]  }
0x1d13   :  { %v1138_v47 = vpop.permute.xlu0 %1137 }
0x1d14   :  { %v1140_v48 = vmul.f32 %v1138_v47, %v1134_v36 }
0x1d16   :  { %1142 = vrot.lane.b32.xlu1 %v1140_v48, %s4120_s1 }
0x1d88   :  { %v1143_v42 = vpop.permute.xlu1 %1142 }
0x1d89   :  { %v1145_v33 = vadd.f32 %v1143_v42, %v1135_v49 }
0x1d8b   :  { %3930 = vtanh.f32 %v1145_v33 }
0x1d95   :  { %v3931_v50 = vpop.eup %3930 }
0x1d96   :  { %1148 = vrot.lane.b32.xlu0 %v3931_v50, %s4120_s1 }
0x1e08   :  { %v1149_v27 = vpop.permute.xlu0 %1148 }
0x1e09   :  { %v1151_v52 = vmul.f32 %v1149_v27, %v1134_v36  ;;  %v3855_v36 = vld [vmem:[%s5022_s4 + $0x30] ss:$8 sps:$4 sm:$0xff]  }
0x1e0b   :  { %v4505_v53 = vpack.c.bf16 %v1151_v52, %v1151_v52 }
0x1e0d   :  { %1158 = vrot.lane.b32.xlu1 %v4505_v53, %s4116_s29 }
0x1e7f   :  { %v1159_v54 = vpop.permute.xlu1 %1158 }
0x1e80   :  { %3626 = vmatmul.mubr.msk.bf16.vlgmr.msra.gmra.mrb[36].mxu0 %vm249_vm3, %v1159_v54 }
0x1e81   :  { %1400 = vmatprep.mubr.bf16.mxu0 %v4119_v0  ;;  %1369 = vmatpush1.bf16.msra.mxu0 %v3846_v26 }
0x1e82   :  { %1370 = vmatprep.subr.bf16.mxu0 %v3851_v55 }
0x1e85   :  { %1371 = vmatpush1.bf16.msra.mxu0 %v3849_v39 }
0x1e86   :  { %1372 = vmatprep.subr.bf16.mxu0 %v3854_v45 }
0x1e89   :  { %1373 = vmatpush1.bf16.msra.mxu0 %v3852_v46 }
0x1e8a   :  { %1374 = vmatprep.subr.bf16.mxu0 %v3857_v41 }
0x1e8d   :  { %1375 = vmatpush1.bf16.msra.mxu0 %v3855_v36 }
0x1e8e   :  { %3677 = vmatprep.subr.bf16.mxu0 %v4121_v18 }
0x1f53   :  { %v1197_v56 = vpop.f32.mrb[36].mxu0 }
0x1f54   :  { %v1203_v57 = vadd.f32 %v1197_v56, %v4252_v7  ;;  %v3627_v58 = vpop.f32.mrb[37].mxu0 }
0x1f55   :  { %v1200_v59 = vpop.f32.mrb[38].mxu0 }
0x1f56   :  { %3932 = vtanh.f32 %v1203_v57  ;;  %v3628_v34 = vpop.f32.mrb[39].mxu0 }
0x1f60   :  { %v3933_v30 = vpop.eup %3932 }
0x1f61   :  { %1209 = vrot.lane.b32.xlu0 %v3933_v30, %s4120_s1  ;;  %v1205_v60 = vmul.f32 0.5, %v3933_v30 }
0x1f63   :  { %v1206_v61 = vadd.f32 0.5, %v1205_v60 }
0x1f65   :  { %v1207_v63 = vmul.f32 %v1206_v61, %v1145_v33 }
0x1fd3   :  { %v1210_v62 = vpop.permute.xlu0 %1209 }
0x1fd4   :  { %v1212_v35 = vmul.f32 %v1210_v62, %v1206_v61 }
0x1fd6   :  { %1214 = vrot.lane.b32.xlu1 %v1212_v35, %s4120_s1  ;;  %v4566_v35 = vld [vmem:[%s5023_s5] sm:$0xff]  }
0x2048   :  { %v1215_v1 = vpop.permute.xlu1 %1214 }
0x2049   :  { %v1217_v31 = vadd.f32 %v1215_v1, %v1207_v63  ;;  %v4572_v63 = vld [vmem:[%s5023_s5 + $0x8] sm:$0xff]  }
0x204b   :  { %3934 = vtanh.f32 %v1217_v31 }
0x2055   :  { %v3935_v2 = vpop.eup %3934 }
0x2056   :  { %1220 = vrot.lane.b32.xlu0 %v3935_v2, %s4120_s1 }
0x20c8   :  { %v1221_v7 = vpop.permute.xlu0 %1220 }
0x20c9   :  { %v1223_v4 = vmul.f32 %v1221_v7, %v1206_v61 }
0x20cb   :  { %v1224_v6 = vpack.c.bf16 %v1223_v4, %v1223_v4 }
0x20cd   :  { %1231 = vrot.lane.b32.xlu1 %v1224_v6, %s4116_s29  ;;  %v1226_v44 = vrot.slane %v1224_v6, 4 }
0x213f   :  { %v1232_v16 = vpop.permute.xlu1 %1231 }
0x2140   :  { %3634 = vmatmul.mubr.msk.bf16.vlgmr.msra.gmra.mrb[28].mxu1 %vm249_vm3, %v1232_v16 }
0x2141   :  { %3641 = vmatprep.mubr.msk.bf16.mxu1 %vm4122_vm1, %v4121_v18  ;;  %3638 = vmatpush3.bf16.msra.mxu1 %v4566_v35 }
0x2142   :  { %3639 = vmatprep.subr.bf16.mxu1 %v4121_v18 }
0x2145   :  { %3640 = vmatpush3.bf16.msra.mxu1 %v4572_v63 }
0x2146   :  { %3645 = vmatprep.subr.bf16.mxu1 %v4121_v18 }
0x2213   :  { %v1270_v9 = vpop.f32.mrb[28].mxu1 }
0x2214   :  { %v1276_v10 = vadd.f32 %v1270_v9, %v4248_v5  ;;  %v3635_v11 = vpop.f32.mrb[29].mxu1 }
0x2215   :  { %v1273_v12 = vpop.f32.mrb[30].mxu1 }
0x2216   :  { %3936 = vtanh.f32 %v1276_v10  ;;  %v3636_v19 = vpop.f32.mrb[31].mxu1 }
0x2220   :  { %v3937_v8 = vpop.eup %3936 }
0x2221   :  { %1282 = vrot.lane.b32.xlu0 %v3937_v8, %s4120_s1  ;;  %v1278_v14 = vmul.f32 0.5, %v3937_v8 }
0x2223   :  { %v1279_v15 = vadd.f32 0.5, %v1278_v14 }
0x2225   :  { %v1280_v32 = vmul.f32 %v1279_v15, %v1217_v31 }
0x2293   :  { %v1283_v21 = vpop.permute.xlu0 %1282 }
0x2294   :  { %v1285_v22 = vmul.f32 %v1283_v21, %v1279_v15  ;;  %v460_v21 = vrot.slane %v4361_v43, 4  ;;  %v1081_v43 = vrot.slane %v4490_v25, 4 }
0x2296   :  { %1287 = vrot.lane.b32.xlu1 %v1285_v22, %s4120_s1 }
0x229a   :  { %317 = vrot.lane.b32.xlu1 %v316_v23, %s4116_s29 }
0x2308   :  { %v1288_v29 = vpop.permute.xlu1 %1287 }
0x2309   :  { %v1290_v5 = vadd.f32 %v1288_v29, %v1280_v32 }
0x230b   :  { %3938 = vtanh.f32 %v1290_v5 }
0x230c   :  { %v318_v24 = vpop.permute.xlu1 %317 }
0x230d   :  { %321 = vst.msk [vmem:[#allocation2] sm:$0xf0] %vm320_vm4, %v318_v24 }
0x2315   :  { %v3939_v28 = vpop.eup %3938 }
0x2316   :  { %1293 = vrot.lane.b32.xlu0 %v3939_v28, %s4120_s1 }
0x231a   :  { %1227 = vrot.lane.b32.xlu0 %v1226_v44, %s4123_s19 }
0x2388   :  { %v1294_v47 = vpop.permute.xlu0 %1293 }
0x2389   :  { %v1296_v48 = vmul.f32 %v1294_v47, %v1279_v15 }
0x238b   :  { %v1297_v49 = vpack.c.bf16 %v1296_v48, %v1296_v48 }
0x238c   :  { %v1228_v42 = vpop.permute.xlu0 %1227 }
0x238d   :  { %1230 = vst.msk [vmem:[#allocation2] sm:$0xf0] %vm781_vm5, %v1228_v42  ;;  %1299 = vrot.lane.b32.xlu1 %v1297_v49, %s4123_s19 }
0x23ff   :  { %v1300_v33 = vpop.permute.xlu1 %1299 }
0x2400   :  { %1302 = vst.msk [vmem:[#allocation2] sm:$0xf] %vm866_vm6, %v1300_v33 }
0x2407   :  { %v1303_v50 = vld [vmem:[#allocation2] sm:$0xff] }
0x2408   :  { %3365 = vmatmul.mubr.msk.bf16.vlgmr.msra.gmra.mrb[40].mxu0 %vm1355_vm7, %v1303_v50 }
0x2409   :  { %1410 = vmatprep.mubr.bf16.mxu0 %v4119_v0  ;;  %3678 = vmatpush3.bf16.msra.mxu0 %v4566_v35 }
0x240a   :  { %3679 = vmatprep.subr.bf16.mxu0 %v4121_v18 }
0x240d   :  { %3680 = vmatpush3.bf16.msra.mxu0 %v4572_v63 }
0x240e   :  { %3693 = vmatprep.subr.bf16.mxu0 %v4121_v18 }
0x24db   :  { %v1402_v27 = vpop.f32.mrb[40].mxu0 }
0x24dc   :  { %3940 = vtanh.f32 %v1402_v27  ;;  %v4557_v52 = vpop.f32.mrb[41].mxu0 }
0x24dd   :  { %v1406_v54 = vpop.f32.mrb[42].mxu0 }
0x24de   :  { %v4559_v56 = vpop.f32.mrb[43].mxu0 }
0x24e6   :  { %v3941_v57 = vpop.eup %3940 }
0x24e7   :  { %1450 = vrot.lane.b32.xlu0 %v3941_v57, %s4120_s1  ;;  %v1446_v58 = vmul.f32 0.5, %v3941_v57 }
0x24e9   :  { %v1447_v59 = vadd.f32 0.5, %v1446_v58 }
0x24eb   :  { %v1448_v60 = vmul.f32 0.0, %v1447_v59 }
0x2559   :  { %v1451_v34 = vpop.permute.xlu0 %1450 }
0x255a   :  { %v1453_v30 = vmul.f32 %v1451_v34, %v1447_v59 }
0x255c   :  { %1455 = vrot.lane.b32.xlu1 %v1453_v30, %s4120_s1 }
0x25ce   :  { %v1456_v61 = vpop.permute.xlu1 %1455 }
0x25cf   :  { %v1458_v62 = vadd.f32 %v1456_v61, %v1448_v60 }
0x25d1   :  { %3942 = vtanh.f32 %v1458_v62 }
0x25db   :  { %v3943_v1 = vpop.eup %3942 }
0x25dc   :  { %1461 = vrot.lane.b32.xlu0 %v3943_v1, %s4120_s1 }
0x264e   :  { %v1462_v31 = vpop.permute.xlu0 %1461 }
0x264f   :  { %v1464_v2 = vmul.f32 %v1462_v31, %v1447_v59 }
0x2651   :  { %v1465_v7 = vpack.c.bf16 %v1464_v2, %v1464_v2 }
0x2653   :  { %1467 = vrot.lane.b32.xlu1 %v1465_v7, %s4116_s29 }
0x26c5   :  { %v1468_v4 = vpop.permute.xlu1 %1467 }
0x26c6   :  { %1470 = vst.msk [vmem:[#allocation2] sm:$0xf] %vm235_vm2, %v1468_v4  ;;  %3642 = vmatmul.mubr.msk.bf16.vlgmr.msra.gmra.mrb[32].mxu1 %vm249_vm3, %v1468_v4 }
0x26c7   :  { %3646 = vmatpush3.bf16.msra.mxu1 %v4566_v35  ;;  %3649 = vmatprep.mubr.msk.bf16.mxu1 %vm4122_vm1, %v4121_v18 }
0x26c8   :  { %3647 = vmatprep.subr.bf16.mxu1 %v4121_v18 }
0x26cb   :  { %3648 = vmatpush3.bf16.msra.mxu1 %v4572_v63 }
0x26cc   :  { %3653 = vmatprep.subr.bf16.mxu1 %v4121_v18 }
0x2799   :  { %v1520_v6 = vpop.f32.mrb[32].mxu1 }
0x279a   :  { %v1526_v16 = vadd.f32 %v1520_v6, %v1406_v54  ;;  %v3643_v9 = vpop.f32.mrb[33].mxu1 }
0x279b   :  { %v1523_v10 = vpop.f32.mrb[34].mxu1 }
0x279c   :  { %3944 = vtanh.f32 %v1526_v16  ;;  %v3644_v11 = vpop.f32.mrb[35].mxu1 }
0x27a6   :  { %v3945_v12 = vpop.eup %3944 }
0x27a7   :  { %1532 = vrot.lane.b32.xlu0 %v3945_v12, %s4120_s1  ;;  %v1528_v19 = vmul.f32 0.5, %v3945_v12  ;;  %v603_v12 = vrot.slane %v4400_v40, 4 }
0x27a9   :  { %v1529_v8 = vadd.f32 0.5, %v1528_v19 }
0x27ab   :  { %v1530_v22 = vmul.f32 %v1529_v8, %v1458_v62 }
0x2819   :  { %v1533_v14 = vpop.permute.xlu0 %1532 }
0x281a   :  { %v1535_v15 = vmul.f32 %v1533_v14, %v1529_v8 }
0x281c   :  { %1537 = vrot.lane.b32.xlu1 %v1535_v15, %s4120_s1 }
0x2820   :  { %461 = vrot.lane.b32.xlu1 %v460_v21, %s4116_s29 }
0x2824   :  { %1154 = vrot.lane.b32.xlu1 %v4505_v53, %s4123_s19 }
0x288e   :  { %v1538_v23 = vpop.permute.xlu1 %1537 }
0x288f   :  { %v1540_v32 = vadd.f32 %v1538_v23, %v1530_v22 }
0x2891   :  { %3946 = vtanh.f32 %v1540_v32 }
0x2892   :  { %v462_v29 = vpop.permute.xlu1 %461 }
0x2893   :  { %464 = vst.msk [vmem:[#allocation2 + $0x8] sm:$0xf0] %vm320_vm4, %v462_v29  ;;  %v936_v29 = vrot.slane %v4461_v51, 4 }
0x2896   :  { %v1155_v5 = vpop.permute.xlu1 %1154 }
0x2897   :  { %1157 = vst.msk [vmem:[#allocation2 + $0x8] sm:$0xf] %vm866_vm6, %v1155_v5 }
0x289b   :  { %v3947_v24 = vpop.eup %3946 }
0x289c   :  { %1543 = vrot.lane.b32.xlu0 %v3947_v24, %s4120_s1 }
0x28a0   :  { %1082 = vrot.lane.b32.xlu0 %v1081_v43, %s4123_s19 }
0x290e   :  { %v1544_v26 = vpop.permute.xlu0 %1543 }
0x290f   :  { %v1546_v38 = vmul.f32 %v1544_v26, %v1529_v8 }
0x2911   :  { %v4602_v53 = vpack.c.bf16 %v1546_v38, %v1546_v38 }
0x2912   :  { %v1083_v55 = vpop.permute.xlu0 %1082 }
0x2913   :  { %1085 = vst.msk [vmem:[#allocation2 + $0x8] sm:$0xf0] %vm781_vm5, %v1083_v55  ;;  %1554 = vrot.lane.b32.xlu0 %v4602_v53, %s4116_s29 }
0x291a   :  { %v1304_v39 = vld [vmem:[#allocation2 + $0x8] sm:$0xff] }
0x291b   :  { %3366 = vmatmul.mubr.msk.bf16.gmra.mrb[44].mxu0 %vm1355_vm7, %v1304_v39 }
0x291c   :  { %1420 = vmatprep.mubr.bf16.mxu0 %v4119_v0 }
0x2985   :  { %v1555_v28 = vpop.permute.xlu0 %1554 }
0x2986   :  { %3650 = vmatmul.mubr.msk.bf16.vlgmr.msra.gmra.mrb[36].mxu1 %vm249_vm3, %v1555_v28 }
0x2987   :  { %3654 = vmatpush3.bf16.msra.mxu1 %v4566_v35  ;;  %3657 = vmatprep.mubr.msk.bf16.mxu1 %vm4122_vm1, %v4121_v18 }
0x2988   :  { %3655 = vmatprep.subr.bf16.mxu1 %v4121_v18 }
0x298b   :  { %3656 = vmatpush3.bf16.msra.mxu1 %v4572_v63 }
0x298c   :  { %3661 = vmatprep.subr.bf16.mxu1 %v4121_v18 }
0x29ee   :  { %v1412_v25 = vpop.f32.mrb[44].mxu0 }
0x29ef   :  { %v4616_v44 = vpop.f32.mrb[45].mxu0 }
0x29f0   :  { %v1416_v45 = vpop.f32.mrb[46].mxu0 }
0x29f1   :  { %v4618_v46 = vpop.f32.mrb[47].mxu0 }
0x2a59   :  { %v1593_v41 = vpop.f32.mrb[36].mxu1 }
0x2a5a   :  { %v1599_v36 = vadd.f32 %v1593_v41, %v1412_v25  ;;  %v3651_v47 = vpop.f32.mrb[37].mxu1 }
0x2a5b   :  { %v1596_v48 = vpop.f32.mrb[38].mxu1 }
0x2a5c   :  { %3948 = vtanh.f32 %v1599_v36  ;;  %v3652_v49 = vpop.f32.mrb[39].mxu1 }
0x2a66   :  { %v3949_v42 = vpop.eup %3948 }
0x2a67   :  { %1605 = vrot.lane.b32.xlu1 %v3949_v42, %s4120_s1  ;;  %v1601_v33 = vmul.f32 0.5, %v3949_v42 }
0x2a69   :  { %v1602_v50 = vadd.f32 0.5, %v1601_v33 }
0x2a6b   :  { %v1603_v57 = vmul.f32 %v1602_v50, %v1540_v32 }
0x2ad9   :  { %v1606_v27 = vpop.permute.xlu1 %1605 }
0x2ada   :  { %v1608_v54 = vmul.f32 %v1606_v27, %v1602_v50 }
0x2adc   :  { %1610 = vrot.lane.b32.xlu0 %v1608_v54, %s4120_s1 }
0x2b4e   :  { %v1611_v58 = vpop.permute.xlu0 %1610 }
0x2b4f   :  { %v1613_v59 = vadd.f32 %v1611_v58, %v1603_v57 }
0x2b51   :  { %3950 = vtanh.f32 %v1613_v59 }
0x2b5b   :  { %v3951_v34 = vpop.eup %3950 }
0x2b5c   :  { %1616 = vrot.lane.b32.xlu1 %v3951_v34, %s4120_s1 }
0x2bce   :  { %v1617_v30 = vpop.permute.xlu1 %1616 }
0x2bcf   :  { %v1619_v60 = vmul.f32 %v1617_v30, %v1602_v50 }
0x2bd1   :  { %v1620_v61 = vpack.c.bf16 %v1619_v60, %v1619_v60 }
0x2bd3   :  { %1622 = vrot.lane.b32.xlu0 %v1620_v61, %s4116_s29 }
0x2c45   :  { %v1623_v62 = vpop.permute.xlu0 %1622 }
0x2c46   :  { %1625 = vst.msk [vmem:[#allocation2 + $0x8] sm:$0xf] %vm235_vm2, %v1623_v62  ;;  %3658 = vmatmul.mubr.msk.bf16.vlgmr.msra.gmra.mrb[40].mxu1 %vm249_vm3, %v1623_v62 }
0x2c47   :  { %3662 = vmatpush3.bf16.msra.mxu1 %v4566_v35  ;;  %3665 = vmatprep.mubr.msk.bf16.mxu1 %vm4122_vm1, %v4121_v18 }
0x2c48   :  { %3663 = vmatprep.subr.bf16.mxu1 %v4121_v18 }
0x2c4b   :  { %3664 = vmatpush3.bf16.msra.mxu1 %v4572_v63 }
0x2c4c   :  { %3669 = vmatprep.subr.bf16.mxu1 %v4121_v18 }
0x2d19   :  { %v1663_v1 = vpop.f32.mrb[40].mxu1 }
0x2d1a   :  { %v1669_v31 = vadd.f32 %v1663_v1, %v1416_v45  ;;  %v3659_v2 = vpop.f32.mrb[41].mxu1 }
0x2d1b   :  { %v1666_v7 = vpop.f32.mrb[42].mxu1 }
0x2d1c   :  { %3952 = vtanh.f32 %v1669_v31  ;;  %v3660_v4 = vpop.f32.mrb[43].mxu1  ;;  %v777_v7 = vrot.slane %v4394_v17, 4 }
0x2d1d   :  { %3954 = vtanh.f32 %v4455_v20 }
0x2d26   :  { %v3953_v6 = vpop.eup %3952 }
0x2d27   :  { %1675 = vrot.lane.b32.xlu1 %v3953_v6, %s4120_s1  ;;  %v1671_v16 = vmul.f32 0.5, %v3953_v6  ;;  %v3955_v19 = vpop.eup %3954 }
0x2d28   :  { %v725_v20 = vmul.f32 0.5, %v3955_v19 }
0x2d29   :  { %v1672_v9 = vadd.f32 0.5, %v1671_v16 }
0x2d2a   :  { %v726_v40 = vadd.f32 0.5, %v725_v20 }
0x2d2b   :  { %v1673_v8 = vmul.f32 %v1672_v9, %v1613_v59 }
0x2d2c   :  { %v727_v24 = vmul.f32 %v726_v40, %v4428_v37 }
0x2d99   :  { %v1676_v10 = vpop.permute.xlu1 %1675 }
0x2d9a   :  { %v1678_v11 = vmul.f32 %v1676_v10, %v1672_v9 }
0x2d9c   :  { %1680 = vrot.lane.b32.xlu0 %v1678_v11, %s4120_s1 }
0x2da0   :  { %604 = vrot.lane.b32.xlu0 %v603_v12, %s4116_s29 }
0x2da4   :  { %1009 = vrot.lane.b32.xlu0 %v4476_v3, %s4123_s19 }
0x2da8   :  { %729 = vrot.lane.b32.xlu0 %v3955_v19, %s4120_s1 }
0x2e0e   :  { %v1681_v14 = vpop.permute.xlu0 %1680 }
0x2e0f   :  { %v4640_v15 = vadd.f32 %v1681_v14, %v1673_v8 }
0x2e11   :  { %3956 = vtanh.f32 %v4640_v15 }
0x2e12   :  { %v605_v21 = vpop.permute.xlu0 %604 }
0x2e13   :  { %607 = vst.msk [vmem:[#allocation2 + $0x10] sm:$0xf0] %vm320_vm4, %v605_v21 }
0x2e16   :  { %v1010_v22 = vpop.permute.xlu0 %1009 }
0x2e17   :  { %1012 = vst.msk [vmem:[#allocation2 + $0x10] sm:$0xf] %vm866_vm6, %v1010_v22 }
0x2e1a   :  { %v730_v23 = vpop.permute.xlu0 %729 }
0x2e1b   :  { %v3957_v32 = vpop.eup %3956  ;;  %v732_v3 = vmul.f32 %v730_v23, %v726_v40 }
0x2e1c   :  { %1686 = vrot.lane.b32.xlu1 %v3957_v32, %s4120_s1 }
0x2e1d   :  { %734 = vrot.lane.b32.xlu0 %v732_v3, %s4120_s1 }
0x2e20   :  { %937 = vrot.lane.b32.xlu1 %v936_v29, %s4123_s19 }
0x2e8e   :  { %v1687_v5 = vpop.permute.xlu1 %1686 }
0x2e8f   :  { %v1689_v43 = vmul.f32 %v1687_v5, %v1672_v9  ;;  %v735_v26 = vpop.permute.xlu0 %734 }
0x2e90   :  { %v737_v38 = vadd.f32 %v735_v26, %v727_v24 }
0x2e91   :  { %v4650_v55 = vpack.c.bf16 %v1689_v43, %v1689_v43 }
0x2e92   :  { %3958 = vtanh.f32 %v737_v38  ;;  %v938_v39 = vpop.permute.xlu1 %937 }
0x2e93   :  { %940 = vst.msk [vmem:[#allocation2 + $0x10] sm:$0xf0] %vm781_vm5, %v938_v39  ;;  %1697 = vrot.lane.b32.xlu1 %v4650_v55, %s4116_s29 }
0x2e9a   :  { %v1305_v28 = vld [vmem:[#allocation2 + $0x10] sm:$0xff] }
0x2e9b   :  { %3367 = vmatmul.mubr.msk.bf16.gmra.mrb[48].mxu0 %vm1355_vm7, %v1305_v28 }
0x2e9c   :  { %v3959_v51 = vpop.eup %3958  ;;  %1430 = vmatprep.mubr.bf16.mxu0 %v4119_v0 }
0x2e9d   :  { %740 = vrot.lane.b32.xlu0 %v3959_v51, %s4120_s1 }
0x2f05   :  { %v1698_v37 = vpop.permute.xlu1 %1697 }
0x2f06   :  { %3666 = vmatmul.mubr.msk.bf16.vlgmr.msra.gmra.mrb[44].mxu1 %vm249_vm3, %v1698_v37 }
0x2f07   :  { %3670 = vmatpush3.bf16.msra.mxu1 %v4566_v35  ;;  %3673 = vmatprep.mubr.msk.bf16.mxu1 %vm4122_vm1, %v4121_v18 }
0x2f08   :  { %3671 = vmatprep.subr.bf16.mxu1 %v4121_v18 }
0x2f0b   :  { %3672 = vmatpush3.bf16.msra.mxu1 %v4572_v63 }
0x2f0c   :  { %3685 = vmatprep.subr.bf16.mxu1 %v4121_v18 }
0x2f0f   :  { %v741_v25 = vpop.permute.xlu0 %740 }
0x2f10   :  { %v743_v45 = vmul.f32 %v741_v25, %v726_v40 }
0x2f12   :  { %v744_v41 = vpack.c.bf16 %v743_v45, %v743_v45 }
0x2f14   :  { %v746_v36 = vrot.slane %v744_v41, 4 }
0x2f16   :  { %747 = vrot.lane.b32.xlu0 %v746_v36, %s4116_s29 }
0x2f1a   :  { %863 = vrot.lane.b32.xlu0 %v4435_v13, %s4123_s19 }
0x2f6e   :  { %v1422_v47 = vpop.f32.mrb[48].mxu0 }
0x2f6f   :  { %v4668_v48 = vpop.f32.mrb[49].mxu0 }
0x2f70   :  { %v1426_v49 = vpop.f32.mrb[50].mxu0 }
0x2f71   :  { %v4670_v42 = vpop.f32.mrb[51].mxu0 }
0x2f88   :  { %v748_v33 = vpop.permute.xlu0 %747 }
0x2f89   :  { %750 = vst.msk [vmem:[#allocation2 + $0x18] sm:$0xf0] %vm320_vm4, %v748_v33 }
0x2f8c   :  { %v864_v50 = vpop.permute.xlu0 %863 }
0x2f8d   :  { %867 = vst.msk [vmem:[#allocation2 + $0x18] sm:$0xf] %vm866_vm6, %v864_v50 }
0x2fd9   :  { %v1736_v27 = vpop.f32.mrb[44].mxu1 }
0x2fda   :  { %v1742_v54 = vadd.f32 %v1736_v27, %v1422_v47  ;;  %v3667_v57 = vpop.f32.mrb[45].mxu1  ;;  %v4714_v27 = vld [vmem:[#allocation5] sm:$0xff]  }
0x2fdb   :  { %v1739_v58 = vpop.f32.mrb[46].mxu1  ;;  %v4718_v57 = vld [vmem:[#allocation5 + $0x8] sm:$0xff]  }
0x2fdc   :  { %3960 = vtanh.f32 %v1742_v54  ;;  %v3668_v59 = vpop.f32.mrb[47].mxu1 }
0x2fe6   :  { %v3961_v34 = vpop.eup %3960 }
0x2fe7   :  { %1748 = vrot.lane.b32.xlu1 %v3961_v34, %s4120_s1  ;;  %v1744_v13 = vmul.f32 0.5, %v3961_v34 }
0x2fe9   :  { %v1745_v30 = vadd.f32 0.5, %v1744_v13 }
0x2feb   :  { %v1746_v62 = vmul.f32 %v1745_v30, %v4640_v15 }
0x3059   :  { %v1749_v60 = vpop.permute.xlu1 %1748 }
0x305a   :  { %v1751_v61 = vmul.f32 %v1749_v60, %v1745_v30 }
0x305c   :  { %1753 = vrot.lane.b32.xlu1 %v1751_v61, %s4120_s1 }
0x30ce   :  { %v1754_v1 = vpop.permute.xlu1 %1753 }
0x30cf   :  { %v1756_v31 = vadd.f32 %v1754_v1, %v1746_v62 }
0x30d1   :  { %3962 = vtanh.f32 %v1756_v31 }
0x30db   :  { %v3963_v2 = vpop.eup %3962 }
0x30dc   :  { %1759 = vrot.lane.b32.xlu1 %v3963_v2, %s4120_s1 }
0x30e0   :  { %778 = vrot.lane.b32.xlu1 %v777_v7, %s4123_s19 }
0x314e   :  { %v1760_v4 = vpop.permute.xlu1 %1759 }
0x314f   :  { %v1762_v6 = vmul.f32 %v1760_v4, %v1745_v30 }
0x3151   :  { %v1763_v16 = vpack.c.bf16 %v1762_v6, %v1762_v6 }
0x3152   :  { %v779_v9 = vpop.permute.xlu1 %778 }
0x3153   :  { %782 = vst.msk [vmem:[#allocation2 + $0x18] sm:$0xf0] %vm781_vm5, %v779_v9  ;;  %1765 = vrot.lane.b32.xlu1 %v1763_v16, %s4116_s29 }
0x315a   :  { %v1306_v10 = vld [vmem:[#allocation2 + $0x18] sm:$0xff] }
0x315b   :  { %3368 = vmatmul.mubr.msk.bf16.gmra.mrb[52].mxu0 %vm1355_vm7, %v1306_v10 }
0x315c   :  { %3681 = vmatprep.mubr.msk.bf16.mxu0 %vm4122_vm1, %v4121_v18 }
0x31c5   :  { %v1766_v11 = vpop.permute.xlu1 %1765 }
0x31c6   :  { %1768 = vst.msk [vmem:[#allocation2 + $0x10] sm:$0xf] %vm235_vm2, %v1766_v11  ;;  %3674 = vmatmul.mubr.msk.bf16.vlgmr.msra.gmra.mrb[48].mxu1 %vm249_vm3, %v1766_v11 }
0x31c7   :  { %3686 = vmatpush3.bf16.msra.mxu1 %v4566_v35  ;;  %3689 = vmatprep.mubr.msk.bf16.mxu1 %vm4122_vm1, %v4121_v18 }
0x31c8   :  { %3687 = vmatprep.subr.bf16.mxu1 %v4121_v18 }
0x31cb   :  { %3688 = vmatpush3.bf16.msra.mxu1 %v4572_v63 }
0x31cc   :  { %3701 = vmatprep.subr.bf16.mxu1 %v4121_v18 }
0x322e   :  { %v1432_v17 = vpop.f32.mrb[52].mxu0 }
0x322f   :  { %v4693_v12 = vpop.f32.mrb[53].mxu0 }
0x3230   :  { %v4695_v19 = vpop.f32.mrb[54].mxu0 }
0x3231   :  { %v1438_v8 = vpop.f32.mrb[55].mxu0 }
0x3232   :  { %3964 = vtanh.f32 %v1438_v8 }
0x323c   :  { %v3965_v14 = vpop.eup %3964 }
0x323d   :  { %1992 = vrot.lane.b32.xlu1 %v3965_v14, %s4120_s1  ;;  %v1988_v63 = vmul.f32 0.5, %v3965_v14 }
0x323f   :  { %v1989_v23 = vadd.f32 0.5, %v1988_v63 }
0x3241   :  { %v1990_v26 = vmul.f32 0.0, %v1989_v23 }
0x3299   :  { %v1806_v35 = vpop.f32.mrb[48].mxu1 }
0x329a   :  { %v1812_v15 = vadd.f32 %v1806_v35, %v1426_v49  ;;  %v3675_v21 = vpop.f32.mrb[49].mxu1 }
0x329b   :  { %v1809_v20 = vpop.f32.mrb[50].mxu1 }
0x329c   :  { %3966 = vtanh.f32 %v1812_v15  ;;  %v3676_v22 = vpop.f32.mrb[51].mxu1 }
0x32a6   :  { %v3967_v40 = vpop.eup %3966 }
0x32a7   :  { %1818 = vrot.lane.b32.xlu0 %v3967_v40, %s4120_s1  ;;  %v1814_v29 = vmul.f32 0.5, %v3967_v40 }
0x32a9   :  { %v1815_v5 = vadd.f32 0.5, %v1814_v29 }
0x32ab   :  { %v1816_v51 = vmul.f32 %v1815_v5, %v1756_v31 }
0x32af   :  { %v1993_v32 = vpop.permute.xlu1 %1992 }
0x32b0   :  { %v1995_v3 = vmul.f32 %v1993_v32, %v1989_v23 }
0x32b2   :  { %1997 = vrot.lane.b32.xlu1 %v1995_v3, %s4120_s1 }
0x3319   :  { %v1819_v24 = vpop.permute.xlu0 %1818 }
0x331a   :  { %v1821_v43 = vmul.f32 %v1819_v24, %v1815_v5 }
0x331c   :  { %1823 = vrot.lane.b32.xlu0 %v1821_v43, %s4120_s1 }
0x3324   :  { %v1998_v38 = vpop.permute.xlu1 %1997 }
0x3325   :  { %v4701_v39 = vadd.f32 %v1998_v38, %v1990_v26 }
0x3327   :  { %3968 = vtanh.f32 %v4701_v39 }
0x3331   :  { %v3969_v28 = vpop.eup %3968 }
0x3332   :  { %2003 = vrot.lane.b32.xlu1 %v3969_v28, %s4120_s1 }
0x338e   :  { %v1824_v37 = vpop.permute.xlu0 %1823 }
0x338f   :  { %v1826_v25 = vadd.f32 %v1824_v37, %v1816_v51 }
0x3391   :  { %3970 = vtanh.f32 %v1826_v25 }
0x339b   :  { %v3971_v45 = vpop.eup %3970 }
0x339c   :  { %1829 = vrot.lane.b32.xlu0 %v3971_v45, %s4120_s1 }
0x33a4   :  { %v2004_v41 = vpop.permute.xlu1 %2003 }
0x33a5   :  { %v2006_v36 = vmul.f32 %v2004_v41, %v1989_v23 }
0x33a7   :  { %v4706_v47 = vpack.c.bf16 %v2006_v36, %v2006_v36 }
0x33a9   :  { %2014 = vrot.lane.b32.xlu1 %v4706_v47, %s4116_s29 }
0x340e   :  { %v1830_v49 = vpop.permute.xlu0 %1829 }
0x340f   :  { %v1832_v33 = vmul.f32 %v1830_v49, %v1815_v5 }
0x3411   :  { %v4710_v50 = vpack.c.bf16 %v1832_v33, %v1832_v33 }
0x3413   :  { %1840 = vrot.lane.b32.xlu0 %v4710_v50, %s4116_s29 }
0x341b   :  { %v2015_v58 = vpop.permute.xlu1 %2014 }
0x3485   :  { %v1841_v54 = vpop.permute.xlu0 %1840 }
0x3486   :  { %3682 = vmatmul.mubr.msk.bf16.vlgmr.msra.gmra.mrb[56].mxu0 %vm249_vm3, %v1841_v54 }
0x3487   :  { %3694 = vmatpush3.bf16.msra.mxu0 %v4714_v27  ;;  %3697 = vmatprep.mubr.msk.bf16.mxu0 %vm4122_vm1, %v4121_v18 }
0x3488   :  { %3695 = vmatprep.subr.bf16.mxu0 %v4121_v18 }
0x348b   :  { %3696 = vmatpush3.bf16.msra.mxu0 %v4718_v57 }
0x348c   :  { %3709 = vmatprep.subr.bf16.mxu0 %v4121_v18 }
0x348e   :  { %3698 = vmatmul.mubr.msk.bf16.vlgmr.msra.gmra.mrb[60].mxu0 %vm249_vm3, %v2015_v58 }
0x348f   :  { %3710 = vmatpush3.bf16.msra.mxu0 %v4714_v27  ;;  %3713 = vmatprep.mubr.msk.bf16.mxu0 %vm4122_vm1, %v4121_v18 }
0x3490   :  { %3711 = vmatprep.subr.bf16.mxu0 %v4121_v18 }
0x3493   :  { %3712 = vmatpush3.bf16.msra.mxu0 %v4718_v57 }
0x3494   :  { %3725 = vmatprep.subr.bf16.mxu0 %v4121_v18 }
0x3559   :  { %v1879_v59 = vpop.f32.mrb[56].mxu0 }
0x355a   :  { %v1885_v34 = vadd.f32 %v1879_v59, %v1432_v17  ;;  %v3683_v13 = vpop.f32.mrb[57].mxu0 }
0x355b   :  { %v1882_v30 = vpop.f32.mrb[58].mxu0 }
0x355c   :  { %3972 = vtanh.f32 %v1885_v34  ;;  %v3684_v60 = vpop.f32.mrb[59].mxu0 }
0x3561   :  { %v2065_v61 = vpop.f32.mrb[60].mxu0 }
0x3562   :  { %v2071_v62 = vadd.f32 %v2065_v61, %v4693_v12  ;;  %v3699_v1 = vpop.f32.mrb[61].mxu0 }
0x3563   :  { %v2068_v31 = vpop.f32.mrb[62].mxu0 }
0x3564   :  { %3974 = vtanh.f32 %v2071_v62  ;;  %v3700_v2 = vpop.f32.mrb[63].mxu0 }
0x3566   :  { %v3973_v7 = vpop.eup %3972 }
0x3567   :  { %1891 = vrot.lane.b32.xlu0 %v3973_v7, %s4120_s1  ;;  %v1887_v6 = vmul.f32 0.5, %v3973_v7 }
0x3569   :  { %v1888_v16 = vadd.f32 0.5, %v1887_v6 }
0x356b   :  { %v1889_v14 = vmul.f32 %v1888_v16, %v1826_v25 }
0x356e   :  { %v3975_v4 = vpop.eup %3974 }
0x356f   :  { %2077 = vrot.lane.b32.xlu1 %v3975_v4, %s4120_s1  ;;  %v2073_v11 = vmul.f32 0.5, %v3975_v4 }
0x3571   :  { %v2074_v17 = vadd.f32 0.5, %v2073_v11 }
0x3573   :  { %v2075_v21 = vmul.f32 %v2074_v17, %v4701_v39 }
0x35d9   :  { %v1892_v9 = vpop.permute.xlu0 %1891 }
0x35da   :  { %v1894_v10 = vmul.f32 %v1892_v9, %v1888_v16 }
0x35dc   :  { %1896 = vrot.lane.b32.xlu0 %v1894_v10, %s4120_s1 }
0x35e1   :  { %v2078_v8 = vpop.permute.xlu1 %2077 }
0x35e2   :  { %v2080_v12 = vmul.f32 %v2078_v8, %v2074_v17 }
0x35e4   :  { %2082 = vrot.lane.b32.xlu1 %v2080_v12, %s4120_s1 }
0x364e   :  { %v1897_v35 = vpop.permute.xlu0 %1896 }
0x364f   :  { %v4737_v15 = vadd.f32 %v1897_v35, %v1889_v14 }
0x3651   :  { %3976 = vtanh.f32 %v4737_v15 }
0x3656   :  { %v2083_v20 = vpop.permute.xlu1 %2082 }
0x3657   :  { %v2085_v22 = vadd.f32 %v2083_v20, %v2075_v21 }
0x3659   :  { %3978 = vtanh.f32 %v2085_v22 }
0x365b   :  { %v3977_v40 = vpop.eup %3976 }
0x365c   :  { %1902 = vrot.lane.b32.xlu0 %v3977_v40, %s4120_s1 }
0x3663   :  { %v3979_v63 = vpop.eup %3978 }
0x3664   :  { %2088 = vrot.lane.b32.xlu1 %v3979_v63, %s4120_s1 }
0x36ce   :  { %v1903_v23 = vpop.permute.xlu0 %1902 }
0x36cf   :  { %v1905_v32 = vmul.f32 %v1903_v23, %v1888_v16 }
0x36d1   :  { %v1906_v3 = vpack.c.bf16 %v1905_v32, %v1905_v32 }
0x36d3   :  { %1908 = vrot.lane.b32.xlu0 %v1906_v3, %s4116_s29 }
0x36d6   :  { %v2089_v29 = vpop.permute.xlu1 %2088 }
0x36d7   :  { %v2091_v5 = vmul.f32 %v2089_v29, %v2074_v17 }
0x36d9   :  { %v4744_v24 = vpack.c.bf16 %v2091_v5, %v2091_v5 }
0x36db   :  { %2098 = vrot.lane.b32.xlu1 %v4744_v24, %s4116_s29 }
0x3745   :  { %v1909_v43 = vpop.permute.xlu0 %1908 }
0x3746   :  { %1911 = vst.msk [vmem:[#allocation2 + $0x18] sm:$0xf] %vm235_vm2, %v1909_v43  ;;  %3690 = vmatmul.mubr.msk.bf16.vlgmr.msra.gmra.mrb[52].mxu1 %vm249_vm3, %v1909_v43 }
0x3747   :  { %3702 = vmatpush3.bf16.msra.mxu1 %v4714_v27  ;;  %3705 = vmatprep.mubr.msk.bf16.mxu1 %vm4122_vm1, %v4121_v18 }
0x3748   :  { %3703 = vmatprep.subr.bf16.mxu1 %v4121_v18 }
0x374b   :  { %3704 = vmatpush3.bf16.msra.mxu1 %v4718_v57 }
0x374c   :  { %3717 = vmatprep.subr.bf16.mxu1 %v4121_v18 }
0x374d   :  { %v2099_v26 = vpop.permute.xlu1 %2098 }
0x374e   :  { %3706 = vmatmul.mubr.msk.bf16.vlgmr.msra.gmra.mrb[56].mxu1 %vm249_vm3, %v2099_v26 }
0x374f   :  { %3718 = vmatpush3.bf16.msra.mxu1 %v4714_v27  ;;  %3721 = vmatprep.mubr.msk.bf16.mxu1 %vm4122_vm1, %v4121_v18 }
0x3750   :  { %3719 = vmatprep.subr.bf16.mxu1 %v4121_v18 }
0x3753   :  { %3720 = vmatpush3.bf16.msra.mxu1 %v4718_v57 }
0x3754   :  { %3733 = vmatprep.subr.bf16.mxu1 %v4121_v18 }
0x3819   :  { %v1949_v38 = vpop.f32.mrb[52].mxu1 }
0x381a   :  { %v4764_v39 = vadd.f32 %v1949_v38, %v4695_v19  ;;  %v3691_v28 = vpop.f32.mrb[53].mxu1 }
0x381b   :  { %v1952_v51 = vpop.f32.mrb[54].mxu1 }
0x381c   :  { %v3692_v37 = vpop.f32.mrb[55].mxu1 }
0x3821   :  { %v2137_v25 = vpop.f32.mrb[56].mxu1 }
0x3822   :  { %v2143_v45 = vadd.f32 %v2137_v25, %v4670_v42  ;;  %v3707_v41 = vpop.f32.mrb[57].mxu1 }
0x3823   :  { %v2140_v36 = vpop.f32.mrb[58].mxu1 }
0x3824   :  { %3980 = vtanh.f32 %v2143_v45  ;;  %v3708_v49 = vpop.f32.mrb[59].mxu1 }
0x382e   :  { %v3981_v33 = vpop.eup %3980 }
0x382f   :  { %2149 = vrot.lane.b32.xlu0 %v3981_v33, %s4120_s1  ;;  %v2145_v54 = vmul.f32 0.5, %v3981_v33 }
0x3831   :  { %v2146_v58 = vadd.f32 0.5, %v2145_v54 }
0x3833   :  { %v2147_v19 = vmul.f32 %v2146_v58, %v2085_v22 }
0x38a1   :  { %v2150_v59 = vpop.permute.xlu0 %2149 }
0x38a2   :  { %v2152_v34 = vmul.f32 %v2150_v59, %v2146_v58 }
0x38a4   :  { %2154 = vrot.lane.b32.xlu1 %v2152_v34, %s4120_s1 }
0x3916   :  { %v2155_v13 = vpop.permute.xlu1 %2154 }
0x3917   :  { %v2157_v30 = vadd.f32 %v2155_v13, %v2147_v19 }
0x3919   :  { %3982 = vtanh.f32 %v2157_v30 }
0x3923   :  { %v3983_v60 = vpop.eup %3982 }
0x3924   :  { %2160 = vrot.lane.b32.xlu0 %v3983_v60, %s4120_s1 }
0x3996   :  { %v2161_v42 = vpop.permute.xlu0 %2160 }
0x3997   :  { %v2163_v61 = vmul.f32 %v2161_v42, %v2146_v58 }
0x3999   :  { %v4770_v62 = vpack.c.bf16 %v2163_v61, %v2163_v61 }
0x399b   :  { %2171 = vrot.lane.b32.xlu1 %v4770_v62, %s4116_s29 }
0x3a0d   :  { %v2172_v1 = vpop.permute.xlu1 %2171 }
0x3a0e   :  { %3714 = vmatmul.mubr.msk.bf16.vlgmr.msra.gmra.mrb[64].mxu0 %vm249_vm3, %v2172_v1 }
0x3a0f   :  { %3726 = vmatpush3.bf16.msra.mxu0 %v4714_v27  ;;  %3729 = vmatprep.mubr.msk.bf16.mxu0 %vm4122_vm1, %v4121_v18 }
0x3a10   :  { %3727 = vmatprep.subr.bf16.mxu0 %v4121_v18 }
0x3a13   :  { %3728 = vmatpush3.bf16.msra.mxu0 %v4718_v57 }
0x3a14   :  { %3741 = vmatprep.subr.bf16.mxu0 %v4121_v18 }
0x3ae1   :  { %v2210_v31 = vpop.f32.mrb[64].mxu0 }
0x3ae2   :  { %v2216_v2 = vadd.f32 %v2210_v31, %v4668_v48  ;;  %v3715_v7 = vpop.f32.mrb[65].mxu0 }
0x3ae3   :  { %v2213_v4 = vpop.f32.mrb[66].mxu0 }
0x3ae4   :  { %3984 = vtanh.f32 %v2216_v2  ;;  %v3716_v6 = vpop.f32.mrb[67].mxu0 }
0x3aee   :  { %v3985_v16 = vpop.eup %3984 }
0x3aef   :  { %2222 = vrot.lane.b32.xlu0 %v3985_v16, %s4120_s1  ;;  %v2218_v9 = vmul.f32 0.5, %v3985_v16 }
0x3af1   :  { %v2219_v10 = vadd.f32 0.5, %v2218_v9 }
0x3af3   :  { %v2220_v8 = vmul.f32 %v2219_v10, %v2157_v30 }
0x3b61   :  { %v2223_v11 = vpop.permute.xlu0 %2222 }
0x3b62   :  { %v2225_v17 = vmul.f32 %v2223_v11, %v2219_v10 }
0x3b64   :  { %2227 = vrot.lane.b32.xlu1 %v2225_v17, %s4120_s1 }
0x3bd6   :  { %v2228_v12 = vpop.permute.xlu1 %2227 }
0x3bd7   :  { %v2230_v14 = vadd.f32 %v2228_v12, %v2220_v8 }
0x3bd9   :  { %3986 = vtanh.f32 %v2230_v14 }
0x3be3   :  { %v3987_v35 = vpop.eup %3986 }
0x3be4   :  { %2233 = vrot.lane.b32.xlu0 %v3987_v35, %s4120_s1 }
0x3c56   :  { %v2234_v48 = vpop.permute.xlu0 %2233 }
0x3c57   :  { %v2236_v21 = vmul.f32 %v2234_v48, %v2219_v10 }
0x3c59   :  { %v4785_v20 = vpack.c.bf16 %v2236_v21, %v2236_v21 }
0x3c5b   :  { %2243 = vrot.lane.b32.xlu1 %v4785_v20, %s4116_s29 }
0x3ccd   :  { %v2244_v22 = vpop.permute.xlu1 %2243 }
0x3cce   :  { %3722 = vmatmul.mubr.msk.bf16.vlgmr.msra.gmra.mrb[60].mxu1 %vm249_vm3, %v2244_v22 }
0x3ccf   :  { %3734 = vmatpush3.bf16.msra.mxu1 %v4714_v27  ;;  %3737 = vmatprep.mubr.msk.bf16.mxu1 %vm4122_vm1, %v4121_v18 }
0x3cd0   :  { %3735 = vmatprep.subr.bf16.mxu1 %v4121_v18 }
0x3cd3   :  { %3736 = vmatpush3.bf16.msra.mxu1 %v4718_v57 }
0x3da1   :  { %v2282_v40 = vpop.f32.mrb[60].mxu1 }
0x3da2   :  { %v2288_v63 = vadd.f32 %v2282_v40, %v4618_v46  ;;  %v3723_v23 = vpop.f32.mrb[61].mxu1 }
0x3da3   :  { %v2285_v32 = vpop.f32.mrb[62].mxu1 }
0x3da4   :  { %3988 = vtanh.f32 %v2288_v63  ;;  %v3724_v3 = vpop.f32.mrb[63].mxu1 }
0x3dae   :  { %v3989_v29 = vpop.eup %3988 }
0x3daf   :  { %2294 = vrot.lane.b32.xlu0 %v3989_v29, %s4120_s1  ;;  %v2290_v5 = vmul.f32 0.5, %v3989_v29 }
0x3db1   :  { %v2291_v43 = vadd.f32 0.5, %v2290_v5 }
0x3db3   :  { %v2292_v28 = vmul.f32 %v2291_v43, %v2230_v14 }
0x3e21   :  { %v2295_v26 = vpop.permute.xlu0 %2294 }
0x3e22   :  { %v2297_v38 = vmul.f32 %v2295_v26, %v2291_v43 }
0x3e24   :  { %2299 = vrot.lane.b32.xlu1 %v2297_v38, %s4120_s1 }
0x3e96   :  { %v2300_v51 = vpop.permute.xlu1 %2299 }
0x3e97   :  { %v2302_v37 = vadd.f32 %v2300_v51, %v2292_v28 }
0x3e99   :  { %3990 = vtanh.f32 %v2302_v37 }
0x3ea3   :  { %v3991_v25 = vpop.eup %3990 }
0x3ea4   :  { %2305 = vrot.lane.b32.xlu0 %v3991_v25, %s4120_s1 }
0x3f16   :  { %v2306_v46 = vpop.permute.xlu0 %2305 }
0x3f17   :  { %v2308_v45 = vmul.f32 %v2306_v46, %v2291_v43 }
0x3f19   :  { %v4799_v41 = vpack.c.bf16 %v2308_v45, %v2308_v45 }
0x3f1b   :  { %2316 = vrot.lane.b32.xlu1 %v4799_v41, %s4116_s29 }
0x3f8d   :  { %v2317_v36 = vpop.permute.xlu1 %2316 }
0x3f8e   :  { %3730 = vmatmul.mubr.msk.bf16.vlgmr.msra.gmra.mrb[68].mxu0 %vm249_vm3, %v2317_v36  ;;  %v3862_v36 = vld [vmem:[%s5025_s7] ss:$8 sps:$4 sm:$0xff]  }
0x3f8f   :  { %3742 = vmatpush3.bf16.msra.mxu0 %v4714_v27  ;;  %3745 = vmatprep.mubr.msk.bf16.mxu0 %vm4122_vm1, %v4121_v18 }
0x3f90   :  { %3743 = vmatprep.subr.bf16.mxu0 %v4121_v18 }
0x3f93   :  { %3744 = vmatpush3.bf16.msra.mxu0 %v4718_v57 }
0x3f94   :  { %3749 = vmatprep.subr.bf16.mxu0 %v4121_v18 }
0x4061   :  { %v2355_v49 = vpop.f32.mrb[68].mxu0 }
0x4062   :  { %v2361_v33 = vadd.f32 %v2355_v49, %v4616_v44  ;;  %v3731_v54 = vpop.f32.mrb[69].mxu0  ;;  %v3864_v49 = vld [vmem:[%s5025_s7 + $0x4] ss:$8 sps:$4 sm:$0xff]  }
0x4063   :  { %v2358_v58 = vpop.f32.mrb[70].mxu0  ;;  %2597 = vmatprep.subr.bf16.mxu1 %v3864_v49 }
0x4064   :  { %3992 = vtanh.f32 %v2361_v33  ;;  %v3732_v59 = vpop.f32.mrb[71].mxu0  ;;  %v3865_v33 = vld [vmem:[%s5025_s7 + $0x10] ss:$8 sps:$4 sm:$0xff]  }
0x4065   :  { %v3870_v59 = vld [vmem:[%s5025_s7 + $0x24] ss:$8 sps:$4 sm:$0xff]  }
0x406e   :  { %v3993_v34 = vpop.eup %3992 }
0x406f   :  { %2367 = vrot.lane.b32.xlu0 %v3993_v34, %s4120_s1  ;;  %v2363_v27 = vmul.f32 0.5, %v3993_v34  ;;  %v3868_v34 = vld [vmem:[%s5025_s7 + $0x20] ss:$8 sps:$4 sm:$0xff]  }
0x4071   :  { %v2364_v19 = vadd.f32 0.5, %v2363_v27  ;;  %v3873_v27 = vld [vmem:[%s5025_s7 + $0x34] ss:$8 sps:$4 sm:$0xff]  }
0x4073   :  { %v2365_v60 = vmul.f32 %v2364_v19, %v2302_v37  ;;  %v1549_v37 = vrot.slane %v4602_v53, 4  ;;  %v3867_v53 = vld [vmem:[%s5025_s7 + $0x14] ss:$8 sps:$4 sm:$0xff]  }
0x40e1   :  { %v2368_v13 = vpop.permute.xlu0 %2367 }
0x40e2   :  { %v2370_v30 = vmul.f32 %v2368_v13, %v2364_v19 }
0x40e4   :  { %2372 = vrot.lane.b32.xlu1 %v2370_v30, %s4120_s1 }
0x4156   :  { %v2373_v57 = vpop.permute.xlu1 %2372 }
0x4157   :  { %v2375_v42 = vadd.f32 %v2373_v57, %v2365_v60 }
0x4159   :  { %3994 = vtanh.f32 %v2375_v42 }
0x4163   :  { %v3995_v61 = vpop.eup %3994 }
0x4164   :  { %2378 = vrot.lane.b32.xlu0 %v3995_v61, %s4120_s1 }
0x41d6   :  { %v2379_v44 = vpop.permute.xlu0 %2378 }
0x41d7   :  { %v2381_v1 = vmul.f32 %v2379_v44, %v2364_v19  ;;  %v3871_v19 = vld [vmem:[%s5025_s7 + $0x30] ss:$8 sps:$4 sm:$0xff]  }
0x41d9   :  { %v4814_v31 = vpack.c.bf16 %v2381_v1, %v2381_v1 }
0x41db   :  { %2388 = vrot.lane.b32.xlu1 %v4814_v31, %s4116_s29 }
0x424d   :  { %v2389_v2 = vpop.permute.xlu1 %2388 }
0x424e   :  { %3738 = vmatmul.mubr.msk.bf16.vlgmr.msra.gmra.mrb[64].mxu1 %vm249_vm3, %v2389_v2 }
0x424f   :  { %2629 = vmatprep.mubr.bf16.mxu1 %v4119_v0  ;;  %2598 = vmatpush1.bf16.msra.mxu1 %v3862_v36 }
0x4250   :  { %2599 = vmatprep.subr.bf16.mxu1 %v3867_v53 }
0x4253   :  { %2600 = vmatpush1.bf16.msra.mxu1 %v3865_v33 }
0x4254   :  { %2601 = vmatprep.subr.bf16.mxu1 %v3870_v59 }
0x4257   :  { %2602 = vmatpush1.bf16.msra.mxu1 %v3868_v34 }
0x4258   :  { %2603 = vmatprep.subr.bf16.mxu1 %v3873_v27 }
0x425b   :  { %2604 = vmatpush1.bf16.msra.mxu1 %v3871_v19 }
0x425c   :  { %3789 = vmatprep.subr.bf16.mxu1 %v4121_v18 }
0x4321   :  { %v2427_v7 = vpop.f32.mrb[64].mxu1 }
0x4322   :  { %v2433_v4 = vadd.f32 %v2427_v7, %v4559_v56  ;;  %v3739_v6 = vpop.f32.mrb[65].mxu1 }
0x4323   :  { %v2430_v16 = vpop.f32.mrb[66].mxu1 }
0x4324   :  { %3996 = vtanh.f32 %v2433_v4  ;;  %v3740_v9 = vpop.f32.mrb[67].mxu1 }
0x432e   :  { %v3997_v10 = vpop.eup %3996 }
0x432f   :  { %2439 = vrot.lane.b32.xlu0 %v3997_v10, %s4120_s1  ;;  %v2435_v11 = vmul.f32 0.5, %v3997_v10 }
0x4331   :  { %v2436_v17 = vadd.f32 0.5, %v2435_v11 }
0x4333   :  { %v2437_v14 = vmul.f32 %v2436_v17, %v2375_v42 }
0x43a1   :  { %v2440_v8 = vpop.permute.xlu0 %2439 }
0x43a2   :  { %v2442_v12 = vmul.f32 %v2440_v8, %v2436_v17 }
0x43a4   :  { %2444 = vrot.lane.b32.xlu1 %v2442_v12, %s4120_s1  ;;  %v4871_v12 = vld [vmem:[%s5026_s8] sm:$0xff]  }
0x4416   :  { %v2445_v35 = vpop.permute.xlu1 %2444 }
0x4417   :  { %v2447_v48 = vadd.f32 %v2445_v35, %v2437_v14  ;;  %v4877_v14 = vld [vmem:[%s5026_s8 + $0x8] sm:$0xff]  }
0x4419   :  { %3998 = vtanh.f32 %v2447_v48 }
0x4423   :  { %v3999_v21 = vpop.eup %3998 }
0x4424   :  { %2450 = vrot.lane.b32.xlu0 %v3999_v21, %s4120_s1 }
0x4496   :  { %v2451_v56 = vpop.permute.xlu0 %2450 }
0x4497   :  { %v2453_v22 = vmul.f32 %v2451_v56, %v2436_v17 }
0x4499   :  { %v2454_v40 = vpack.c.bf16 %v2453_v22, %v2453_v22 }
0x449b   :  { %2461 = vrot.lane.b32.xlu1 %v2454_v40, %s4116_s29  ;;  %v2456_v58 = vrot.slane %v2454_v40, 4 }
0x450d   :  { %v2462_v63 = vpop.permute.xlu1 %2461 }
0x450e   :  { %3746 = vmatmul.mubr.msk.bf16.vlgmr.msra.gmra.mrb[72].mxu0 %vm249_vm3, %v2462_v63 }
0x450f   :  { %3753 = vmatprep.mubr.msk.bf16.mxu0 %vm4122_vm1, %v4121_v18  ;;  %3750 = vmatpush3.bf16.msra.mxu0 %v4871_v12 }
0x4510   :  { %3751 = vmatprep.subr.bf16.mxu0 %v4121_v18 }
0x4513   :  { %3752 = vmatpush3.bf16.msra.mxu0 %v4877_v14 }
0x4514   :  { %3757 = vmatprep.subr.bf16.mxu0 %v4121_v18 }
0x45e1   :  { %v2500_v23 = vpop.f32.mrb[72].mxu0 }
0x45e2   :  { %v2506_v32 = vadd.f32 %v2500_v23, %v4557_v52  ;;  %v3747_v3 = vpop.f32.mrb[73].mxu0 }
0x45e3   :  { %v2503_v29 = vpop.f32.mrb[74].mxu0 }
0x45e4   :  { %4000 = vtanh.f32 %v2506_v32  ;;  %v3748_v5 = vpop.f32.mrb[75].mxu0 }
0x45ee   :  { %v4001_v43 = vpop.eup %4000 }
0x45ef   :  { %2512 = vrot.lane.b32.xlu0 %v4001_v43, %s4120_s1  ;;  %v2508_v26 = vmul.f32 0.5, %v4001_v43 }
0x45f1   :  { %v2509_v38 = vadd.f32 0.5, %v2508_v26 }
0x45f3   :  { %v2510_v25 = vmul.f32 %v2509_v38, %v2447_v48 }
0x4661   :  { %v2513_v28 = vpop.permute.xlu0 %2512 }
0x4662   :  { %v2515_v51 = vmul.f32 %v2513_v28, %v2509_v38  ;;  %v1692_v28 = vrot.slane %v4650_v55, 4  ;;  %v2311_v55 = vrot.slane %v4799_v41, 4 }
0x4664   :  { %2517 = vrot.lane.b32.xlu1 %v2515_v51, %s4120_s1 }
0x4668   :  { %1550 = vrot.lane.b32.xlu1 %v1549_v37, %s4116_s29 }
0x46d6   :  { %v2518_v46 = vpop.permute.xlu1 %2517 }
0x46d7   :  { %v2520_v52 = vadd.f32 %v2518_v46, %v2510_v25 }
0x46d9   :  { %4002 = vtanh.f32 %v2520_v52 }
0x46da   :  { %v1551_v45 = vpop.permute.xlu1 %1550 }
0x46db   :  { %1553 = vst.msk [vmem:[#allocation2] sm:$0xf0] %vm320_vm4, %v1551_v45 }
0x46e3   :  { %v4003_v54 = vpop.eup %4002 }
0x46e4   :  { %2523 = vrot.lane.b32.xlu0 %v4003_v54, %s4120_s1 }
0x46e8   :  { %2457 = vrot.lane.b32.xlu0 %v2456_v58, %s4123_s19 }
0x4756   :  { %v2524_v13 = vpop.permute.xlu0 %2523 }
0x4757   :  { %v2526_v30 = vmul.f32 %v2524_v13, %v2509_v38 }
0x4759   :  { %v2527_v60 = vpack.c.bf16 %v2526_v30, %v2526_v30 }
0x475a   :  { %v2458_v57 = vpop.permute.xlu0 %2457 }
0x475b   :  { %2460 = vst.msk [vmem:[#allocation2] sm:$0xf0] %vm781_vm5, %v2458_v57  ;;  %2529 = vrot.lane.b32.xlu1 %v2527_v60, %s4123_s19 }
0x47cd   :  { %v2530_v42 = vpop.permute.xlu1 %2529 }
0x47ce   :  { %2532 = vst.msk [vmem:[#allocation2] sm:$0xf] %vm866_vm6, %v2530_v42 }
0x47d5   :  { %v2533_v61 = vld [vmem:[#allocation2] sm:$0xff] }
0x47d6   :  { %3395 = vmatmul.mubr.msk.bf16.vlgmr.msra.gmra.mrb[68].mxu1 %vm1355_vm7, %v2533_v61 }
0x47d7   :  { %2637 = vmatprep.mubr.bf16.mxu1 %v4119_v0  ;;  %3790 = vmatpush3.bf16.msra.mxu1 %v4871_v12 }
0x47d8   :  { %3791 = vmatprep.subr.bf16.mxu1 %v4121_v18 }
0x47db   :  { %3792 = vmatpush3.bf16.msra.mxu1 %v4877_v14 }
0x47dc   :  { %3805 = vmatprep.subr.bf16.mxu1 %v4121_v18 }
0x48a9   :  { %v2631_v44 = vpop.f32.mrb[68].mxu1 }
0x48aa   :  { %4004 = vtanh.f32 %v2631_v44  ;;  %v2633_v1 = vpop.f32.mrb[69].mxu1 }
0x48ab   :  { %v2634_v2 = vpop.f32.mrb[70].mxu1 }
0x48ac   :  { %v2636_v7 = vpop.f32.mrb[71].mxu1 }
0x48b4   :  { %v4005_v4 = vpop.eup %4004 }
0x48b5   :  { %2672 = vrot.lane.b32.xlu0 %v4005_v4, %s4120_s1  ;;  %v2668_v6 = vmul.f32 0.5, %v4005_v4 }
0x48b7   :  { %v2669_v16 = vadd.f32 0.5, %v2668_v6 }
0x48b9   :  { %v2670_v11 = vmul.f32 0.0, %v2669_v16 }
0x4927   :  { %v2673_v9 = vpop.permute.xlu0 %2672 }
0x4928   :  { %v2675_v10 = vmul.f32 %v2673_v9, %v2669_v16 }
0x492a   :  { %2677 = vrot.lane.b32.xlu1 %v2675_v10, %s4120_s1 }
0x499c   :  { %v2678_v17 = vpop.permute.xlu1 %2677 }
0x499d   :  { %v2680_v8 = vadd.f32 %v2678_v17, %v2670_v11 }
0x499f   :  { %4006 = vtanh.f32 %v2680_v8 }
0x49a9   :  { %v4007_v35 = vpop.eup %4006 }
0x49aa   :  { %2683 = vrot.lane.b32.xlu0 %v4007_v35, %s4120_s1 }
0x4a1c   :  { %v2684_v48 = vpop.permute.xlu0 %2683 }
0x4a1d   :  { %v2686_v21 = vmul.f32 %v2684_v48, %v2669_v16 }
0x4a1f   :  { %v2687_v56 = vpack.c.bf16 %v2686_v21, %v2686_v21 }
0x4a21   :  { %2689 = vrot.lane.b32.xlu1 %v2687_v56, %s4116_s29 }
0x4a93   :  { %v2690_v22 = vpop.permute.xlu1 %2689 }
0x4a94   :  { %3754 = vmatmul.mubr.msk.bf16.vlgmr.msra.gmra.mrb[76].mxu0 %vm249_vm3, %v2690_v22 }
0x4a95   :  { %3758 = vmatpush3.bf16.msra.mxu0 %v4871_v12  ;;  %3761 = vmatprep.mubr.msk.bf16.mxu0 %vm4122_vm1, %v4121_v18 }
0x4a96   :  { %3759 = vmatprep.subr.bf16.mxu0 %v4121_v18 }
0x4a99   :  { %3760 = vmatpush3.bf16.msra.mxu0 %v4877_v14 }
0x4a9a   :  { %3765 = vmatprep.subr.bf16.mxu0 %v4121_v18 }
0x4b67   :  { %v2740_v40 = vpop.f32.mrb[76].mxu0 }
0x4b68   :  { %v2746_v63 = vadd.f32 %v2740_v40, %v2634_v2  ;;  %v3755_v23 = vpop.f32.mrb[77].mxu0 }
0x4b69   :  { %v2743_v32 = vpop.f32.mrb[78].mxu0 }
0x4b6a   :  { %4008 = vtanh.f32 %v2746_v63  ;;  %v3756_v3 = vpop.f32.mrb[79].mxu0  ;;  %v1835_v32 = vrot.slane %v4710_v50, 4  ;;  %v2166_v50 = vrot.slane %v4770_v62, 4 }
0x4b74   :  { %v4009_v29 = vpop.eup %4008 }
0x4b75   :  { %2752 = vrot.lane.b32.xlu0 %v4009_v29, %s4120_s1  ;;  %v2748_v5 = vmul.f32 0.5, %v4009_v29 }
0x4b77   :  { %v2749_v43 = vadd.f32 0.5, %v2748_v5 }
0x4b79   :  { %v2750_v51 = vmul.f32 %v2749_v43, %v2680_v8 }
0x4be7   :  { %v2753_v26 = vpop.permute.xlu0 %2752 }
0x4be8   :  { %v2755_v38 = vmul.f32 %v2753_v26, %v2749_v43 }
0x4bea   :  { %2757 = vrot.lane.b32.xlu1 %v2755_v38, %s4120_s1 }
0x4bee   :  { %1693 = vrot.lane.b32.xlu1 %v1692_v28, %s4116_s29 }
0x4bf2   :  { %2384 = vrot.lane.b32.xlu1 %v4814_v31, %s4123_s19 }
0x4c5c   :  { %v2758_v37 = vpop.permute.xlu1 %2757 }
0x4c5d   :  { %v2760_v25 = vadd.f32 %v2758_v37, %v2750_v51 }
0x4c5f   :  { %4010 = vtanh.f32 %v2760_v25 }
0x4c60   :  { %v1694_v46 = vpop.permute.xlu1 %1693 }
0x4c61   :  { %1696 = vst.msk [vmem:[#allocation2 + $0x8] sm:$0xf0] %vm320_vm4, %v1694_v46 }
0x4c64   :  { %v2385_v52 = vpop.permute.xlu1 %2384 }
0x4c65   :  { %2387 = vst.msk [vmem:[#allocation2 + $0x8] sm:$0xf] %vm866_vm6, %v2385_v52 }
0x4c69   :  { %v4011_v45 = vpop.eup %4010 }
0x4c6a   :  { %2763 = vrot.lane.b32.xlu0 %v4011_v45, %s4120_s1 }
0x4c6e   :  { %2312 = vrot.lane.b32.xlu0 %v2311_v55, %s4123_s19 }
0x4cdc   :  { %v2764_v36 = vpop.permute.xlu0 %2763 }
0x4cdd   :  { %v2766_v49 = vmul.f32 %v2764_v36, %v2749_v43 }
0x4cdf   :  { %v2767_v31 = vpack.c.bf16 %v2766_v49, %v2766_v49 }
0x4ce0   :  { %v2313_v53 = vpop.permute.xlu0 %2312 }
0x4ce1   :  { %2315 = vst.msk [vmem:[#allocation2 + $0x8] sm:$0xf0] %vm781_vm5, %v2313_v53  ;;  %2769 = vrot.lane.b32.xlu0 %v2767_v31, %s4116_s29 }
0x4ce8   :  { %v2534_v33 = vld [vmem:[#allocation2 + $0x8] sm:$0xff] }
0x4ce9   :  { %3396 = vmatmul.mubr.msk.bf16.gmra.mrb[72].mxu1 %vm1355_vm7, %v2534_v33 }
0x4cea   :  { %2645 = vmatprep.mubr.bf16.mxu1 %v4119_v0 }
0x4d53   :  { %v2770_v54 = vpop.permute.xlu0 %2769 }
0x4d54   :  { %3762 = vmatmul.mubr.msk.bf16.vlgmr.msra.gmra.mrb[80].mxu0 %vm249_vm3, %v2770_v54 }
0x4d55   :  { %3766 = vmatpush3.bf16.msra.mxu0 %v4871_v12  ;;  %3769 = vmatprep.mubr.msk.bf16.mxu0 %vm4122_vm1, %v4121_v18 }
0x4d56   :  { %3767 = vmatprep.subr.bf16.mxu0 %v4121_v18 }
0x4d59   :  { %3768 = vmatpush3.bf16.msra.mxu0 %v4877_v14 }
0x4d5a   :  { %3773 = vmatprep.subr.bf16.mxu0 %v4121_v18 }
0x4dbc   :  { %v2639_v41 = vpop.f32.mrb[72].mxu1 }
0x4dbd   :  { %v2641_v58 = vpop.f32.mrb[73].mxu1 }
0x4dbe   :  { %v2642_v59 = vpop.f32.mrb[74].mxu1 }
0x4dbf   :  { %v2644_v34 = vpop.f32.mrb[75].mxu1 }
0x4e27   :  { %v2808_v27 = vpop.f32.mrb[80].mxu0 }
0x4e28   :  { %v2814_v19 = vadd.f32 %v2808_v27, %v2639_v41  ;;  %v3763_v13 = vpop.f32.mrb[81].mxu0 }
0x4e29   :  { %v2811_v30 = vpop.f32.mrb[82].mxu0 }
0x4e2a   :  { %4012 = vtanh.f32 %v2814_v19  ;;  %v3764_v60 = vpop.f32.mrb[83].mxu0 }
0x4e34   :  { %v4013_v57 = vpop.eup %4012 }
0x4e35   :  { %2820 = vrot.lane.b32.xlu1 %v4013_v57, %s4120_s1  ;;  %v2816_v42 = vmul.f32 0.5, %v4013_v57 }
0x4e37   :  { %v2817_v61 = vadd.f32 0.5, %v2816_v42 }
0x4e39   :  { %v2818_v2 = vmul.f32 %v2817_v61, %v2760_v25 }
0x4ea7   :  { %v2821_v44 = vpop.permute.xlu1 %2820 }
0x4ea8   :  { %v2823_v1 = vmul.f32 %v2821_v44, %v2817_v61 }
0x4eaa   :  { %2825 = vrot.lane.b32.xlu0 %v2823_v1, %s4120_s1 }
0x4f1c   :  { %v2826_v7 = vpop.permute.xlu0 %2825 }
0x4f1d   :  { %v2828_v4 = vadd.f32 %v2826_v7, %v2818_v2 }
0x4f1f   :  { %4014 = vtanh.f32 %v2828_v4 }
0x4f29   :  { %v4015_v6 = vpop.eup %4014 }
0x4f2a   :  { %2831 = vrot.lane.b32.xlu1 %v4015_v6, %s4120_s1 }
0x4f9c   :  { %v2832_v16 = vpop.permute.xlu1 %2831 }
0x4f9d   :  { %v2834_v9 = vmul.f32 %v2832_v16, %v2817_v61 }
0x4f9f   :  { %v2835_v10 = vpack.c.bf16 %v2834_v9, %v2834_v9 }
0x4fa1   :  { %2837 = vrot.lane.b32.xlu0 %v2835_v10, %s4116_s29 }
0x5013   :  { %v2838_v11 = vpop.permute.xlu0 %2837 }
0x5014   :  { %3770 = vmatmul.mubr.msk.bf16.vlgmr.msra.gmra.mrb[84].mxu0 %vm249_vm3, %v2838_v11 }
0x5015   :  { %3774 = vmatpush3.bf16.msra.mxu0 %v4871_v12  ;;  %3777 = vmatprep.mubr.msk.bf16.mxu0 %vm4122_vm1, %v4121_v18 }
0x5016   :  { %3775 = vmatprep.subr.bf16.mxu0 %v4121_v18 }
0x5019   :  { %3776 = vmatpush3.bf16.msra.mxu0 %v4877_v14 }
0x501a   :  { %3781 = vmatprep.subr.bf16.mxu0 %v4121_v18 }
0x50e7   :  { %v2876_v17 = vpop.f32.mrb[84].mxu0 }
0x50e8   :  { %v2882_v8 = vadd.f32 %v2876_v17, %v2642_v59  ;;  %v3771_v35 = vpop.f32.mrb[85].mxu0 }
0x50e9   :  { %v2879_v48 = vpop.f32.mrb[86].mxu0 }
0x50ea   :  { %4016 = vtanh.f32 %v2882_v8  ;;  %v3772_v21 = vpop.f32.mrb[87].mxu0 }
0x50f4   :  { %v4017_v56 = vpop.eup %4016 }
0x50f5   :  { %2888 = vrot.lane.b32.xlu1 %v4017_v56, %s4120_s1  ;;  %v2884_v22 = vmul.f32 0.5, %v4017_v56 }
0x50f7   :  { %v2885_v40 = vadd.f32 0.5, %v2884_v22 }
0x50f9   :  { %v2886_v3 = vmul.f32 %v2885_v40, %v2828_v4 }
0x5167   :  { %v2889_v63 = vpop.permute.xlu1 %2888 }
0x5168   :  { %v2891_v23 = vmul.f32 %v2889_v63, %v2885_v40 }
0x516a   :  { %2893 = vrot.lane.b32.xlu0 %v2891_v23, %s4120_s1 }
0x516e   :  { %1836 = vrot.lane.b32.xlu0 %v1835_v32, %s4116_s29 }
0x5172   :  { %2239 = vrot.lane.b32.xlu0 %v4785_v20, %s4123_s19 }
0x51dc   :  { %v2894_v29 = vpop.permute.xlu0 %2893 }
0x51dd   :  { %v2896_v5 = vadd.f32 %v2894_v29, %v2886_v3 }
0x51df   :  { %4018 = vtanh.f32 %v2896_v5 }
0x51e0   :  { %v1837_v43 = vpop.permute.xlu0 %1836 }
0x51e1   :  { %1839 = vst.msk [vmem:[#allocation2 + $0x10] sm:$0xf0] %vm320_vm4, %v1837_v43 }
0x51e4   :  { %v2240_v26 = vpop.permute.xlu0 %2239 }
0x51e5   :  { %2242 = vst.msk [vmem:[#allocation2 + $0x10] sm:$0xf] %vm866_vm6, %v2240_v26 }
0x51e9   :  { %v4019_v38 = vpop.eup %4018 }
0x51ea   :  { %2899 = vrot.lane.b32.xlu1 %v4019_v38, %s4120_s1 }
0x51ee   :  { %2167 = vrot.lane.b32.xlu1 %v2166_v50, %s4123_s19 }
0x525c   :  { %v2900_v28 = vpop.permute.xlu1 %2899 }
0x525d   :  { %v2902_v51 = vmul.f32 %v2900_v28, %v2885_v40 }
0x525f   :  { %v2903_v20 = vpack.c.bf16 %v2902_v51, %v2902_v51 }
0x5260   :  { %v2168_v37 = vpop.permute.xlu1 %2167 }
0x5261   :  { %2170 = vst.msk [vmem:[#allocation2 + $0x10] sm:$0xf0] %vm781_vm5, %v2168_v37  ;;  %2905 = vrot.lane.b32.xlu1 %v2903_v20, %s4116_s29 }
0x5268   :  { %v2535_v25 = vld [vmem:[#allocation2 + $0x10] sm:$0xff] }
0x5269   :  { %3397 = vmatmul.mubr.msk.bf16.gmra.mrb[76].mxu1 %vm1355_vm7, %v2535_v25 }
0x526a   :  { %2653 = vmatprep.mubr.bf16.mxu1 %v4119_v0 }
0x52d3   :  { %v2906_v46 = vpop.permute.xlu1 %2905 }
0x52d4   :  { %3778 = vmatmul.mubr.msk.bf16.vlgmr.msra.gmra.mrb[88].mxu0 %vm249_vm3, %v2906_v46 }
0x52d5   :  { %3782 = vmatpush3.bf16.msra.mxu0 %v4871_v12  ;;  %3785 = vmatprep.mubr.msk.bf16.mxu0 %vm4122_vm1, %v4121_v18 }
0x52d6   :  { %3783 = vmatprep.subr.bf16.mxu0 %v4121_v18 }
0x52d9   :  { %3784 = vmatpush3.bf16.msra.mxu0 %v4877_v14 }
0x52da   :  { %3797 = vmatprep.subr.bf16.mxu0 %v4121_v18 }
0x533c   :  { %v2647_v62 = vpop.f32.mrb[76].mxu1 }
0x533d   :  { %v2649_v52 = vpop.f32.mrb[77].mxu1 }
0x533e   :  { %v2650_v45 = vpop.f32.mrb[78].mxu1 }
0x533f   :  { %v2652_v55 = vpop.f32.mrb[79].mxu1 }
0x53a7   :  { %v2944_v36 = vpop.f32.mrb[88].mxu0 }
0x53a8   :  { %v2950_v0 = vadd.f32 %v2944_v36, %v2647_v62  ;;  %v3779_v49 = vpop.f32.mrb[89].mxu0 }
0x53a9   :  { %v2947_v31 = vpop.f32.mrb[90].mxu0 }
0x53aa   :  { %4020 = vtanh.f32 %v2950_v0  ;;  %v3780_v53 = vpop.f32.mrb[91].mxu0 }
0x53b4   :  { %v4021_v33 = vpop.eup %4020 }
0x53b5   :  { %2956 = vrot.lane.b32.xlu0 %v4021_v33, %s4120_s1  ;;  %v2952_v54 = vmul.f32 0.5, %v4021_v33 }
0x53b7   :  { %v2953_v41 = vadd.f32 0.5, %v2952_v54 }
0x53b9   :  { %v2954_v34 = vmul.f32 %v2953_v41, %v2896_v5  ;;  %v2009_v5 = vrot.slane %v4706_v47, 4 }
0x5427   :  { %v2957_v58 = vpop.permute.xlu0 %2956 }
0x5428   :  { %v2959_v59 = vmul.f32 %v2957_v58, %v2953_v41 }
0x542a   :  { %2961 = vrot.lane.b32.xlu1 %v2959_v59, %s4120_s1 }
0x549c   :  { %v2962_v27 = vpop.permute.xlu1 %2961 }
0x549d   :  { %v2964_v19 = vadd.f32 %v2962_v27, %v2954_v34 }
0x549f   :  { %4022 = vtanh.f32 %v2964_v19 }
0x54a0   :  { %4024 = vtanh.f32 %v4764_v39 }
0x54a9   :  { %v4023_v13 = vpop.eup %4022 }
0x54aa   :  { %2967 = vrot.lane.b32.xlu0 %v4023_v13, %s4120_s1  ;;  %v4025_v30 = vpop.eup %4024 }
0x54ab   :  { %v1957_v60 = vmul.f32 0.5, %v4025_v30 }
0x54ad   :  { %v1958_v44 = vadd.f32 0.5, %v1957_v60 }
0x54ae   :  { %1961 = vrot.lane.b32.xlu0 %v4025_v30, %s4120_s1 }
0x54af   :  { %v1959_v39 = vmul.f32 %v1958_v44, %v4737_v15 }
0x551c   :  { %v2968_v57 = vpop.permute.xlu0 %2967 }
0x551d   :  { %v2970_v42 = vmul.f32 %v2968_v57, %v2953_v41 }
0x551f   :  { %v2971_v61 = vpack.c.bf16 %v2970_v42, %v2970_v42 }
0x5520   :  { %v1962_v1 = vpop.permute.xlu0 %1961 }
0x5521   :  { %v1964_v2 = vmul.f32 %v1962_v1, %v1958_v44  ;;  %2973 = vrot.lane.b32.xlu1 %v2971_v61, %s4116_s29 }
0x5523   :  { %1966 = vrot.lane.b32.xlu0 %v1964_v2, %s4120_s1 }
0x5593   :  { %v2974_v7 = vpop.permute.xlu1 %2973 }
0x5594   :  { %3786 = vmatmul.mubr.msk.bf16.vlgmr.msra.gmra.mrb[92].mxu0 %vm249_vm3, %v2974_v7  ;;  %v3876_v7 = vld [vmem:[%s5028_s10 + $0x10] sm:$0xff]  }
0x5595   :  { %v1967_v4 = vpop.permute.xlu0 %1966  ;;  %3798 = vmatpush3.bf16.msra.mxu0 %v4871_v12  ;;  %3801 = vmatprep.mubr.msk.bf16.mxu0 %vm4122_vm1, %v4121_v18 }
0x5596   :  { %v1969_v6 = vadd.f32 %v1967_v4, %v1959_v39  ;;  %3799 = vmatprep.subr.bf16.mxu0 %v4121_v18  ;;  %v3877_v39 = vld [vmem:[%s5028_s10 + $0x18] sm:$0xff]  }
0x5598   :  { %4026 = vtanh.f32 %v1969_v6 }
0x5599   :  { %3800 = vmatpush3.bf16.msra.mxu0 %v4877_v14 }
0x55a2   :  { %v4027_v16 = vpop.eup %4026 }
0x55a3   :  { %1972 = vrot.lane.b32.xlu0 %v4027_v16, %s4120_s1 }
0x5615   :  { %v1973_v9 = vpop.permute.xlu0 %1972 }
0x5616   :  { %v1975_v10 = vmul.f32 %v1973_v9, %v1958_v44 }
0x5618   :  { %v1976_v11 = vpack.c.bf16 %v1975_v10, %v1975_v10 }
0x561a   :  { %v1978_v17 = vrot.slane %v1976_v11, 4 }
0x561c   :  { %1979 = vrot.lane.b32.xlu0 %v1978_v17, %s4116_s29 }
0x5620   :  { %2094 = vrot.lane.b32.xlu0 %v4744_v24, %s4123_s19 }
0x5667   :  { %v3012_v15 = vpop.f32.mrb[92].mxu0 }
0x5668   :  { %v3018_v12 = vadd.f32 %v3012_v15, %v2650_v45  ;;  %v3787_v8 = vpop.f32.mrb[93].mxu0 }
0x5669   :  { %v3015_v35 = vpop.f32.mrb[94].mxu0 }
0x566a   :  { %4028 = vtanh.f32 %v3018_v12  ;;  %v3788_v48 = vpop.f32.mrb[95].mxu0 }
0x5674   :  { %v4029_v21 = vpop.eup %4028 }
0x5675   :  { %3024 = vrot.lane.b32.xlu1 %v4029_v21, %s4120_s1  ;;  %v3020_v22 = vmul.f32 0.5, %v4029_v21 }
0x5677   :  { %v3021_v40 = vadd.f32 0.5, %v3020_v22 }
0x5679   :  { %v3022_v24 = vmul.f32 %v3021_v40, %v2964_v19 }
0x568e   :  { %v1980_v14 = vpop.permute.xlu0 %1979 }
0x568f   :  { %1982 = vst.msk [vmem:[#allocation2 + $0x18] sm:$0xf0] %vm320_vm4, %v1980_v14 }
0x5692   :  { %v2095_v56 = vpop.permute.xlu0 %2094 }
0x5693   :  { %2097 = vst.msk [vmem:[#allocation2 + $0x18] sm:$0xf] %vm866_vm6, %v2095_v56 }
0x56e7   :  { %v3025_v63 = vpop.permute.xlu1 %3024 }
0x56e8   :  { %v3027_v23 = vmul.f32 %v3025_v63, %v3021_v40  ;;  %v3878_v63 = vld [vmem:[%s5028_s10] sm:$0xff]  }
0x56ea   :  { %3029 = vrot.lane.b32.xlu1 %v3027_v23, %s4120_s1  ;;  %v3879_v23 = vld [vmem:[%s5028_s10 + $0x8] sm:$0xff]  }
0x575c   :  { %v3030_v32 = vpop.permute.xlu1 %3029 }
0x575d   :  { %v3032_v3 = vadd.f32 %v3030_v32, %v3022_v24 }
0x575f   :  { %4030 = vtanh.f32 %v3032_v3 }
0x5769   :  { %v4031_v29 = vpop.eup %4030 }
0x576a   :  { %3035 = vrot.lane.b32.xlu1 %v4031_v29, %s4120_s1 }
0x576e   :  { %2010 = vrot.lane.b32.xlu1 %v2009_v5, %s4123_s19 }
0x57dc   :  { %v3036_v43 = vpop.permute.xlu1 %3035 }
0x57dd   :  { %v3038_v26 = vmul.f32 %v3036_v43, %v3021_v40 }
0x57df   :  { %v3039_v38 = vpack.c.bf16 %v3038_v26, %v3038_v26 }
0x57e0   :  { %v2011_v50 = vpop.permute.xlu1 %2010 }
0x57e1   :  { %2013 = vst.msk [vmem:[#allocation2 + $0x18] sm:$0xf0] %vm781_vm5, %v2011_v50  ;;  %3041 = vrot.lane.b32.xlu1 %v3039_v38, %s4116_s29 }
0x57e8   :  { %v2536_v28 = vld [vmem:[#allocation2 + $0x18] sm:$0xff] }
0x57e9   :  { %3398 = vmatmul.mubr.msk.bf16.gmra.mrb[80].mxu1 %vm1355_vm7, %v2536_v28 }
0x57ea   :  { %3793 = vmatprep.mubr.msk.bf16.mxu1 %vm4122_vm1, %v4121_v18 }
0x5853   :  { %v3042_v51 = vpop.permute.xlu1 %3041 }
0x5854   :  { %3794 = vmatmul.mubr.msk.bf16.vlgmr.msra.gmra.mrb[84].mxu1 %vm249_vm3, %v3042_v51 }
0x5855   :  { %3809 = vmatprep.mubr.msk.bf16.mxu1 %vm4122_vm1, %v4121_v18  ;;  %3806 = vmatpush3.bf16.msra.mxu1 %v3876_v7 }
0x5856   :  { %3807 = vmatprep.subr.bf16.mxu1 %v4121_v18 }
0x5859   :  { %3808 = vmatpush3.bf16.msra.mxu1 %v3877_v39 }
0x585a   :  { %3813 = vmatprep.subr.bf16.mxu1 %v4121_v18 }
0x58bc   :  { %v2655_v47 = vpop.f32.mrb[80].mxu1 }
0x58bd   :  { %v2657_v20 = vpop.f32.mrb[81].mxu1 }
0x58be   :  { %v2658_v37 = vpop.f32.mrb[82].mxu1 }
0x58bf   :  { %v2660_v25 = vpop.f32.mrb[83].mxu1 }
0x5927   :  { %v3080_v46 = vpop.f32.mrb[84].mxu1 }
0x5928   :  { %v3086_v62 = vadd.f32 %v3080_v46, %v2655_v47  ;;  %v3795_v52 = vpop.f32.mrb[85].mxu1 }
0x5929   :  { %v3083_v45 = vpop.f32.mrb[86].mxu1 }
0x592a   :  { %4032 = vtanh.f32 %v3086_v62  ;;  %v3796_v55 = vpop.f32.mrb[87].mxu1 }
0x5934   :  { %v4033_v36 = vpop.eup %4032 }
0x5935   :  { %3092 = vrot.lane.b32.xlu0 %v4033_v36, %s4120_s1  ;;  %v3088_v0 = vmul.f32 0.5, %v4033_v36 }
0x5937   :  { %v3089_v49 = vadd.f32 0.5, %v3088_v0 }
0x5939   :  { %v3090_v33 = vmul.f32 %v3089_v49, %v3032_v3 }
0x59a7   :  { %v3093_v31 = vpop.permute.xlu0 %3092 }
0x59a8   :  { %v3095_v53 = vmul.f32 %v3093_v31, %v3089_v49 }
0x59aa   :  { %3097 = vrot.lane.b32.xlu1 %v3095_v53, %s4120_s1 }
0x5a1c   :  { %v3098_v54 = vpop.permute.xlu1 %3097 }
0x5a1d   :  { %v3100_v41 = vadd.f32 %v3098_v54, %v3090_v33 }
0x5a1f   :  { %4034 = vtanh.f32 %v3100_v41 }
0x5a20   :  { %4036 = vtanh.f32 %v2660_v25 }
0x5a29   :  { %v4035_v58 = vpop.eup %4034 }
0x5a2a   :  { %3103 = vrot.lane.b32.xlu0 %v4035_v58, %s4120_s1  ;;  %v4037_v59 = vpop.eup %4036 }
0x5a2b   :  { %v3176_v34 = vmul.f32 0.5, %v4037_v59 }
0x5a2d   :  { %v3177_v30 = vadd.f32 0.5, %v3176_v34 }
0x5a2e   :  { %3180 = vrot.lane.b32.xlu0 %v4037_v59, %s4120_s1 }
0x5a2f   :  { %v3178_v61 = vmul.f32 0.0, %v3177_v30 }
0x5a9c   :  { %v3104_v27 = vpop.permute.xlu0 %3103 }
0x5a9d   :  { %v3106_v19 = vmul.f32 %v3104_v27, %v3089_v49 }
0x5a9f   :  { %v3107_v13 = vpack.c.bf16 %v3106_v19, %v3106_v19 }
0x5aa0   :  { %v3181_v60 = vpop.permute.xlu0 %3180 }
0x5aa1   :  { %v3183_v57 = vmul.f32 %v3181_v60, %v3177_v30  ;;  %3109 = vrot.lane.b32.xlu1 %v3107_v13, %s4116_s29 }
0x5aa3   :  { %3185 = vrot.lane.b32.xlu0 %v3183_v57, %s4120_s1 }
0x5b13   :  { %v3110_v42 = vpop.permute.xlu1 %3109 }
0x5b14   :  { %3802 = vmatmul.mubr.msk.bf16.vlgmr.msra.gmra.mrb[96].mxu0 %vm249_vm3, %v3110_v42 }
0x5b15   :  { %v3186_v44 = vpop.permute.xlu0 %3185 }
0x5b16   :  { %v3188_v1 = vadd.f32 %v3186_v44, %v3178_v61 }
0x5b18   :  { %4038 = vtanh.f32 %v3188_v1 }
0x5b22   :  { %v4039_v2 = vpop.eup %4038 }
0x5b23   :  { %3191 = vrot.lane.b32.xlu0 %v4039_v2, %s4120_s1 }
0x5b95   :  { %v3192_v4 = vpop.permute.xlu0 %3191 }
0x5b96   :  { %v3194_v6 = vmul.f32 %v3192_v4, %v3177_v30 }
0x5b98   :  { %v3200_v16 = vpack.c.bf16 %v3194_v6, %v3194_v6 }
0x5b9a   :  { %3206 = vrot.lane.b32.xlu0 %v3200_v16, %s4116_s29 }
0x5be7   :  { %v3148_v9 = vpop.f32.mrb[96].mxu0 }
0x5be8   :  { %v3154_v10 = vadd.f32 %v3148_v9, %v2658_v37  ;;  %v3803_v11 = vpop.f32.mrb[97].mxu0 }
0x5be9   :  { %v3151_v17 = vpop.f32.mrb[98].mxu0 }
0x5bea   :  { %4040 = vtanh.f32 %v3154_v10  ;;  %v3804_v15 = vpop.f32.mrb[99].mxu0 }
0x5bf4   :  { %v4041_v12 = vpop.eup %4040 }
0x5bf5   :  { %3160 = vrot.lane.b32.xlu1 %v4041_v12, %s4120_s1  ;;  %v3156_v35 = vmul.f32 0.5, %v4041_v12 }
0x5bf7   :  { %v3157_v48 = vadd.f32 0.5, %v3156_v35 }
0x5bf9   :  { %v3158_v56 = vmul.f32 %v3157_v48, %v3100_v41 }
0x5c0c   :  { %v3207_v8 = vpop.permute.xlu0 %3206 }
0x5c0d   :  { %3810 = vmatmul.mubr.msk.bf16.vlgmr.msra.gmra.mrb[88].mxu1 %vm249_vm3, %v3207_v8 }
0x5c0e   :  { %3817 = vmatprep.mubr.msk.bf16.mxu1 %vm4122_vm1, %v4121_v18  ;;  %3814 = vmatpush3.bf16.msra.mxu1 %v3878_v63 }
0x5c0f   :  { %3815 = vmatprep.subr.bf16.mxu1 %v4121_v18 }
0x5c12   :  { %3816 = vmatpush3.bf16.msra.mxu1 %v3879_v23 }
0x5c67   :  { %v3161_v21 = vpop.permute.xlu1 %3160 }
0x5c68   :  { %v3163_v14 = vmul.f32 %v3161_v21, %v3157_v48 }
0x5c6a   :  { %3165 = vrot.lane.b32.xlu1 %v3163_v14, %s4120_s1 }
0x5cdc   :  { %v3166_v22 = vpop.permute.xlu1 %3165 }
0x5cdd   :  { %v3168_v40 = vadd.f32 %v3166_v22, %v3158_v56 }
0x5cdf   :  { %4042 = vtanh.f32 %v3168_v40 }
0x5ce9   :  { %v4043_v24 = vpop.eup %4042 }
0x5cea   :  { %3171 = vrot.lane.b32.xlu1 %v4043_v24, %s4120_s1 }
0x5d5c   :  { %v3172_v32 = vpop.permute.xlu1 %3171 }
0x5d5d   :  { %v3174_v3 = vmul.f32 %v3172_v32, %v3157_v48 }
0x5d5f   :  { %v3195_v29 = vpack.c.bf16 %v3174_v3, %v3174_v3 }
0x5d61   :  { %3264 = vrot.lane.b32.xlu1 %v3195_v29, %s4116_s29 }
0x5dd3   :  { %v3265_v5 = vpop.permute.xlu1 %3264 }
0x5dd4   :  { %3818 = vmatmul.mubr.msk.bf16.vlgmr.msra.gmra.mrb[88].mxu1 %vm249_vm3, %v3265_v5 }
0x5ea7   :  { %v3315_v43 = vpop.f32.mrb[88].mxu1 }
0x5ea8   :  { %3322 = vst.msk [vmem:[%s5029_s11] sm:$0xff] %vm3321_vm8, %v3315_v43  ;;  %v3819_v26 = vpop.f32.mrb[89].mxu1 }
0x5ea9   :  { %v3318_v18 = vpop.f32.mrb[90].mxu1 }
0x5eaa   :  { %v3820_v38 = vpop.f32.mrb[91].mxu1 }
0x5eab   :  { %3327 = vsyncpa [#allocation4], 1 }
0x5eac   :  { %3328 = vsyncpa [#allocation6], 1 }

</bundles_post_ra>
